<compile_context>
chip_gen: v7x
topology: tpu7x:2x2x1
jax: 0.10.0
libtpu: 0.0.40
codegen_flags: <defaults>
</compile_context>

<pallas_src>
import jax
import jax.numpy as jnp
from jax import lax
from jax.experimental import pallas as pl
from jax.experimental.pallas import tpu as pltpu

K = 5        # conv kernel size
F = 32       # filters
P = 4        # pool size (kernel == stride)
CPAD = 2     # conv padding (zeros)
PPAD = 2     # pool padding (-inf)
CHUNK = 128  # stage-1 L chunk (multiple of 8; chunk result fits in vregs)


def _pad_classes(classes):
    """Pad class count so diagonal FC blocks never cross a 128-lane tile."""
    for cp in (16, 32, 64, 128):
        if classes <= cp:
            return cp
    return ((classes + 127) // 128) * 128


def _tree_sum(parts):
    parts = list(parts)
    while len(parts) > 1:
        nxt = [parts[i] + parts[i + 1] for i in range(0, len(parts) - 1, 2)]
        if len(parts) % 2:
            nxt.append(parts[-1])
        parts = nxt
    return parts[0]


def _maxpool(pool_ref, out_len):
    """MaxPool1d(P, stride=P, padding=PPAD) over a -inf padded scratch buffer."""
    s = [pool_ref[pl.ds(j, out_len, stride=P), :] for j in range(P)]
    return jnp.maximum(jnp.maximum(s[0], s[1]), jnp.maximum(s[2], s[3]))


def _make_kernel(L0, C_in, BT, CP):
    L1 = L0 // P + 1
    L2 = L1 // P + 1
    L3 = L2 // P + 1

    def conv1_to_pool(x_ref, bb, w_ref, b_ref, dst_ref):
        # x_ref[bb]: (L0, K*C_in) host-side im2col.  One tap-fused matmul per
        # L-chunk; bias + relu fused; stored straight into the pool buffer.
        b = b_ref[...]
        for r in range(0, L0, CHUNK):
            n = min(CHUNK, L0 - r)
            y = jnp.dot(x_ref[bb, pl.ds(r, n), :], w_ref[...],
                        preferred_element_type=jnp.float32)
            dst_ref[pl.ds(PPAD + r, n), :] = jnp.maximum(y + b, 0.0)

    def conv_fused_to_pool(src_ref, w_ref, b_ref, L, dst_ref):
        # src_ref: (L + 2*CPAD, F) zero-padded activations.
        # w_ref:   (F, K*F) = [W_0 | W_1 | ... | W_4]  (taps along N).
        # Single matmul; tap k's contribution is a row-shifted diagonal block.
        y = jnp.dot(src_ref[...], w_ref[...], preferred_element_type=jnp.float32)
        taps = [y[k:k + L, k * F:(k + 1) * F] for k in range(K)]
        dst_ref[pl.ds(PPAD, L), :] = jnp.maximum(_tree_sum(taps) + b_ref[...], 0.0)

    def kernel(x_ref, w1_ref, b1_ref, w2_ref, b2_ref, w3_ref, b3_ref,
               gfc_ref, bfc_ref, out_ref,
               p1buf, c2pad, p2buf, c3pad, p3buf):
        # TODO(synk): nn.Dropout(p=0.1) is an inference-mode identity here.

        # Refresh only the pad rows of the persistent scratch buffers; the
        # interiors are fully rewritten for every batch row below.  (Not gated
        # on program_id==0 so it stays correct when the batch axis is sharded
        # across TensorCores.)
        ninf = jnp.full((PPAD, F), -jnp.inf, jnp.float32)
        zero = jnp.zeros((CPAD, F), jnp.float32)
        for buf, L in ((p1buf, L0), (p2buf, L1), (p3buf, L2)):
            buf[0:PPAD, :] = ninf
            buf[pl.ds(PPAD + L, PPAD), :] = ninf
        for buf, L in ((c2pad, L1), (c3pad, L2)):
            buf[0:CPAD, :] = zero
            buf[pl.ds(CPAD + L, CPAD), :] = zero

        @pl.loop(0, BT)
        def _batch(bb):
            # ---- stage 1: conv1 + relu1 -> pool1 ----
            conv1_to_pool(x_ref, bb, w1_ref, b1_ref, p1buf)
            c2pad[pl.ds(CPAD, L1), :] = _maxpool(p1buf, L1)
            # ---- stage 2: conv2 + relu2 -> pool2 ----
            conv_fused_to_pool(c2pad, w2_ref, b2_ref, L1, p2buf)
            c3pad[pl.ds(CPAD, L2), :] = _maxpool(p2buf, L2)
            # ---- stage 3: conv3 + relu3 -> pool3 ----
            conv_fused_to_pool(c3pad, w3_ref, b3_ref, L2, p3buf)
            h3p = _maxpool(p3buf, L3)                          # (L3, F)
            # ---- flatten + fc: one matmul + diagonal-block sum ----
            yf = jnp.dot(h3p, gfc_ref[...], preferred_element_type=jnp.float32)
            parts = [yf[t:t + 1, t * CP:(t + 1) * CP] for t in range(L3)]
            out_ref[bb] = (_tree_sum(parts) + bfc_ref[...]).astype(out_ref.dtype)

    return kernel, (L1, L2, L3)


def burst_awf_forward(x_ncl, params, block_batch=8):
    B, C_in, L0 = x_ncl.shape
    w1, b1, w2, b2, w3, b3, wfc, bfc = params
    classes = wfc.shape[0]
    CP = _pad_classes(classes)
    BT = max(1, min(block_batch, B))
    B_pad = ((B + BT - 1) // BT) * BT

    kernel, (L1, L2, L3) = _make_kernel(L0, C_in, BT, CP)
    assert wfc.shape[1] == F * L3, "fc weight inconsistent with pooled length"

    # ---- host-side layout prep (trivial XLA ops) ----
    x_blc = jnp.transpose(x_ncl, (0, 2, 1)).astype(jnp.float32)       # (B, L, C)
    x_blc = jnp.pad(x_blc, ((0, B_pad - B), (CPAD, CPAD), (0, 0)))    # batch + conv pad
    # stage-1 im2col: column index = k*C_in + c
    x_i2c = jnp.concatenate([x_blc[:, k:k + L0, :] for k in range(K)], axis=-1)
    w1cat = jnp.transpose(w1, (2, 1, 0)).reshape(K * C_in, F)         # [k*C_in+c, f]
    w2cat = jnp.transpose(w2, (1, 2, 0)).reshape(F, K * F)            # [c_in, k*F+f]
    w3cat = jnp.transpose(w3, (1, 2, 0)).reshape(F, K * F)
    # fc weight: channel-major flatten (index f*L3 + t) -> [f, t*CP + c] (classes padded)
    gfc = jnp.transpose(wfc.reshape(classes, F, L3), (1, 2, 0))       # (F, L3, classes)
    gfc = jnp.pad(gfc, ((0, 0), (0, 0), (0, CP - classes))).reshape(F, L3 * CP)
    bfcp = jnp.pad(bfc, (0, CP - classes)).reshape(1, CP)
    b1r, b2r, b3r = b1.reshape(1, F), b2.reshape(1, F), b3.reshape(1, F)

    out = pl.pallas_call(
        kernel,
        out_shape=jax.ShapeDtypeStruct((B_pad, 1, CP), jnp.float32),
        grid=(B_pad // BT,),
        in_specs=[
            pl.BlockSpec((BT, L0, K * C_in), lambda b: (b, 0, 0)),    # x (im2col)
            pl.BlockSpec((K * C_in, F), lambda b: (0, 0)),            # w1cat
            pl.BlockSpec((1, F), lambda b: (0, 0)),                   # b1
            pl.BlockSpec((F, K * F), lambda b: (0, 0)),               # w2cat
            pl.BlockSpec((1, F), lambda b: (0, 0)),                   # b2
            pl.BlockSpec((F, K * F), lambda b: (0, 0)),               # w3cat
            pl.BlockSpec((1, F), lambda b: (0, 0)),                   # b3
            pl.BlockSpec((F, L3 * CP), lambda b: (0, 0)),             # gfc
            pl.BlockSpec((1, CP), lambda b: (0, 0)),                  # bfc (padded)
        ],
        out_specs=pl.BlockSpec((BT, 1, CP), lambda b: (b, 0, 0)),
        scratch_shapes=[
            pltpu.VMEM((L0 + 2 * PPAD, F), jnp.float32),   # pool1 buffer (-inf pad rows)
            pltpu.VMEM((L1 + 2 * CPAD, F), jnp.float32),   # conv2 input (zero pad rows)
            pltpu.VMEM((L1 + 2 * PPAD, F), jnp.float32),   # pool2 buffer
            pltpu.VMEM((L2 + 2 * CPAD, F), jnp.float32),   # conv3 input
            pltpu.VMEM((L2 + 2 * PPAD, F), jnp.float32),   # pool3 buffer
        ],
        compiler_params=pltpu.CompilerParams(
            dimension_semantics=("parallel",),
            vmem_limit_bytes=32 * 1024 * 1024,
        ),
    )(x_i2c, w1cat, b1r, w2cat, b2r, w3cat, b3r, gfc, bfcp)
    return out[:B, 0, :classes]


def init_params(key, C_in, classes, L3):
    """Deterministic PyTorch-style uniform(-1/sqrt(fan_in), 1/sqrt(fan_in)) init."""
    ks = jax.random.split(key, 8)

    def u(k, shape, fan_in):
        bound = 1.0 / (fan_in ** 0.5)
        return jax.random.uniform(k, shape, jnp.float32, -bound, bound)

    w1 = u(ks[0], (F, C_in, K), C_in * K); b1 = u(ks[1], (F,), C_in * K)
    w2 = u(ks[2], (F, F, K), F * K);       b2 = u(ks[3], (F,), F * K)
    w3 = u(ks[4], (F, F, K), F * K);       b3 = u(ks[5], (F,), F * K)
    wfc = u(ks[6], (classes, F * L3), F * L3)
    bfc = u(ks[7], (classes,), F * L3)
    return (w1, b1, w2, b2, w3, b3, wfc, bfc)


def forward_ref(x_ncl, params):
    """Pure-JAX (XLA) reference reproducing the PyTorch forward (eval mode)."""
    w1, b1, w2, b2, w3, b3, wfc, bfc = params

    def conv_relu(x, w, b):
        y = lax.conv_general_dilated(x, w, (1,), [(CPAD, CPAD)],
                                     dimension_numbers=('NCH', 'OIH', 'NCH'))
        return jax.nn.relu(y + b[None, :, None])

    def pool(x):
        return lax.reduce_window(x, -jnp.inf, lax.max, (1, 1, P), (1, 1, P),
                                 [(0, 0), (0, 0), (PPAD, PPAD)])

    h = pool(conv_relu(x_ncl, w1, b1))
    h = pool(conv_relu(h, w2, b2))
    h = pool(conv_relu(h, w3, b3))
    flat = h.reshape(h.shape[0], -1)
    return flat @ wfc.T + bfc[None, :]


if __name__ == "__main__":
    # nn.Linear(32*13, classes) hard-codes the pooled length to 13, which
    # forces the input length into [748, 811]; we use L0 = 750 -> 188 -> 48 -> 13.
    B, C_in, L0, classes = 2, 4, 750, 10
    L3 = ((L0 // P + 1) // P + 1) // P + 1
    assert L3 == 13, "length must reduce to 13 to match nn.Linear(32*13, classes)"

    key = jax.random.PRNGKey(0)
    kx, kp = jax.random.split(key)
    x = jax.random.normal(kx, (B, C_in, L0), jnp.float32)   # PyTorch NCL layout
    params = init_params(kp, C_in, classes, L3)

    out = burst_awf_forward(x, params)
    out = jax.block_until_ready(out)

    ref = forward_ref(x, params)
    assert out.shape == (B, classes)
    max_diff = float(jnp.max(jnp.abs(out - ref)))
    assert max_diff < 2e-3, f"mismatch vs reference, max abs diff = {max_diff}"
    print("KERNEL_OK")
</pallas_src>

<mosaic_0001>
module attributes {stable_mosaic.version = 11 : i64} {
  func.func @kernel(%arg0: i32, %arg1: memref<2x750x20xf32, #tpu.memory_space<vmem>>, %arg2: memref<20x32xf32, #tpu.memory_space<vmem>>, %arg3: memref<1x32xf32, #tpu.memory_space<vmem>>, %arg4: memref<32x160xf32, #tpu.memory_space<vmem>>, %arg5: memref<1x32xf32, #tpu.memory_space<vmem>>, %arg6: memref<32x160xf32, #tpu.memory_space<vmem>>, %arg7: memref<1x32xf32, #tpu.memory_space<vmem>>, %arg8: memref<32x208xf32, #tpu.memory_space<vmem>>, %arg9: memref<1x16xf32, #tpu.memory_space<vmem>>, %arg10: memref<2x1x16xf32, #tpu.memory_space<vmem>>, %arg11: memref<754x32xf32, #tpu.memory_space<vmem>>, %arg12: memref<192x32xf32, #tpu.memory_space<vmem>>, %arg13: memref<192x32xf32, #tpu.memory_space<vmem>>, %arg14: memref<52x32xf32, #tpu.memory_space<vmem>>, %arg15: memref<52x32xf32, #tpu.memory_space<vmem>>) attributes {dimension_semantics = [#tpu.dimension_semantics<parallel>], iteration_bounds = array<i64: 1>, scalar_prefetch = 0 : i64, scratch_operands = 5 : i64, tpu.core_type = #tpu.core_type<tc>, window_params = [{transform_indices = @transform_0, window_bounds = array<i64: 2, 750, 20>}, {pipeline_mode = #tpu.pipeline_mode<synchronous>, transform_indices = @transform_1, window_bounds = array<i64: 20, 32>}, {pipeline_mode = #tpu.pipeline_mode<synchronous>, transform_indices = @transform_2, window_bounds = array<i64: 1, 32>}, {pipeline_mode = #tpu.pipeline_mode<synchronous>, transform_indices = @transform_3, window_bounds = array<i64: 32, 160>}, {pipeline_mode = #tpu.pipeline_mode<synchronous>, transform_indices = @transform_4, window_bounds = array<i64: 1, 32>}, {pipeline_mode = #tpu.pipeline_mode<synchronous>, transform_indices = @transform_5, window_bounds = array<i64: 32, 160>}, {pipeline_mode = #tpu.pipeline_mode<synchronous>, transform_indices = @transform_6, window_bounds = array<i64: 1, 32>}, {pipeline_mode = #tpu.pipeline_mode<synchronous>, transform_indices = @transform_7, window_bounds = array<i64: 32, 208>}, {pipeline_mode = #tpu.pipeline_mode<synchronous>, transform_indices = @transform_8, window_bounds = array<i64: 1, 16>}, {transform_indices = @transform_9, window_bounds = array<i64: 2, 1, 16>}]} {
    %cst = arith.constant 0xFF800000 : f32
    %0 = vector.broadcast %cst : f32 to vector<2x32xf32>
    %cst_0 = arith.constant 0.000000e+00 : f32
    %1 = vector.broadcast %cst_0 : f32 to vector<2x32xf32>
    %c0 = arith.constant 0 : index
    %c0_1 = arith.constant 0 : index
    %2 = vector.load %arg11[%c0, %c0_1] : memref<754x32xf32, #tpu.memory_space<vmem>>, vector<2x32xf32>
    tpu.vector_store %arg11[%c0, %c0_1], %0 {strides = array<i32>} : memref<754x32xf32, #tpu.memory_space<vmem>>, vector<2x32xf32>,
    %c752 = arith.constant 752 : index
    %c0_2 = arith.constant 0 : index
    %3 = vector.load %arg11[%c752, %c0_2] : memref<754x32xf32, #tpu.memory_space<vmem>>, vector<2x32xf32>
    tpu.vector_store %arg11[%c752, %c0_2], %0 {strides = array<i32>} : memref<754x32xf32, #tpu.memory_space<vmem>>, vector<2x32xf32>,
    %c0_3 = arith.constant 0 : index
    %c0_4 = arith.constant 0 : index
    %4 = vector.load %arg13[%c0_3, %c0_4] : memref<192x32xf32, #tpu.memory_space<vmem>>, vector<2x32xf32>
    tpu.vector_store %arg13[%c0_3, %c0_4], %0 {strides = array<i32>} : memref<192x32xf32, #tpu.memory_space<vmem>>, vector<2x32xf32>,
    %c190 = arith.constant 190 : index
    %c0_5 = arith.constant 0 : index
    %5 = vector.load %arg13[%c190, %c0_5] : memref<192x32xf32, #tpu.memory_space<vmem>>, vector<2x32xf32>
    tpu.vector_store %arg13[%c190, %c0_5], %0 {strides = array<i32>} : memref<192x32xf32, #tpu.memory_space<vmem>>, vector<2x32xf32>,
    %c0_6 = arith.constant 0 : index
    %c0_7 = arith.constant 0 : index
    %6 = vector.load %arg15[%c0_6, %c0_7] : memref<52x32xf32, #tpu.memory_space<vmem>>, vector<2x32xf32>
    tpu.vector_store %arg15[%c0_6, %c0_7], %0 {strides = array<i32>} : memref<52x32xf32, #tpu.memory_space<vmem>>, vector<2x32xf32>,
    %c50 = arith.constant 50 : index
    %c0_8 = arith.constant 0 : index
    %7 = vector.load %arg15[%c50, %c0_8] : memref<52x32xf32, #tpu.memory_space<vmem>>, vector<2x32xf32>
    tpu.vector_store %arg15[%c50, %c0_8], %0 {strides = array<i32>} : memref<52x32xf32, #tpu.memory_space<vmem>>, vector<2x32xf32>,
    %c0_9 = arith.constant 0 : index
    %c0_10 = arith.constant 0 : index
    %8 = vector.load %arg12[%c0_9, %c0_10] : memref<192x32xf32, #tpu.memory_space<vmem>>, vector<2x32xf32>
    tpu.vector_store %arg12[%c0_9, %c0_10], %1 {strides = array<i32>} : memref<192x32xf32, #tpu.memory_space<vmem>>, vector<2x32xf32>,
    %c190_11 = arith.constant 190 : index
    %c0_12 = arith.constant 0 : index
    %9 = vector.load %arg12[%c190_11, %c0_12] : memref<192x32xf32, #tpu.memory_space<vmem>>, vector<2x32xf32>
    tpu.vector_store %arg12[%c190_11, %c0_12], %1 {strides = array<i32>} : memref<192x32xf32, #tpu.memory_space<vmem>>, vector<2x32xf32>,
    %c0_13 = arith.constant 0 : index
    %c0_14 = arith.constant 0 : index
    %10 = vector.load %arg14[%c0_13, %c0_14] : memref<52x32xf32, #tpu.memory_space<vmem>>, vector<2x32xf32>
    tpu.vector_store %arg14[%c0_13, %c0_14], %1 {strides = array<i32>} : memref<52x32xf32, #tpu.memory_space<vmem>>, vector<2x32xf32>,
    %c50_15 = arith.constant 50 : index
    %c0_16 = arith.constant 0 : index
    %11 = vector.load %arg14[%c50_15, %c0_16] : memref<52x32xf32, #tpu.memory_space<vmem>>, vector<2x32xf32>
    tpu.vector_store %arg14[%c50_15, %c0_16], %1 {strides = array<i32>} : memref<52x32xf32, #tpu.memory_space<vmem>>, vector<2x32xf32>,
    %c0_i32 = arith.constant 0 : i32
    %c2_i32 = arith.constant 2 : i32
    %12 = arith.addi %c0_i32, %c2_i32 : i32
    %c1_i32 = arith.constant 1 : i32
    scf.for %arg16 = %c0_i32 to %12 step %c1_i32  : i32 {
      %c1_i32_18 = arith.constant 1 : i32
      %13 = arith.muli %arg16, %c1_i32_18 : i32
      %c0_i32_19 = arith.constant 0 : i32
      %14 = arith.addi %c0_i32_19, %13 : i32
      %c0_20 = arith.constant 0 : index
      %c0_21 = arith.constant 0 : index
      %15 = vector.load %arg3[%c0_20, %c0_21] : memref<1x32xf32, #tpu.memory_space<vmem>>, vector<1x32xf32>
      %16 = arith.index_cast %14 : i32 to index
      %c0_22 = arith.constant 0 : index
      %c0_23 = arith.constant 0 : index
      %17 = vector.load %arg1[%16, %c0_22, %c0_23] : memref<2x750x20xf32, #tpu.memory_space<vmem>>, vector<1x128x20xf32>
      %18 = vector.shape_cast %17 : vector<1x128x20xf32> to vector<128x20xf32>
      %c0_24 = arith.constant 0 : index
      %c0_25 = arith.constant 0 : index
      %19 = vector.load %arg2[%c0_24, %c0_25] : memref<20x32xf32, #tpu.memory_space<vmem>>, vector<20x32xf32>
      %cst_26 = arith.constant dense<0.000000e+00> : vector<128x32xf32>
      %20 = tpu.matmul %18, %19, %cst_26 {dimension_numbers = #tpu.dot_dimension_numbers<[1], [0], [0], [1], [0, 0, 1, 1], [], []>} : vector<128x20xf32>, vector<20x32xf32>, vector<128x32xf32> -> vector<128x32xf32>
      %21 = vector.broadcast %15 : vector<1x32xf32> to vector<128x32xf32>
      %22 = arith.addf %20, %21 : vector<128x32xf32>
      %cst_27 = arith.constant 0.000000e+00 : f32
      %23 = vector.broadcast %cst_27 : f32 to vector<128x32xf32>
      %24 = arith.maximumf %22, %23 : vector<128x32xf32>
      %c2 = arith.constant 2 : index
      %c0_28 = arith.constant 0 : index
      %25 = vector.load %arg11[%c2, %c0_28] : memref<754x32xf32, #tpu.memory_space<vmem>>, vector<128x32xf32>
      tpu.vector_store %arg11[%c2, %c0_28], %24 {strides = array<i32>} : memref<754x32xf32, #tpu.memory_space<vmem>>, vector<128x32xf32>,
      %26 = arith.index_cast %14 : i32 to index
      %c128 = arith.constant 128 : index
      %c0_29 = arith.constant 0 : index
      %27 = vector.load %arg1[%26, %c128, %c0_29] : memref<2x750x20xf32, #tpu.memory_space<vmem>>, vector<1x128x20xf32>
      %28 = vector.shape_cast %27 : vector<1x128x20xf32> to vector<128x20xf32>
      %c0_30 = arith.constant 0 : index
      %c0_31 = arith.constant 0 : index
      %29 = vector.load %arg2[%c0_30, %c0_31] : memref<20x32xf32, #tpu.memory_space<vmem>>, vector<20x32xf32>
      %cst_32 = arith.constant dense<0.000000e+00> : vector<128x32xf32>
      %30 = tpu.matmul %28, %29, %cst_32 {dimension_numbers = #tpu.dot_dimension_numbers<[1], [0], [0], [1], [0, 0, 1, 1], [], []>} : vector<128x20xf32>, vector<20x32xf32>, vector<128x32xf32> -> vector<128x32xf32>
      %31 = vector.broadcast %15 : vector<1x32xf32> to vector<128x32xf32>
      %32 = arith.addf %30, %31 : vector<128x32xf32>
      %cst_33 = arith.constant 0.000000e+00 : f32
      %33 = vector.broadcast %cst_33 : f32 to vector<128x32xf32>
      %34 = arith.maximumf %32, %33 : vector<128x32xf32>
      %c130 = arith.constant 130 : index
      %c0_34 = arith.constant 0 : index
      %35 = vector.load %arg11[%c130, %c0_34] : memref<754x32xf32, #tpu.memory_space<vmem>>, vector<128x32xf32>
      tpu.vector_store %arg11[%c130, %c0_34], %34 {strides = array<i32>} : memref<754x32xf32, #tpu.memory_space<vmem>>, vector<128x32xf32>,
      %36 = arith.index_cast %14 : i32 to index
      %c256 = arith.constant 256 : index
      %c0_35 = arith.constant 0 : index
      %37 = vector.load %arg1[%36, %c256, %c0_35] : memref<2x750x20xf32, #tpu.memory_space<vmem>>, vector<1x128x20xf32>
      %38 = vector.shape_cast %37 : vector<1x128x20xf32> to vector<128x20xf32>
      %c0_36 = arith.constant 0 : index
      %c0_37 = arith.constant 0 : index
      %39 = vector.load %arg2[%c0_36, %c0_37] : memref<20x32xf32, #tpu.memory_space<vmem>>, vector<20x32xf32>
      %cst_38 = arith.constant dense<0.000000e+00> : vector<128x32xf32>
      %40 = tpu.matmul %38, %39, %cst_38 {dimension_numbers = #tpu.dot_dimension_numbers<[1], [0], [0], [1], [0, 0, 1, 1], [], []>} : vector<128x20xf32>, vector<20x32xf32>, vector<128x32xf32> -> vector<128x32xf32>
      %41 = vector.broadcast %15 : vector<1x32xf32> to vector<128x32xf32>
      %42 = arith.addf %40, %41 : vector<128x32xf32>
      %cst_39 = arith.constant 0.000000e+00 : f32
      %43 = vector.broadcast %cst_39 : f32 to vector<128x32xf32>
      %44 = arith.maximumf %42, %43 : vector<128x32xf32>
      %c258 = arith.constant 258 : index
      %c0_40 = arith.constant 0 : index
      %45 = vector.load %arg11[%c258, %c0_40] : memref<754x32xf32, #tpu.memory_space<vmem>>, vector<128x32xf32>
      tpu.vector_store %arg11[%c258, %c0_40], %44 {strides = array<i32>} : memref<754x32xf32, #tpu.memory_space<vmem>>, vector<128x32xf32>,
      %46 = arith.index_cast %14 : i32 to index
      %c384 = arith.constant 384 : index
      %c0_41 = arith.constant 0 : index
      %47 = vector.load %arg1[%46, %c384, %c0_41] : memref<2x750x20xf32, #tpu.memory_space<vmem>>, vector<1x128x20xf32>
      %48 = vector.shape_cast %47 : vector<1x128x20xf32> to vector<128x20xf32>
      %c0_42 = arith.constant 0 : index
      %c0_43 = arith.constant 0 : index
      %49 = vector.load %arg2[%c0_42, %c0_43] : memref<20x32xf32, #tpu.memory_space<vmem>>, vector<20x32xf32>
      %cst_44 = arith.constant dense<0.000000e+00> : vector<128x32xf32>
      %50 = tpu.matmul %48, %49, %cst_44 {dimension_numbers = #tpu.dot_dimension_numbers<[1], [0], [0], [1], [0, 0, 1, 1], [], []>} : vector<128x20xf32>, vector<20x32xf32>, vector<128x32xf32> -> vector<128x32xf32>
      %51 = vector.broadcast %15 : vector<1x32xf32> to vector<128x32xf32>
      %52 = arith.addf %50, %51 : vector<128x32xf32>
      %cst_45 = arith.constant 0.000000e+00 : f32
      %53 = vector.broadcast %cst_45 : f32 to vector<128x32xf32>
      %54 = arith.maximumf %52, %53 : vector<128x32xf32>
      %c386 = arith.constant 386 : index
      %c0_46 = arith.constant 0 : index
      %55 = vector.load %arg11[%c386, %c0_46] : memref<754x32xf32, #tpu.memory_space<vmem>>, vector<128x32xf32>
      tpu.vector_store %arg11[%c386, %c0_46], %54 {strides = array<i32>} : memref<754x32xf32, #tpu.memory_space<vmem>>, vector<128x32xf32>,
      %56 = arith.index_cast %14 : i32 to index
      %c512 = arith.constant 512 : index
      %c0_47 = arith.constant 0 : index
      %57 = vector.load %arg1[%56, %c512, %c0_47] : memref<2x750x20xf32, #tpu.memory_space<vmem>>, vector<1x128x20xf32>
      %58 = vector.shape_cast %57 : vector<1x128x20xf32> to vector<128x20xf32>
      %c0_48 = arith.constant 0 : index
      %c0_49 = arith.constant 0 : index
      %59 = vector.load %arg2[%c0_48, %c0_49] : memref<20x32xf32, #tpu.memory_space<vmem>>, vector<20x32xf32>
      %cst_50 = arith.constant dense<0.000000e+00> : vector<128x32xf32>
      %60 = tpu.matmul %58, %59, %cst_50 {dimension_numbers = #tpu.dot_dimension_numbers<[1], [0], [0], [1], [0, 0, 1, 1], [], []>} : vector<128x20xf32>, vector<20x32xf32>, vector<128x32xf32> -> vector<128x32xf32>
      %61 = vector.broadcast %15 : vector<1x32xf32> to vector<128x32xf32>
      %62 = arith.addf %60, %61 : vector<128x32xf32>
      %cst_51 = arith.constant 0.000000e+00 : f32
      %63 = vector.broadcast %cst_51 : f32 to vector<128x32xf32>
      %64 = arith.maximumf %62, %63 : vector<128x32xf32>
      %c514 = arith.constant 514 : index
      %c0_52 = arith.constant 0 : index
      %65 = vector.load %arg11[%c514, %c0_52] : memref<754x32xf32, #tpu.memory_space<vmem>>, vector<128x32xf32>
      tpu.vector_store %arg11[%c514, %c0_52], %64 {strides = array<i32>} : memref<754x32xf32, #tpu.memory_space<vmem>>, vector<128x32xf32>,
      %66 = arith.index_cast %14 : i32 to index
      %c640 = arith.constant 640 : index
      %c0_53 = arith.constant 0 : index
      %67 = vector.load %arg1[%66, %c640, %c0_53] : memref<2x750x20xf32, #tpu.memory_space<vmem>>, vector<1x110x20xf32>
      %68 = vector.shape_cast %67 : vector<1x110x20xf32> to vector<110x20xf32>
      %c0_54 = arith.constant 0 : index
      %c0_55 = arith.constant 0 : index
      %69 = vector.load %arg2[%c0_54, %c0_55] : memref<20x32xf32, #tpu.memory_space<vmem>>, vector<20x32xf32>
      %cst_56 = arith.constant dense<0.000000e+00> : vector<110x32xf32>
      %70 = tpu.matmul %68, %69, %cst_56 {dimension_numbers = #tpu.dot_dimension_numbers<[1], [0], [0], [1], [0, 0, 1, 1], [], []>} : vector<110x20xf32>, vector<20x32xf32>, vector<110x32xf32> -> vector<110x32xf32>
      %71 = vector.broadcast %15 : vector<1x32xf32> to vector<110x32xf32>
      %72 = arith.addf %70, %71 : vector<110x32xf32>
      %cst_57 = arith.constant 0.000000e+00 : f32
      %73 = vector.broadcast %cst_57 : f32 to vector<110x32xf32>
      %74 = arith.maximumf %72, %73 : vector<110x32xf32>
      %c642 = arith.constant 642 : index
      %c0_58 = arith.constant 0 : index
      %75 = vector.load %arg11[%c642, %c0_58] : memref<754x32xf32, #tpu.memory_space<vmem>>, vector<110x32xf32>
      tpu.vector_store %arg11[%c642, %c0_58], %74 {strides = array<i32>} : memref<754x32xf32, #tpu.memory_space<vmem>>, vector<110x32xf32>,
      %c0_59 = arith.constant 0 : index
      %c0_60 = arith.constant 0 : index
      %76 = tpu.strided_load %arg11[%c0_59, %c0_60] {strides = array<i32: 4, 1>} : memref<754x32xf32, #tpu.memory_space<vmem>>, vector<188x32xf32>
      %c1 = arith.constant 1 : index
      %c0_61 = arith.constant 0 : index
      %77 = tpu.strided_load %arg11[%c1, %c0_61] {strides = array<i32: 4, 1>} : memref<754x32xf32, #tpu.memory_space<vmem>>, vector<188x32xf32>
      %c2_62 = arith.constant 2 : index
      %c0_63 = arith.constant 0 : index
      %78 = tpu.strided_load %arg11[%c2_62, %c0_63] {strides = array<i32: 4, 1>} : memref<754x32xf32, #tpu.memory_space<vmem>>, vector<188x32xf32>
      %c3 = arith.constant 3 : index
      %c0_64 = arith.constant 0 : index
      %79 = tpu.strided_load %arg11[%c3, %c0_64] {strides = array<i32: 4, 1>} : memref<754x32xf32, #tpu.memory_space<vmem>>, vector<188x32xf32>
      %80 = arith.maximumf %76, %77 : vector<188x32xf32>
      %81 = arith.maximumf %78, %79 : vector<188x32xf32>
      %82 = arith.maximumf %80, %81 : vector<188x32xf32>
      %c2_65 = arith.constant 2 : index
      %c0_66 = arith.constant 0 : index
      %83 = vector.load %arg12[%c2_65, %c0_66] : memref<192x32xf32, #tpu.memory_space<vmem>>, vector<188x32xf32>
      tpu.vector_store %arg12[%c2_65, %c0_66], %82 {strides = array<i32>} : memref<192x32xf32, #tpu.memory_space<vmem>>, vector<188x32xf32>,
      %c0_67 = arith.constant 0 : index
      %c0_68 = arith.constant 0 : index
      %84 = vector.load %arg12[%c0_67, %c0_68] : memref<192x32xf32, #tpu.memory_space<vmem>>, vector<192x32xf32>
      %c0_69 = arith.constant 0 : index
      %c0_70 = arith.constant 0 : index
      %85 = vector.load %arg4[%c0_69, %c0_70] : memref<32x160xf32, #tpu.memory_space<vmem>>, vector<32x160xf32>
      %cst_71 = arith.constant dense<0.000000e+00> : vector<192x160xf32>
      %86 = tpu.matmul %84, %85, %cst_71 {dimension_numbers = #tpu.dot_dimension_numbers<[1], [0], [0], [1], [0, 0, 1, 1], [], []>} : vector<192x32xf32>, vector<32x160xf32>, vector<192x160xf32> -> vector<192x160xf32>
      %87 = vector.extract_strided_slice %86 {offsets = [0, 0], sizes = [188, 32], strides = [1, 1]} : vector<192x160xf32> to vector<188x32xf32>
      %88 = vector.extract_strided_slice %86 {offsets = [1, 32], sizes = [188, 32], strides = [1, 1]} : vector<192x160xf32> to vector<188x32xf32>
      %89 = vector.extract_strided_slice %86 {offsets = [2, 64], sizes = [188, 32], strides = [1, 1]} : vector<192x160xf32> to vector<188x32xf32>
      %90 = vector.extract_strided_slice %86 {offsets = [3, 96], sizes = [188, 32], strides = [1, 1]} : vector<192x160xf32> to vector<188x32xf32>
      %91 = vector.extract_strided_slice %86 {offsets = [4, 128], sizes = [188, 32], strides = [1, 1]} : vector<192x160xf32> to vector<188x32xf32>
      %92 = arith.addf %87, %88 : vector<188x32xf32>
      %93 = arith.addf %89, %90 : vector<188x32xf32>
      %94 = arith.addf %92, %93 : vector<188x32xf32>
      %95 = arith.addf %94, %91 : vector<188x32xf32>
      %c0_72 = arith.constant 0 : index
      %c0_73 = arith.constant 0 : index
      %96 = vector.load %arg5[%c0_72, %c0_73] : memref<1x32xf32, #tpu.memory_space<vmem>>, vector<1x32xf32>
      %97 = vector.broadcast %96 : vector<1x32xf32> to vector<188x32xf32>
      %98 = arith.addf %95, %97 : vector<188x32xf32>
      %cst_74 = arith.constant 0.000000e+00 : f32
      %99 = vector.broadcast %cst_74 : f32 to vector<188x32xf32>
      %100 = arith.maximumf %98, %99 : vector<188x32xf32>
      %c2_75 = arith.constant 2 : index
      %c0_76 = arith.constant 0 : index
      %101 = vector.load %arg13[%c2_75, %c0_76] : memref<192x32xf32, #tpu.memory_space<vmem>>, vector<188x32xf32>
      tpu.vector_store %arg13[%c2_75, %c0_76], %100 {strides = array<i32>} : memref<192x32xf32, #tpu.memory_space<vmem>>, vector<188x32xf32>,
      %c0_77 = arith.constant 0 : index
      %c0_78 = arith.constant 0 : index
      %102 = tpu.strided_load %arg13[%c0_77, %c0_78] {strides = array<i32: 4, 1>} : memref<192x32xf32, #tpu.memory_space<vmem>>, vector<48x32xf32>
      %c1_79 = arith.constant 1 : index
      %c0_80 = arith.constant 0 : index
      %103 = tpu.strided_load %arg13[%c1_79, %c0_80] {strides = array<i32: 4, 1>} : memref<192x32xf32, #tpu.memory_space<vmem>>, vector<48x32xf32>
      %c2_81 = arith.constant 2 : index
      %c0_82 = arith.constant 0 : index
      %104 = tpu.strided_load %arg13[%c2_81, %c0_82] {strides = array<i32: 4, 1>} : memref<192x32xf32, #tpu.memory_space<vmem>>, vector<48x32xf32>
      %c3_83 = arith.constant 3 : index
      %c0_84 = arith.constant 0 : index
      %105 = tpu.strided_load %arg13[%c3_83, %c0_84] {strides = array<i32: 4, 1>} : memref<192x32xf32, #tpu.memory_space<vmem>>, vector<48x32xf32>
      %106 = arith.maximumf %102, %103 : vector<48x32xf32>
      %107 = arith.maximumf %104, %105 : vector<48x32xf32>
      %108 = arith.maximumf %106, %107 : vector<48x32xf32>
      %c2_85 = arith.constant 2 : index
      %c0_86 = arith.constant 0 : index
      %109 = vector.load %arg14[%c2_85, %c0_86] : memref<52x32xf32, #tpu.memory_space<vmem>>, vector<48x32xf32>
      tpu.vector_store %arg14[%c2_85, %c0_86], %108 {strides = array<i32>} : memref<52x32xf32, #tpu.memory_space<vmem>>, vector<48x32xf32>,
      %c0_87 = arith.constant 0 : index
      %c0_88 = arith.constant 0 : index
      %110 = vector.load %arg14[%c0_87, %c0_88] : memref<52x32xf32, #tpu.memory_space<vmem>>, vector<52x32xf32>
      %c0_89 = arith.constant 0 : index
      %c0_90 = arith.constant 0 : index
      %111 = vector.load %arg6[%c0_89, %c0_90] : memref<32x160xf32, #tpu.memory_space<vmem>>, vector<32x160xf32>
      %cst_91 = arith.constant dense<0.000000e+00> : vector<52x160xf32>
      %112 = tpu.matmul %110, %111, %cst_91 {dimension_numbers = #tpu.dot_dimension_numbers<[1], [0], [0], [1], [0, 0, 1, 1], [], []>} : vector<52x32xf32>, vector<32x160xf32>, vector<52x160xf32> -> vector<52x160xf32>
      %113 = vector.extract_strided_slice %112 {offsets = [0, 0], sizes = [48, 32], strides = [1, 1]} : vector<52x160xf32> to vector<48x32xf32>
      %114 = vector.extract_strided_slice %112 {offsets = [1, 32], sizes = [48, 32], strides = [1, 1]} : vector<52x160xf32> to vector<48x32xf32>
      %115 = vector.extract_strided_slice %112 {offsets = [2, 64], sizes = [48, 32], strides = [1, 1]} : vector<52x160xf32> to vector<48x32xf32>
      %116 = vector.extract_strided_slice %112 {offsets = [3, 96], sizes = [48, 32], strides = [1, 1]} : vector<52x160xf32> to vector<48x32xf32>
      %117 = vector.extract_strided_slice %112 {offsets = [4, 128], sizes = [48, 32], strides = [1, 1]} : vector<52x160xf32> to vector<48x32xf32>
      %118 = arith.addf %113, %114 : vector<48x32xf32>
      %119 = arith.addf %115, %116 : vector<48x32xf32>
      %120 = arith.addf %118, %119 : vector<48x32xf32>
      %121 = arith.addf %120, %117 : vector<48x32xf32>
      %c0_92 = arith.constant 0 : index
      %c0_93 = arith.constant 0 : index
      %122 = vector.load %arg7[%c0_92, %c0_93] : memref<1x32xf32, #tpu.memory_space<vmem>>, vector<1x32xf32>
      %123 = vector.broadcast %122 : vector<1x32xf32> to vector<48x32xf32>
      %124 = arith.addf %121, %123 : vector<48x32xf32>
      %cst_94 = arith.constant 0.000000e+00 : f32
      %125 = vector.broadcast %cst_94 : f32 to vector<48x32xf32>
      %126 = arith.maximumf %124, %125 : vector<48x32xf32>
      %c2_95 = arith.constant 2 : index
      %c0_96 = arith.constant 0 : index
      %127 = vector.load %arg15[%c2_95, %c0_96] : memref<52x32xf32, #tpu.memory_space<vmem>>, vector<48x32xf32>
      tpu.vector_store %arg15[%c2_95, %c0_96], %126 {strides = array<i32>} : memref<52x32xf32, #tpu.memory_space<vmem>>, vector<48x32xf32>,
      %c0_97 = arith.constant 0 : index
      %c0_98 = arith.constant 0 : index
      %128 = tpu.strided_load %arg15[%c0_97, %c0_98] {strides = array<i32: 4, 1>} : memref<52x32xf32, #tpu.memory_space<vmem>>, vector<13x32xf32>
      %c1_99 = arith.constant 1 : index
      %c0_100 = arith.constant 0 : index
      %129 = tpu.strided_load %arg15[%c1_99, %c0_100] {strides = array<i32: 4, 1>} : memref<52x32xf32, #tpu.memory_space<vmem>>, vector<13x32xf32>
      %c2_101 = arith.constant 2 : index
      %c0_102 = arith.constant 0 : index
      %130 = tpu.strided_load %arg15[%c2_101, %c0_102] {strides = array<i32: 4, 1>} : memref<52x32xf32, #tpu.memory_space<vmem>>, vector<13x32xf32>
      %c3_103 = arith.constant 3 : index
      %c0_104 = arith.constant 0 : index
      %131 = tpu.strided_load %arg15[%c3_103, %c0_104] {strides = array<i32: 4, 1>} : memref<52x32xf32, #tpu.memory_space<vmem>>, vector<13x32xf32>
      %132 = arith.maximumf %128, %129 : vector<13x32xf32>
      %133 = arith.maximumf %130, %131 : vector<13x32xf32>
      %134 = arith.maximumf %132, %133 : vector<13x32xf32>
      %c0_105 = arith.constant 0 : index
      %c0_106 = arith.constant 0 : index
      %135 = vector.load %arg8[%c0_105, %c0_106] : memref<32x208xf32, #tpu.memory_space<vmem>>, vector<32x208xf32>
      %cst_107 = arith.constant dense<0.000000e+00> : vector<13x208xf32>
      %136 = tpu.matmul %134, %135, %cst_107 {dimension_numbers = #tpu.dot_dimension_numbers<[1], [0], [0], [1], [0, 0, 1, 1], [], []>} : vector<13x32xf32>, vector<32x208xf32>, vector<13x208xf32> -> vector<13x208xf32>
      %137 = vector.extract_strided_slice %136 {offsets = [0, 0], sizes = [1, 16], strides = [1, 1]} : vector<13x208xf32> to vector<1x16xf32>
      %138 = vector.extract_strided_slice %136 {offsets = [1, 16], sizes = [1, 16], strides = [1, 1]} : vector<13x208xf32> to vector<1x16xf32>
      %139 = vector.extract_strided_slice %136 {offsets = [2, 32], sizes = [1, 16], strides = [1, 1]} : vector<13x208xf32> to vector<1x16xf32>
      %140 = vector.extract_strided_slice %136 {offsets = [3, 48], sizes = [1, 16], strides = [1, 1]} : vector<13x208xf32> to vector<1x16xf32>
      %141 = vector.extract_strided_slice %136 {offsets = [4, 64], sizes = [1, 16], strides = [1, 1]} : vector<13x208xf32> to vector<1x16xf32>
      %142 = vector.extract_strided_slice %136 {offsets = [5, 80], sizes = [1, 16], strides = [1, 1]} : vector<13x208xf32> to vector<1x16xf32>
      %143 = vector.extract_strided_slice %136 {offsets = [6, 96], sizes = [1, 16], strides = [1, 1]} : vector<13x208xf32> to vector<1x16xf32>
      %144 = vector.extract_strided_slice %136 {offsets = [7, 112], sizes = [1, 16], strides = [1, 1]} : vector<13x208xf32> to vector<1x16xf32>
      %145 = vector.extract_strided_slice %136 {offsets = [8, 128], sizes = [1, 16], strides = [1, 1]} : vector<13x208xf32> to vector<1x16xf32>
      %146 = vector.extract_strided_slice %136 {offsets = [9, 144], sizes = [1, 16], strides = [1, 1]} : vector<13x208xf32> to vector<1x16xf32>
      %147 = vector.extract_strided_slice %136 {offsets = [10, 160], sizes = [1, 16], strides = [1, 1]} : vector<13x208xf32> to vector<1x16xf32>
      %148 = vector.extract_strided_slice %136 {offsets = [11, 176], sizes = [1, 16], strides = [1, 1]} : vector<13x208xf32> to vector<1x16xf32>
      %149 = vector.extract_strided_slice %136 {offsets = [12, 192], sizes = [1, 16], strides = [1, 1]} : vector<13x208xf32> to vector<1x16xf32>
      %150 = arith.addf %137, %138 : vector<1x16xf32>
      %151 = arith.addf %139, %140 : vector<1x16xf32>
      %152 = arith.addf %141, %142 : vector<1x16xf32>
      %153 = arith.addf %143, %144 : vector<1x16xf32>
      %154 = arith.addf %145, %146 : vector<1x16xf32>
      %155 = arith.addf %147, %148 : vector<1x16xf32>
      %156 = arith.addf %150, %151 : vector<1x16xf32>
      %157 = arith.addf %152, %153 : vector<1x16xf32>
      %158 = arith.addf %154, %155 : vector<1x16xf32>
      %159 = arith.addf %156, %157 : vector<1x16xf32>
      %160 = arith.addf %158, %149 : vector<1x16xf32>
      %161 = arith.addf %159, %160 : vector<1x16xf32>
      %c0_108 = arith.constant 0 : index
      %c0_109 = arith.constant 0 : index
      %162 = vector.load %arg9[%c0_108, %c0_109] : memref<1x16xf32, #tpu.memory_space<vmem>>, vector<1x16xf32>
      %163 = arith.addf %161, %162 : vector<1x16xf32>
      %164 = arith.index_cast %14 : i32 to index
      %c0_110 = arith.constant 0 : index
      %c0_111 = arith.constant 0 : index
      %165 = vector.load %arg10[%164, %c0_110, %c0_111] : memref<2x1x16xf32, #tpu.memory_space<vmem>>, vector<1x1x16xf32>
      %166 = vector.shape_cast %165 : vector<1x1x16xf32> to vector<1x16xf32>
      %167 = vector.shape_cast %163 : vector<1x16xf32> to vector<1x1x16xf32>
      tpu.vector_store %arg10[%164, %c0_110, %c0_111], %167 {strides = array<i32>} : memref<2x1x16xf32, #tpu.memory_space<vmem>>, vector<1x1x16xf32>,
    }
    %c2_i32_17 = arith.constant 2 : i32
    return
  }
  func.func @transform_0(%arg0: i32) -> (i32, i32, i32) {
    %c0_i32 = arith.constant 0 : i32
    %c0_i32_0 = arith.constant 0 : i32
    %c0_i32_1 = arith.constant 0 : i32
    return %arg0, %c0_i32, %c0_i32_0 : i32, i32, i32
  }
  func.func @transform_1(%arg0: i32) -> (i32, i32) {
    %c0_i32 = arith.constant 0 : i32
    %c0_i32_0 = arith.constant 0 : i32
    %c0_i32_1 = arith.constant 0 : i32
    return %c0_i32, %c0_i32_0 : i32, i32
  }
  func.func @transform_2(%arg0: i32) -> (i32, i32) {
    %c0_i32 = arith.constant 0 : i32
    %c0_i32_0 = arith.constant 0 : i32
    %c0_i32_1 = arith.constant 0 : i32
    return %c0_i32, %c0_i32_0 : i32, i32
  }
  func.func @transform_3(%arg0: i32) -> (i32, i32) {
    %c0_i32 = arith.constant 0 : i32
    %c0_i32_0 = arith.constant 0 : i32
    %c0_i32_1 = arith.constant 0 : i32
    return %c0_i32, %c0_i32_0 : i32, i32
  }
  func.func @transform_4(%arg0: i32) -> (i32, i32) {
    %c0_i32 = arith.constant 0 : i32
    %c0_i32_0 = arith.constant 0 : i32
    %c0_i32_1 = arith.constant 0 : i32
    return %c0_i32, %c0_i32_0 : i32, i32
  }
  func.func @transform_5(%arg0: i32) -> (i32, i32) {
    %c0_i32 = arith.constant 0 : i32
    %c0_i32_0 = arith.constant 0 : i32
    %c0_i32_1 = arith.constant 0 : i32
    return %c0_i32, %c0_i32_0 : i32, i32
  }
  func.func @transform_6(%arg0: i32) -> (i32, i32) {
    %c0_i32 = arith.constant 0 : i32
    %c0_i32_0 = arith.constant 0 : i32
    %c0_i32_1 = arith.constant 0 : i32
    return %c0_i32, %c0_i32_0 : i32, i32
  }
  func.func @transform_7(%arg0: i32) -> (i32, i32) {
    %c0_i32 = arith.constant 0 : i32
    %c0_i32_0 = arith.constant 0 : i32
    %c0_i32_1 = arith.constant 0 : i32
    return %c0_i32, %c0_i32_0 : i32, i32
  }
  func.func @transform_8(%arg0: i32) -> (i32, i32) {
    %c0_i32 = arith.constant 0 : i32
    %c0_i32_0 = arith.constant 0 : i32
    %c0_i32_1 = arith.constant 0 : i32
    return %c0_i32, %c0_i32_0 : i32, i32
  }
  func.func @transform_9(%arg0: i32) -> (i32, i32, i32) {
    %c0_i32 = arith.constant 0 : i32
    %c0_i32_0 = arith.constant 0 : i32
    %c0_i32_1 = arith.constant 0 : i32
    return %arg0, %c0_i32, %c0_i32_0 : i32, i32, i32
  }
}

</mosaic_0001>

<bundles_post_ra>
// kernel: tpu_custom_call.1
= control target key start
LH: loop header
LB: loop body
LE: loop exit
PB: predicated region body
PF: predicated region fallthrough
CT: control target
= control target key end

     0   :  { %14 = vsyncpa [#allocation8], 0  ;;  %vm33_vm0 = vcmask 254976   ;;  %v3719_v0 = vmov -inf   ;;  %v3720_v1 = vmov 0.0   ;;  %s3778_s30 = smov 0   ;;  %s4917_s0 = inlined_call_operand.vmem [shape: f32[2,750,20], index: 0, kind: input, shape index: {}]   ;;  %s4918_s1 = inlined_call_operand.vmem [shape: f32[20,32], index: 1, kind: input, shape index: {}]   ;;  %s4919_s2 = inlined_call_operand.vmem [shape: f32[1,32], index: 2, kind: input, shape index: {}]   ;;  %s4920_s3 = inlined_call_operand.vmem [shape: f32[32,160], index: 3, kind: input, shape index: {}]   ;;  %s4921_s4 = inlined_call_operand.vmem [shape: f32[1,32], index: 4, kind: input, shape index: {}]   ;;  %s4922_s5 = inlined_call_operand.vmem [shape: f32[32,160], index: 5, kind: input, shape index: {}]   ;;  %s4923_s6 = inlined_call_operand.vmem [shape: f32[1,32], index: 6, kind: input, shape index: {}]   ;;  %s4924_s7 = inlined_call_operand.vmem [shape: f32[32,208], index: 7, kind: input, shape index: {}]   ;;  %s4925_s8 = inlined_call_operand.vmem [shape: f32[1,16], index: 8, kind: input, shape index: {}]   ;;  %s4926_s9 = inlined_call_operand.hbm [shape: f32[2,1,16], index: 9, kind: output, shape index: {}]  }
   0x1   :  { %34 = vst.msk [vmem:[#allocation2] sm:$0x3] %vm33_vm0, %v3719_v0  ;;  %36 = vst.msk [vmem:[#allocation4] sm:$0x3] %vm33_vm0, %v3719_v0 }
   0x2   :  { %37 = vst.msk [vmem:[#allocation4 + $0xbe] sm:$0x3] %vm33_vm0, %v3719_v0  ;;  %38 = vst.msk [vmem:[#allocation6] sm:$0x3] %vm33_vm0, %v3719_v0 }
   0x3   :  { %39 = vst.msk [vmem:[#allocation6 + $0x32] sm:$0x3] %vm33_vm0, %v3719_v0  ;;  %40 = vst.msk [vmem:[#allocation3] sm:$0x3] %vm33_vm0, %v3720_v1 }
   0x4   :  { %41 = vst.msk [vmem:[#allocation3 + $0xbe] sm:$0x3] %vm33_vm0, %v3720_v1  ;;  %42 = vst.msk [vmem:[#allocation5] sm:$0x3] %vm33_vm0, %v3720_v1 }
   0x5   :  { %43 = vst.msk [vmem:[#allocation5 + $0x32] sm:$0x3] %vm33_vm0, %v3720_v1 }
   0x6 LB: > { %v69_v2 = vld [vmem:[%s4918_s1] sm:$0xff]  ;;  %v70_v3 = vld [vmem:[%s4918_s1 + $0x8] sm:$0xff]  ;;  %v71_v5 = vld [vmem:[%s4918_s1 + $0x10] sm:$0xf]  ;;  %vm127_vm1 = vcmask 1043456   ;;  %s51_s16 = smul.u32 752, %s3717_s30  ;;  %s3717_s30 = sphi %s3778_s30, %s49_s30  }
   0x7   : > { %v3789_v4 = vpack.c.bf16 %v70_v3, %v69_v2  ;;  %v327_v6 = vld [vmem:[%s4918_s1 + $0x10] sm:$0xf]  ;;  %vm78_vm2 = vcmask 162816   ;;  %vm292_vm3 = vcmask 261120   ;;  %vm1521_vm4 = vcmask 259072   ;;  %s3722_s10 = smov 96  }
   0x8   : > { %s3804_s21 = scalar_lea.vmem %s4917_s0, %s51_s16  ;;  %v574_v12 = vld [vmem:[%s4918_s1 + $0x10] sm:$0xf]  ;;  %vm1809_vm5 = vcmask 257024   ;;  %vm2148_vm6 = vcmask 1046528   ;;  %vm2316_vm7 = vcmask 1045504   ;;  %s3723_s11 = smov 64  }
   0x9   : > { %3622 = vmatprep.subr.bf16.mxu0 %v3789_v4  ;;  %3626 = vmatprep.subr.bf16.mxu1 %v3789_v4  ;;  %v53_v7 = vld [vmem:[%s3804_s21] sm:$0xff]  ;;  %v54_v8 = vld [vmem:[%s3804_s21 + $0x8] sm:$0xff]  ;;  %v55_v10 = vld [vmem:[%s3804_s21 + $0x10] sm:$0xff]  ;;  %s3724_s12 = smov 112   ;;  %vm3170_vm8 = vcmask 122880  }
   0xa   : > { %3624 = vmatpush3.bf16.msra.mxu0 %v3789_v4  ;;  %3628 = vmatpush3.bf16.msra.mxu1 %v3789_v4  ;;  %v309_v9 = vld [vmem:[%s3804_s21 + $0x80] sm:$0xff]  ;;  %v310_v11 = vld [vmem:[%s3804_s21 + $0x88] sm:$0xff]  ;;  %v311_v13 = vld [vmem:[%s3804_s21 + $0x90] sm:$0xff] }
   0xb   : > { %3448 = vmatprep.subr.msk.mxu0 %vm127_vm1, %v71_v5  ;;  %3478 = vmatprep.subr.msk.mxu1 %vm127_vm1, %v327_v6  ;;  %v56_v14 = vld [vmem:[%s3804_s21 + $0x18] sm:$0xff]  ;;  %v57_v15 = vld [vmem:[%s3804_s21 + $0x20] sm:$0xff]  ;;  %v821_v18 = vld [vmem:[%s4918_s1 + $0x10] sm:$0xf] }
   0xc   : > { %3450 = vmatprep.mubr.msk.f32.mxu0 %vm78_vm2, %v53_v7  ;;  %3480 = vmatprep.mubr.msk.f32.mxu1 %vm78_vm2, %v309_v9  ;;  %v312_v16 = vld [vmem:[%s3804_s21 + $0x98] sm:$0xff]  ;;  %v313_v17 = vld [vmem:[%s3804_s21 + $0xa0] sm:$0xff]  ;;  %v58_v19 = vld [vmem:[%s3804_s21 + $0x28] sm:$0xff] }
   0xd   : > { %v59_v20 = vld [vmem:[%s3804_s21 + $0x30] sm:$0xff]  ;;  %v314_v21 = vld [vmem:[%s3804_s21 + $0xa8] sm:$0xff]  ;;  %v60_v23 = vld [vmem:[%s3804_s21 + $0x38] sm:$0xff] }
   0xe   : > { %3449 = vmatpush3.msk.msra.mxu0 %vm127_vm1, %v71_v5  ;;  %3479 = vmatpush3.msk.msra.mxu1 %vm127_vm1, %v327_v6  ;;  %v315_v22 = vld [vmem:[%s3804_s21 + $0xb0] sm:$0xff]  ;;  %v61_v24 = vld [vmem:[%s3804_s21 + $0x40] sm:$0xff]  ;;  %v316_v25 = vld [vmem:[%s3804_s21 + $0xb8] sm:$0xff] }
   0xf   : > { %3451 = vmatmul.mubr.msk.f32.vlgmr.msra.gmra.mrb[0].mxu0 %vm78_vm2, %v54_v8  ;;  %3630 = vmatprep.subr.bf16.mxu0 %v3789_v4  ;;  %v317_v26 = vld [vmem:[%s3804_s21 + $0xc0] sm:$0xff]  ;;  %v62_v27 = vld [vmem:[%s3804_s21 + $0x48] sm:$0xff]  ;;  %v63_v28 = vld [vmem:[%s3804_s21 + $0x50] sm:$0xff] }
  0x10   : > { %3632 = vmatpush3.bf16.msra.mxu0 %v3789_v4  ;;  %3453 = vmatprep.mubr.msk.f32.mxu0 %vm78_vm2, %v55_v10  ;;  %v318_v29 = vld [vmem:[%s3804_s21 + $0xc8] sm:$0xff]  ;;  %v319_v30 = vld [vmem:[%s3804_s21 + $0xd0] sm:$0xff]  ;;  %v64_v31 = vld [vmem:[%s3804_s21 + $0x58] sm:$0xff] }
  0x11   : > { %3481 = vmatmul.mubr.msk.f32.vlgmr.msra.gmra.mrb[0].mxu1 %vm78_vm2, %v310_v11  ;;  %3508 = vmatprep.subr.msk.mxu0 %vm127_vm1, %v574_v12  ;;  %v65_v32 = vld [vmem:[%s3804_s21 + $0x60] sm:$0xff]  ;;  %v320_v33 = vld [vmem:[%s3804_s21 + $0xd8] sm:$0xff]  ;;  %v66_v35 = vld [vmem:[%s3804_s21 + $0x68] sm:$0xff] }
  0x12   : > { %3483 = vmatprep.mubr.msk.f32.mxu1 %vm78_vm2, %v311_v13  ;;  %3634 = vmatprep.subr.bf16.mxu1 %v3789_v4  ;;  %v321_v34 = vld [vmem:[%s3804_s21 + $0xe0] sm:$0xff]  ;;  %v67_v36 = vld [vmem:[%s3804_s21 + $0x70] sm:$0xff]  ;;  %v322_v37 = vld [vmem:[%s3804_s21 + $0xe8] sm:$0xff] }
  0x13   : > { %3454 = vmatmul.mubr.msk.f32.gmra.mrb[2].mxu0 %vm78_vm2, %v56_v14  ;;  %3636 = vmatpush3.bf16.msra.mxu1 %v3789_v4  ;;  %v323_v38 = vld [vmem:[%s3804_s21 + $0xf0] sm:$0xff]  ;;  %v68_v39 = vld [vmem:[%s3804_s21 + $0x78] sm:$0xff]  ;;  %v556_v40 = vld [vmem:[%s3804_s21 + $0x100] sm:$0xff] }
  0x14   : > { %3456 = vmatprep.mubr.msk.f32.mxu0 %vm78_vm2, %v57_v15  ;;  %3509 = vmatpush3.msk.msra.mxu0 %vm127_vm1, %v574_v12  ;;  %v324_v41 = vld [vmem:[%s3804_s21 + $0xf8] sm:$0xff]  ;;  %v803_v42 = vld [vmem:[%s3804_s21 + $0x180] sm:$0xff]  ;;  %v557_v43 = vld [vmem:[%s3804_s21 + $0x108] sm:$0xff] }
  0x15   : > { %3484 = vmatmul.mubr.msk.f32.gmra.mrb[2].mxu1 %vm78_vm2, %v312_v16  ;;  %3638 = vmatprep.subr.bf16.mxu0 %v3789_v4  ;;  %v558_v44 = vld [vmem:[%s3804_s21 + $0x110] sm:$0xff]  ;;  %v804_v45 = vld [vmem:[%s3804_s21 + $0x188] sm:$0xff]  ;;  %v559_v48 = vld [vmem:[%s3804_s21 + $0x118] sm:$0xff] }
  0x16   : > { %3486 = vmatprep.mubr.msk.f32.mxu1 %vm78_vm2, %v313_v17  ;;  %3538 = vmatprep.subr.msk.mxu1 %vm127_vm1, %v821_v18  ;;  %v1068_v46 = vld [vmem:[%s4918_s1 + $0x10] sm:$0xf]  ;;  %v560_v49 = vld [vmem:[%s3804_s21 + $0x120] sm:$0xff]  ;;  %v806_v50 = vld [vmem:[%s3804_s21 + $0x198] sm:$0xff] }
  0x17   : > { %3457 = vmatmul.mubr.msk.f32.gmra.mrb[4].mxu0 %vm78_vm2, %v58_v19  ;;  %3539 = vmatpush3.msk.msra.mxu1 %vm127_vm1, %v821_v18  ;;  %v805_v47 = vld [vmem:[%s3804_s21 + $0x190] sm:$0xff]  ;;  %v807_v51 = vld [vmem:[%s3804_s21 + $0x1a0] sm:$0xff]  ;;  %v561_v52 = vld [vmem:[%s3804_s21 + $0x128] sm:$0xff] }
  0x18   : > { %3459 = vmatprep.mubr.msk.f32.mxu0 %vm78_vm2, %v59_v20  ;;  %v562_v53 = vld [vmem:[%s3804_s21 + $0x130] sm:$0xff]  ;;  %v808_v54 = vld [vmem:[%s3804_s21 + $0x1a8] sm:$0xff]  ;;  %v563_v56 = vld [vmem:[%s3804_s21 + $0x138] sm:$0xff] }
  0x19   : > { %3487 = vmatmul.mubr.msk.f32.gmra.mrb[4].mxu1 %vm78_vm2, %v314_v21  ;;  %v809_v55 = vld [vmem:[%s3804_s21 + $0x1b0] sm:$0xff]  ;;  %v564_v57 = vld [vmem:[%s3804_s21 + $0x140] sm:$0xff]  ;;  %v810_v58 = vld [vmem:[%s3804_s21 + $0x1b8] sm:$0xff] }
  0x1a   : > { %3489 = vmatprep.mubr.msk.f32.mxu1 %vm78_vm2, %v315_v22  ;;  %v811_v59 = vld [vmem:[%s3804_s21 + $0x1c0] sm:$0xff]  ;;  %v565_v60 = vld [vmem:[%s3804_s21 + $0x148] sm:$0xff]  ;;  %v566_v61 = vld [vmem:[%s3804_s21 + $0x150] sm:$0xff] }
  0x1b   : > { %3460 = vmatmul.mubr.msk.f32.gmra.mrb[6].mxu0 %vm78_vm2, %v60_v23  ;;  %v812_v62 = vld [vmem:[%s3804_s21 + $0x1c8] sm:$0xff]  ;;  %v813_v63 = vld [vmem:[%s3804_s21 + $0x1d0] sm:$0xff]  ;;  %v567_v0 = vld [vmem:[%s3804_s21 + $0x158] sm:$0xff] }
  0x1c   : > { %3462 = vmatprep.mubr.msk.f32.mxu0 %vm78_vm2, %v61_v24  ;;  %v568_v1 = vld [vmem:[%s3804_s21 + $0x160] sm:$0xff]  ;;  %v814_v2 = vld [vmem:[%s3804_s21 + $0x1d8] sm:$0xff]  ;;  %v569_v5 = vld [vmem:[%s3804_s21 + $0x168] sm:$0xff] }
  0x1d   : > { %3490 = vmatmul.mubr.msk.f32.gmra.mrb[6].mxu1 %vm78_vm2, %v316_v25  ;;  %v815_v3 = vld [vmem:[%s3804_s21 + $0x1e0] sm:$0xff]  ;;  %v570_v6 = vld [vmem:[%s3804_s21 + $0x170] sm:$0xff]  ;;  %v816_v7 = vld [vmem:[%s3804_s21 + $0x1e8] sm:$0xff] }
  0x1e   : > { %3492 = vmatprep.mubr.msk.f32.mxu1 %vm78_vm2, %v317_v26  ;;  %v817_v8 = vld [vmem:[%s3804_s21 + $0x1f0] sm:$0xff]  ;;  %v571_v9 = vld [vmem:[%s3804_s21 + $0x178] sm:$0xff]  ;;  %v1050_v10 = vld [vmem:[%s3804_s21 + $0x200] sm:$0xff] }
  0x1f   : > { %3463 = vmatmul.mubr.msk.f32.gmra.mrb[8].mxu0 %vm78_vm2, %v62_v27  ;;  %v818_v11 = vld [vmem:[%s3804_s21 + $0x1f8] sm:$0xff]  ;;  %v1051_v12 = vld [vmem:[%s3804_s21 + $0x208] sm:$0xff]  ;;  %v1052_v13 = vld [vmem:[%s3804_s21 + $0x210] sm:$0xff] }
  0x20   : > { %3465 = vmatprep.mubr.msk.f32.mxu0 %vm78_vm2, %v63_v28  ;;  %v1313_v14 = vld [vmem:[%s4918_s1 + $0x10] sm:$0xf]  ;;  %v1053_v15 = vld [vmem:[%s3804_s21 + $0x218] sm:$0xff]  ;;  %v1054_v16 = vld [vmem:[%s3804_s21 + $0x220] sm:$0xff] }
  0x21   : > { %3493 = vmatmul.mubr.msk.f32.gmra.mrb[8].mxu1 %vm78_vm2, %v318_v29  ;;  %v1055_v17 = vld [vmem:[%s3804_s21 + $0x228] sm:$0xff]  ;;  %v1056_v18 = vld [vmem:[%s3804_s21 + $0x230] sm:$0xff]  ;;  %v1058_v19 = vld [vmem:[%s3804_s21 + $0x240] sm:$0xff] }
  0x22   : > { %3495 = vmatprep.mubr.msk.f32.mxu1 %vm78_vm2, %v319_v30  ;;  %v1059_v20 = vld [vmem:[%s3804_s21 + $0x248] sm:$0xff]  ;;  %v1060_v21 = vld [vmem:[%s3804_s21 + $0x250] sm:$0xff]  ;;  %v1061_v22 = vld [vmem:[%s3804_s21 + $0x258] sm:$0xff] }
  0x23   : > { %3466 = vmatmul.mubr.msk.f32.gmra.mrb[10].mxu0 %vm78_vm2, %v64_v31  ;;  %v1062_v23 = vld [vmem:[%s3804_s21 + $0x260] sm:$0xff]  ;;  %v1063_v24 = vld [vmem:[%s3804_s21 + $0x268] sm:$0xff]  ;;  %v1064_v25 = vld [vmem:[%s3804_s21 + $0x270] sm:$0xff] }
  0x24   : > { %3468 = vmatprep.mubr.msk.f32.mxu0 %vm78_vm2, %v65_v32  ;;  %v1065_v26 = vld [vmem:[%s3804_s21 + $0x278] sm:$0xff]  ;;  %v1297_v27 = vld [vmem:[%s3804_s21 + $0x280] sm:$0xff]  ;;  %v1298_v28 = vld [vmem:[%s3804_s21 + $0x288] sm:$0xff] }
  0x25   : > { %3496 = vmatmul.mubr.msk.f32.gmra.mrb[10].mxu1 %vm78_vm2, %v320_v33  ;;  %v1299_v29 = vld [vmem:[%s3804_s21 + $0x290] sm:$0xff]  ;;  %v1300_v30 = vld [vmem:[%s3804_s21 + $0x298] sm:$0xff]  ;;  %v1301_v31 = vld [vmem:[%s3804_s21 + $0x2a0] sm:$0xff] }
  0x26   : > { %3498 = vmatprep.mubr.msk.f32.mxu1 %vm78_vm2, %v321_v34  ;;  %v1302_v32 = vld [vmem:[%s3804_s21 + $0x2a8] sm:$0xff]  ;;  %v1303_v33 = vld [vmem:[%s3804_s21 + $0x2b0] sm:$0xff] }
  0x27   : > { %3469 = vmatmul.mubr.msk.f32.gmra.mrb[12].mxu0 %vm78_vm2, %v66_v35  ;;  %v1836_v34 = vld [vmem:[%s4920_s3 + $0x8] sm:$0xff]  ;;  %v1838_v35 = vld [vmem:[%s4920_s3 + $0x18] sm:$0xff] }
  0x28   : > { %3471 = vmatprep.mubr.msk.f32.mxu0 %vm78_vm2, %v67_v36  ;;  %v3645_v36 = vpack.c.bf16 %v1838_v35, %v1836_v34 }
  0x29   : > { %3499 = vmatmul.mubr.msk.f32.gmra.mrb[12].mxu1 %vm78_vm2, %v322_v37  ;;  %v1835_v37 = vld [vmem:[%s4920_s3] sm:$0xff] }
  0x2a   : > { %3501 = vmatprep.mubr.msk.f32.mxu1 %vm78_vm2, %v323_v38  ;;  %v1837_v38 = vld [vmem:[%s4920_s3 + $0x10] sm:$0xff]  ;;  %3646 = vmatprep.subr.bf16.mxu1 %v3645_v36 }
  0x2b   : > { %3472 = vmatmul.mubr.msk.f32.gmra.mrb[14].mxu0 %vm78_vm2, %v68_v39  ;;  %v1304_v39 = vld [vmem:[%s3804_s21 + $0x2b8] sm:$0xff] }
  0x2c   : > { %3510 = vmatprep.mubr.msk.f32.mxu0 %vm78_vm2, %v556_v40  ;;  %v3647_v40 = vpack.c.bf16 %v1837_v38, %v1835_v37 }
  0x2d   : > { %3502 = vmatmul.mubr.msk.f32.gmra.mrb[14].mxu1 %vm78_vm2, %v324_v41  ;;  %v1305_v41 = vld [vmem:[%s3804_s21 + $0x2c0] sm:$0xff] }
  0x2e   : > { %3540 = vmatprep.mubr.msk.f32.mxu1 %vm78_vm2, %v803_v42  ;;  %v1840_v42 = vld [vmem:[%s4920_s3 + $0x28] sm:$0xff] }
  0x2f   : > { %3511 = vmatmul.mubr.msk.f32.vlgmr.msra.gmra.mrb[16].mxu0 %vm78_vm2, %v557_v43  ;;  %v1842_v43 = vld [vmem:[%s4920_s3 + $0x38] sm:$0xff] }
  0x30   : > { %3640 = vmatpush3.bf16.msra.mxu0 %v3789_v4  ;;  %3513 = vmatprep.mubr.msk.f32.mxu0 %vm78_vm2, %v558_v44  ;;  %v3649_v44 = vpack.c.bf16 %v1842_v43, %v1840_v42 }
  0x31   : > { %3541 = vmatmul.mubr.msk.f32.vlgmr.msra.gmra.mrb[16].mxu1 %vm78_vm2, %v804_v45  ;;  %3568 = vmatprep.subr.msk.mxu0 %vm127_vm1, %v1068_v46  ;;  %v1839_v45 = vld [vmem:[%s4920_s3 + $0x20] sm:$0xff] }
  0x32   : > { %3543 = vmatprep.mubr.msk.f32.mxu1 %vm78_vm2, %v805_v47  ;;  %3648 = vmatpush1.bf16.msra.mxu1 %v3647_v40  ;;  %v1306_v47 = vld [vmem:[%s3804_s21 + $0x2c8] sm:$0xff] }
  0x33   : > { %3514 = vmatmul.mubr.msk.f32.gmra.mrb[18].mxu0 %vm78_vm2, %v559_v48  ;;  %3650 = vmatprep.subr.bf16.mxu1 %v3649_v44 }
  0x34   : > { %3516 = vmatprep.mubr.msk.f32.mxu0 %vm78_vm2, %v560_v49  ;;  %3569 = vmatpush3.msk.msra.mxu0 %vm127_vm1, %v1068_v46  ;;  %v1841_v46 = vld [vmem:[%s4920_s3 + $0x30] sm:$0xff] }
  0x35   : > { %3544 = vmatmul.mubr.msk.f32.gmra.mrb[18].mxu1 %vm78_vm2, %v806_v50  ;;  %3642 = vmatprep.subr.bf16.mxu0 %v3789_v4  ;;  %v3651_v48 = vpack.c.bf16 %v1841_v46, %v1839_v45  ;;  %v1307_v49 = vld [vmem:[%s3804_s21 + $0x2d0] sm:$0xff]  ;;  %v1308_v50 = vld [vmem:[%s3804_s21 + $0x2d8] sm:$0xff] }
  0x36   : > { %3546 = vmatprep.mubr.msk.f32.mxu1 %vm78_vm2, %v807_v51  ;;  %v3721_v51 = vmov 0.0  }
  0x37   : > { %3517 = vmatmul.mubr.msk.f32.gmra.mrb[20].mxu0 %vm78_vm2, %v561_v52  ;;  %3652 = vmatpush1.bf16.msra.mxu1 %v3651_v48  ;;  %v1309_v52 = vld [vmem:[%s3804_s21 + $0x2e0] sm:$0xff] }
  0x38   : > { %3519 = vmatprep.mubr.msk.f32.mxu0 %vm78_vm2, %v562_v53  ;;  %v1310_v53 = vld [vmem:[%s3804_s21 + $0x2e8] sm:$0x3f] }
  0x39   : > { %3547 = vmatmul.mubr.msk.f32.gmra.mrb[20].mxu1 %vm78_vm2, %v808_v54  ;;  %v4056_v54 = vld [vmem:[%s4919_s2] ss:$0 sm:$0xff] }
  0x3a   : > { %3549 = vmatprep.mubr.msk.f32.mxu1 %vm78_vm2, %v809_v55 }
  0x3b   : > { %3520 = vmatmul.mubr.msk.f32.gmra.mrb[22].mxu0 %vm78_vm2, %v563_v56 }
  0x3c   : > { %3522 = vmatprep.mubr.msk.f32.mxu0 %vm78_vm2, %v564_v57 }
  0x3d   : > { %3550 = vmatmul.mubr.msk.f32.gmra.mrb[22].mxu1 %vm78_vm2, %v810_v58 }
  0x3e   : > { %3552 = vmatprep.mubr.msk.f32.mxu1 %vm78_vm2, %v811_v59 }
  0x3f   : > { %3523 = vmatmul.mubr.msk.f32.gmra.mrb[24].mxu0 %vm78_vm2, %v565_v60 }
  0x40   : > { %3525 = vmatprep.mubr.msk.f32.mxu0 %vm78_vm2, %v566_v61 }
  0x41   : > { %3553 = vmatmul.mubr.msk.f32.gmra.mrb[24].mxu1 %vm78_vm2, %v812_v62 }
  0x42   : > { %3555 = vmatprep.mubr.msk.f32.mxu1 %vm78_vm2, %v813_v63 }
  0x43   : > { %3526 = vmatmul.mubr.msk.f32.gmra.mrb[26].mxu0 %vm78_vm2, %v567_v0 }
  0x44   : > { %3528 = vmatprep.mubr.msk.f32.mxu0 %vm78_vm2, %v568_v1 }
  0x45   : > { %3556 = vmatmul.mubr.msk.f32.gmra.mrb[26].mxu1 %vm78_vm2, %v814_v2 }
  0x46   : > { %3558 = vmatprep.mubr.msk.f32.mxu1 %vm78_vm2, %v815_v3 }
  0x47   : > { %3529 = vmatmul.mubr.msk.f32.gmra.mrb[28].mxu0 %vm78_vm2, %v569_v5 }
  0x48   : > { %3531 = vmatprep.mubr.msk.f32.mxu0 %vm78_vm2, %v570_v6 }
  0x49   : > { %3559 = vmatmul.mubr.msk.f32.gmra.mrb[28].mxu1 %vm78_vm2, %v816_v7 }
  0x4a   : > { %3561 = vmatprep.mubr.msk.f32.mxu1 %vm78_vm2, %v817_v8 }
  0x4b   : > { %3532 = vmatmul.mubr.msk.f32.gmra.mrb[30].mxu0 %vm78_vm2, %v571_v9 }
  0x4c   : > { %3570 = vmatprep.mubr.msk.f32.mxu0 %vm78_vm2, %v1050_v10 }
  0x4d   : > { %3562 = vmatmul.mubr.msk.f32.gmra.mrb[30].mxu1 %vm78_vm2, %v818_v11 }
  0x4e   : > { %1979 = vmatprep.mubr.f32.mxu1 %v3721_v51 }
  0x4f   : > { %3571 = vmatmul.mubr.msk.f32.vlgmr.msra.gmra.mrb[32].mxu0 %vm78_vm2, %v1051_v12 }
  0x50   : > { %3644 = vmatpush3.bf16.msra.mxu0 %v3789_v4  ;;  %3573 = vmatprep.mubr.msk.f32.mxu0 %vm78_vm2, %v1052_v13  ;;  %v1057_v4 = vld [vmem:[%s3804_s21 + $0x238] sm:$0xff] }
  0x51   : > { %3598 = vmatprep.subr.msk.mxu0 %vm127_vm1, %v1313_v14 }
  0x53   : > { %3574 = vmatmul.mubr.msk.f32.gmra.mrb[34].mxu0 %vm78_vm2, %v1053_v15 }
  0x54   : > { %3576 = vmatprep.mubr.msk.f32.mxu0 %vm78_vm2, %v1054_v16  ;;  %3599 = vmatpush3.msk.msra.mxu0 %vm127_vm1, %v1313_v14 }
  0x57   : > { %3577 = vmatmul.mubr.msk.f32.gmra.mrb[36].mxu0 %vm78_vm2, %v1055_v17 }
  0x58   : > { %3579 = vmatprep.mubr.msk.f32.mxu0 %vm78_vm2, %v1056_v18 }
  0x5b   : > { %3580 = vmatmul.mubr.msk.f32.gmra.mrb[38].mxu0 %vm78_vm2, %v1057_v4 }
  0x5c   : > { %3582 = vmatprep.mubr.msk.f32.mxu0 %vm78_vm2, %v1058_v19 }
  0x5f   : > { %3583 = vmatmul.mubr.msk.f32.gmra.mrb[40].mxu0 %vm78_vm2, %v1059_v20 }
  0x60   : > { %3585 = vmatprep.mubr.msk.f32.mxu0 %vm78_vm2, %v1060_v21 }
  0x63   : > { %3586 = vmatmul.mubr.msk.f32.gmra.mrb[42].mxu0 %vm78_vm2, %v1061_v22 }
  0x64   : > { %3588 = vmatprep.mubr.msk.f32.mxu0 %vm78_vm2, %v1062_v23 }
  0x67   : > { %3589 = vmatmul.mubr.msk.f32.gmra.mrb[44].mxu0 %vm78_vm2, %v1063_v24 }
  0x68   : > { %3591 = vmatprep.mubr.msk.f32.mxu0 %vm78_vm2, %v1064_v25 }
  0x6b   : > { %3592 = vmatmul.mubr.msk.f32.gmra.mrb[46].mxu0 %vm78_vm2, %v1065_v26 }
  0x6c   : > { %3600 = vmatprep.mubr.msk.f32.mxu0 %vm78_vm2, %v1297_v27 }
  0x6f   : > { %3601 = vmatmul.mubr.msk.f32.vlgmr.msra.gmra.mrb[48].mxu0 %vm78_vm2, %v1298_v28 }
  0x70   : > { %3603 = vmatprep.mubr.msk.f32.mxu0 %vm78_vm2, %v1299_v29 }
  0x73   : > { %3604 = vmatmul.mubr.msk.f32.gmra.mrb[50].mxu0 %vm78_vm2, %v1300_v30 }
  0x74   : > { %3606 = vmatprep.mubr.msk.f32.mxu0 %vm78_vm2, %v1301_v31 }
  0x77   : > { %3607 = vmatmul.mubr.msk.f32.gmra.mrb[52].mxu0 %vm78_vm2, %v1302_v32 }
  0x78   : > { %3609 = vmatprep.mubr.msk.f32.mxu0 %vm78_vm2, %v1303_v33 }
  0x7b   : > { %3610 = vmatmul.mubr.msk.f32.gmra.mrb[54].mxu0 %vm78_vm2, %v1304_v39 }
  0x7c   : > { %3612 = vmatprep.mubr.msk.f32.mxu0 %vm78_vm2, %v1305_v41 }
  0x7f   : > { %3613 = vmatmul.mubr.msk.f32.gmra.mrb[56].mxu0 %vm78_vm2, %v1306_v47 }
  0x80   : > { %3615 = vmatprep.mubr.msk.f32.mxu0 %vm78_vm2, %v1307_v49 }
  0x83   : > { %3616 = vmatmul.mubr.msk.f32.gmra.mrb[58].mxu0 %vm78_vm2, %v1308_v50 }
  0x84   : > { %3618 = vmatprep.mubr.msk.f32.mxu0 %vm78_vm2, %v1309_v52 }
  0x87   : > { %3619 = vmatmul.mubr.msk.f32.gmra.mrb[60].mxu0 %vm78_vm2, %v1310_v53 }
  0x88   : > { %2829 = vmatprep.mubr.f32.mxu0 %v3721_v51 }
  0xe2   : > { %v3452_v55 = vpop.f32.mrb[0].mxu0 }
  0xe3   : > { %v203_v56 = vadd.f32 %v3452_v55, %v4056_v54  ;;  %v197_v57 = vpop.f32.mrb[1].mxu0 }
  0xe4   : > { %v198_v58 = vadd.f32 %v4056_v54, %v197_v57  ;;  %v3482_v59 = vpop.f32.mrb[0].mxu1 }
  0xe5   : > { %v277_v60 = vmax.f32 %v203_v56, 0.0  ;;  %v451_v61 = vadd.f32 %v3482_v59, %v4056_v54  ;;  %v445_v62 = vpop.f32.mrb[1].mxu1 }
  0xe6   : > { %v276_v63 = vmax.f32 %v198_v58, 0.0  ;;  %v3455_v0 = vpop.f32.mrb[2].mxu0  ;;  %v446_v1 = vadd.f32 %v4056_v54, %v445_v62 }
  0xe7   : > { %294 = vst.msk [vmem:[#allocation2 + $0xa] sm:$0xff] %vm292_vm3, %v277_v60  ;;  %v213_v2 = vadd.f32 %v3455_v0, %v4056_v54  ;;  %v207_v3 = vpop.f32.mrb[3].mxu0  ;;  %v525_v5 = vmax.f32 %v451_v61, 0.0 }
  0xe8   : > { %293 = vst.msk [vmem:[#allocation2 + $0x2] sm:$0xff] %vm292_vm3, %v276_v63  ;;  %v208_v6 = vadd.f32 %v4056_v54, %v207_v3  ;;  %v524_v7 = vmax.f32 %v446_v1, 0.0  ;;  %v3485_v8 = vpop.f32.mrb[2].mxu1 }
  0xe9   : > { %v279_v9 = vmax.f32 %v213_v2, 0.0  ;;  %541 = vst.msk [vmem:[#allocation2 + $0x8a] sm:$0xff] %vm292_vm3, %v525_v5  ;;  %v461_v10 = vadd.f32 %v3485_v8, %v4056_v54  ;;  %v455_v11 = vpop.f32.mrb[3].mxu1 }
  0xea   : > { %v278_v12 = vmax.f32 %v208_v6, 0.0  ;;  %v3458_v13 = vpop.f32.mrb[4].mxu0  ;;  %540 = vst.msk [vmem:[#allocation2 + $0x82] sm:$0xff] %vm292_vm3, %v524_v7  ;;  %v456_v14 = vadd.f32 %v4056_v54, %v455_v11 }
  0xeb   : > { %296 = vst.msk [vmem:[#allocation2 + $0x1a] sm:$0xff] %vm292_vm3, %v279_v9  ;;  %v223_v15 = vadd.f32 %v3458_v13, %v4056_v54  ;;  %v217_v16 = vpop.f32.mrb[5].mxu0  ;;  %v527_v17 = vmax.f32 %v461_v10, 0.0 }
  0xec   : > { %295 = vst.msk [vmem:[#allocation2 + $0x12] sm:$0xff] %vm292_vm3, %v278_v12  ;;  %v218_v18 = vadd.f32 %v4056_v54, %v217_v16  ;;  %v526_v4 = vmax.f32 %v456_v14, 0.0  ;;  %v3488_v19 = vpop.f32.mrb[4].mxu1 }
  0xed   : > { %v281_v20 = vmax.f32 %v223_v15, 0.0  ;;  %543 = vst.msk [vmem:[#allocation2 + $0x9a] sm:$0xff] %vm292_vm3, %v527_v17  ;;  %v471_v21 = vadd.f32 %v3488_v19, %v4056_v54  ;;  %v465_v22 = vpop.f32.mrb[5].mxu1 }
  0xee   : > { %v280_v23 = vmax.f32 %v218_v18, 0.0  ;;  %v3461_v24 = vpop.f32.mrb[6].mxu0  ;;  %542 = vst.msk [vmem:[#allocation2 + $0x92] sm:$0xff] %vm292_vm3, %v526_v4  ;;  %v466_v25 = vadd.f32 %v4056_v54, %v465_v22 }
  0xef   : > { %298 = vst.msk [vmem:[#allocation2 + $0x2a] sm:$0xff] %vm292_vm3, %v281_v20  ;;  %v233_v26 = vadd.f32 %v3461_v24, %v4056_v54  ;;  %v227_v27 = vpop.f32.mrb[7].mxu0  ;;  %v529_v28 = vmax.f32 %v471_v21, 0.0 }
  0xf0   : > { %297 = vst.msk [vmem:[#allocation2 + $0x22] sm:$0xff] %vm292_vm3, %v280_v23  ;;  %v228_v29 = vadd.f32 %v4056_v54, %v227_v27  ;;  %v528_v30 = vmax.f32 %v466_v25, 0.0  ;;  %v3491_v31 = vpop.f32.mrb[6].mxu1 }
  0xf1   : > { %v283_v32 = vmax.f32 %v233_v26, 0.0  ;;  %545 = vst.msk [vmem:[#allocation2 + $0xaa] sm:$0xff] %vm292_vm3, %v529_v28  ;;  %v481_v33 = vadd.f32 %v3491_v31, %v4056_v54  ;;  %v475_v34 = vpop.f32.mrb[7].mxu1 }
  0xf2   : > { %v282_v35 = vmax.f32 %v228_v29, 0.0  ;;  %v3464_v36 = vpop.f32.mrb[8].mxu0  ;;  %544 = vst.msk [vmem:[#allocation2 + $0xa2] sm:$0xff] %vm292_vm3, %v528_v30  ;;  %v476_v37 = vadd.f32 %v4056_v54, %v475_v34 }
  0xf3   : > { %v1523_v38 = vld [vmem:[#allocation2] ss:$4 sm:$0xff]  ;;  %v1571_v39 = vld [vmem:[#allocation2 + $0x1] ss:$4 sm:$0xff]  ;;  %v1619_v40 = vld [vmem:[#allocation2 + $0x2] ss:$4 sm:$0xff]  ;;  %v243_v41 = vadd.f32 %v3464_v36, %v4056_v54 }
  0xf4   : > { %300 = vst.msk [vmem:[#allocation2 + $0x3a] sm:$0xff] %vm292_vm3, %v283_v32  ;;  %v1667_v42 = vld [vmem:[#allocation2 + $0x3] ss:$4 sm:$0xff]  ;;  %v1714_v43 = vmax.f32 %v1523_v38, %v1571_v39  ;;  %299 = vst.msk [vmem:[#allocation2 + $0x32] sm:$0xff] %vm292_vm3, %v282_v35  ;;  %v237_v44 = vpop.f32.mrb[9].mxu0  ;;  %v531_v45 = vmax.f32 %v481_v33, 0.0 }
  0xf5   : > { %v530_v46 = vmax.f32 %v476_v37, 0.0  ;;  %v3494_v47 = vpop.f32.mrb[8].mxu1  ;;  %v1738_v48 = vmax.f32 %v1619_v40, %v1667_v42  ;;  %v285_v49 = vmax.f32 %v243_v41, 0.0  ;;  %v238_v50 = vadd.f32 %v4056_v54, %v237_v44 }
  0xf6   : > { %v491_v52 = vadd.f32 %v3494_v47, %v4056_v54  ;;  %v485_v53 = vpop.f32.mrb[9].mxu1  ;;  %v3467_v55 = vpop.f32.mrb[10].mxu0  ;;  %547 = vst.msk [vmem:[#allocation2 + $0xba] sm:$0xff] %vm292_vm3, %v531_v45 }
  0xf7   : > { %546 = vst.msk [vmem:[#allocation2 + $0xb2] sm:$0xff] %vm292_vm3, %v530_v46  ;;  %v486_v56 = vadd.f32 %v4056_v54, %v485_v53  ;;  %v1762_v57 = vmax.f32 %v1714_v43, %v1738_v48  ;;  %302 = vst.msk [vmem:[#allocation2 + $0x4a] sm:$0xff] %vm292_vm3, %v285_v49  ;;  %v284_v58 = vmax.f32 %v238_v50, 0.0  ;;  %v253_v59 = vadd.f32 %v3467_v55, %v4056_v54  ;;  %v247_v60 = vpop.f32.mrb[11].mxu0  ;;  %v4125_v53 = vld [vmem:[#allocation2 + $0x82] ss:$4 sm:$0xff] }
  0xf8   : > { %v533_v61 = vmax.f32 %v491_v52, 0.0  ;;  %v248_v62 = vadd.f32 %v4056_v54, %v247_v60  ;;  %v3497_v0 = vpop.f32.mrb[10].mxu1  ;;  %v4127_v55 = vld [vmem:[#allocation2 + $0x83] ss:$4 sm:$0xff] }
  0xf9   : > { %v532_v63 = vmax.f32 %v486_v56, 0.0  ;;  %1786 = vst.msk [vmem:[#allocation3 + $0x2] sm:$0xff] %vm292_vm3, %v1762_v57  ;;  %301 = vst.msk [vmem:[#allocation2 + $0x42] sm:$0xff] %vm292_vm3, %v284_v58  ;;  %v287_v1 = vmax.f32 %v253_v59, 0.0  ;;  %v501_v2 = vadd.f32 %v3497_v0, %v4056_v54  ;;  %v495_v3 = vpop.f32.mrb[11].mxu1 }
  0xfa   : > { %549 = vst.msk [vmem:[#allocation2 + $0xca] sm:$0xff] %vm292_vm3, %v533_v61  ;;  %v286_v5 = vmax.f32 %v248_v62, 0.0  ;;  %v3470_v6 = vpop.f32.mrb[12].mxu0  ;;  %v496_v7 = vadd.f32 %v4056_v54, %v495_v3 }
  0xfb   : > { %548 = vst.msk [vmem:[#allocation2 + $0xc2] sm:$0xff] %vm292_vm3, %v532_v63  ;;  %v1525_v8 = vld [vmem:[#allocation2 + $0x20] ss:$4 sm:$0xff]  ;;  %v1573_v9 = vld [vmem:[#allocation2 + $0x21] ss:$4 sm:$0xff]  ;;  %304 = vst.msk [vmem:[#allocation2 + $0x5a] sm:$0xff] %vm292_vm3, %v287_v1  ;;  %v263_v11 = vadd.f32 %v3470_v6, %v4056_v54 }
  0xfc   : > { %v1621_v10 = vld [vmem:[#allocation2 + $0x22] ss:$4 sm:$0xff]  ;;  %v1669_v12 = vld [vmem:[#allocation2 + $0x23] ss:$4 sm:$0xff]  ;;  %v1715_v13 = vmax.f32 %v1525_v8, %v1573_v9  ;;  %303 = vst.msk [vmem:[#allocation2 + $0x52] sm:$0xff] %vm292_vm3, %v286_v5  ;;  %v257_v14 = vpop.f32.mrb[13].mxu0 }
  0xfd   : > { %v535_v15 = vmax.f32 %v501_v2, 0.0  ;;  %v534_v16 = vmax.f32 %v496_v7, 0.0  ;;  %v3500_v17 = vpop.f32.mrb[12].mxu1  ;;  %v1739_v18 = vmax.f32 %v1621_v10, %v1669_v12  ;;  %v289_v4 = vmax.f32 %v263_v11, 0.0 }
  0xfe   : > { %v258_v19 = vadd.f32 %v4056_v54, %v257_v14  ;;  %v1533_v20 = vld [vmem:[#allocation2 + $0xa0] ss:$4 sm:$0xff]  ;;  %v1581_v21 = vld [vmem:[#allocation2 + $0xa1] ss:$4 sm:$0xff]  ;;  %v511_v22 = vadd.f32 %v3500_v17, %v4056_v54  ;;  %v505_v23 = vpop.f32.mrb[13].mxu1  ;;  %v3473_v24 = vpop.f32.mrb[14].mxu0 }
  0xff   : > { %v1629_v25 = vld [vmem:[#allocation2 + $0xa2] ss:$4 sm:$0xff]  ;;  %v1677_v26 = vld [vmem:[#allocation2 + $0xa3] ss:$4 sm:$0xff]  ;;  %v1719_v27 = vmax.f32 %v1533_v20, %v1581_v21  ;;  %551 = vst.msk [vmem:[#allocation2 + $0xda] sm:$0xff] %vm292_vm3, %v535_v15  ;;  %550 = vst.msk [vmem:[#allocation2 + $0xd2] sm:$0xff] %vm292_vm3, %v534_v16  ;;  %v506_v28 = vadd.f32 %v4056_v54, %v505_v23  ;;  %v273_v30 = vadd.f32 %v3473_v24, %v4056_v54 }
 0x100   : > { %306 = vst.msk [vmem:[#allocation2 + $0x6a] sm:$0xff] %vm292_vm3, %v289_v4  ;;  %v288_v29 = vmax.f32 %v258_v19, 0.0  ;;  %v267_v31 = vpop.f32.mrb[15].mxu0  ;;  %v1743_v32 = vmax.f32 %v1629_v25, %v1677_v26  ;;  %v537_v33 = vmax.f32 %v511_v22, 0.0  ;;  %v1811_v35 = vld [vmem:[#allocation3] sm:$0xff]  ;;  %v3503_v37 = vpop.f32.mrb[14].mxu1  ;;  %v1763_v38 = vmax.f32 %v1715_v13, %v1739_v18 }
 0x101   : > { %v268_v34 = vadd.f32 %v4056_v54, %v267_v31  ;;  %v536_v36 = vmax.f32 %v506_v28, 0.0  ;;  %v291_v39 = vmax.f32 %v273_v30, 0.0  ;;  %3297 = vmatmul.mubr.msk.f32.vlgmr.msra.gmra.mrb[32].mxu1 %vm292_vm3, %v1811_v35  ;;  %v521_v40 = vadd.f32 %v3503_v37, %v4056_v54  ;;  %v515_v41 = vpop.f32.mrb[15].mxu1 }
 0x102   : > { %305 = vst.msk [vmem:[#allocation2 + $0x62] sm:$0xff] %vm292_vm3, %v288_v29  ;;  %553 = vst.msk [vmem:[#allocation2 + $0xea] sm:$0xff] %vm292_vm3, %v537_v33  ;;  %v1767_v42 = vmax.f32 %v1719_v27, %v1743_v32  ;;  %v3512_v44 = vpop.f32.mrb[16].mxu0  ;;  %v516_v45 = vadd.f32 %v4056_v54, %v515_v41  ;;  %1985 = vmatprep.mubr.f32.mxu1 %v3721_v51  ;;  %v1742_v18 = vmax.f32 %v4125_v53, %v4127_v55 }
 0x103   : > { %v290_v43 = vmax.f32 %v268_v34, 0.0  ;;  %552 = vst.msk [vmem:[#allocation2 + $0xe2] sm:$0xff] %vm292_vm3, %v536_v36  ;;  %1787 = vst.msk [vmem:[#allocation3 + $0xa] sm:$0xff] %vm292_vm3, %v1763_v38  ;;  %v1527_v46 = vld [vmem:[#allocation2 + $0x40] ss:$4 sm:$0xff]  ;;  %v698_v49 = vadd.f32 %v3512_v44, %v4056_v54  ;;  %v692_v56 = vpop.f32.mrb[17].mxu0 }
 0x104   : > { %v1575_v47 = vld [vmem:[#allocation2 + $0x41] ss:$4 sm:$0xff]  ;;  %v1623_v48 = vld [vmem:[#allocation2 + $0x42] ss:$4 sm:$0xff]  ;;  %308 = vst.msk [vmem:[#allocation2 + $0x7a] sm:$0xff] %vm292_vm3, %v291_v39  ;;  %1791 = vst.msk [vmem:[#allocation3 + $0x2a] sm:$0xff] %vm292_vm3, %v1767_v42  ;;  %v693_v0 = vadd.f32 %v4056_v54, %v692_v56 }
 0x105   : > { %v1671_v50 = vld [vmem:[#allocation2 + $0x43] ss:$4 sm:$0xff]  ;;  %v1716_v52 = vmax.f32 %v1527_v46, %v1575_v47  ;;  %307 = vst.msk [vmem:[#allocation2 + $0x72] sm:$0xff] %vm292_vm3, %v290_v43  ;;  %v539_v57 = vmax.f32 %v521_v40, 0.0  ;;  %v538_v58 = vmax.f32 %v516_v45, 0.0  ;;  %v3542_v59 = vpop.f32.mrb[16].mxu1 }
 0x106   : > { %v1740_v60 = vmax.f32 %v1623_v48, %v1671_v50  ;;  %v772_v61 = vmax.f32 %v698_v49, 0.0  ;;  %v1535_v62 = vld [vmem:[#allocation2 + $0xc0] ss:$4 sm:$0xff]  ;;  %v1583_v63 = vld [vmem:[#allocation2 + $0xc1] ss:$4 sm:$0xff]  ;;  %v945_v1 = vadd.f32 %v3542_v59, %v4056_v54  ;;  %v939_v2 = vpop.f32.mrb[17].mxu1 }
 0x107   : > { %v1631_v3 = vld [vmem:[#allocation2 + $0xc2] ss:$4 sm:$0xff]  ;;  %v1679_v5 = vld [vmem:[#allocation2 + $0xc3] ss:$4 sm:$0xff]  ;;  %v1720_v6 = vmax.f32 %v1535_v62, %v1583_v63  ;;  %555 = vst.msk [vmem:[#allocation2 + $0xfa] sm:$0xff] %vm292_vm3, %v539_v57  ;;  %v3515_v7 = vpop.f32.mrb[18].mxu0  ;;  %v940_v8 = vadd.f32 %v4056_v54, %v939_v2 }
 0x108   : > { %554 = vst.msk [vmem:[#allocation2 + $0xf2] sm:$0xff] %vm292_vm3, %v538_v58  ;;  %788 = vst.msk [vmem:[#allocation2 + $0x10a] sm:$0xff] %vm292_vm3, %v772_v61  ;;  %v1744_v9 = vmax.f32 %v1631_v3, %v1679_v5  ;;  %v771_v10 = vmax.f32 %v693_v0, 0.0  ;;  %v708_v11 = vadd.f32 %v3515_v7, %v4056_v54  ;;  %v702_v12 = vpop.f32.mrb[19].mxu0  ;;  %v1764_v13 = vmax.f32 %v1716_v52, %v1740_v60  ;;  %v3545_v17 = vpop.f32.mrb[18].mxu1 }
 0x109   : > { %v703_v14 = vadd.f32 %v4056_v54, %v702_v12  ;;  %v1019_v15 = vmax.f32 %v945_v1, 0.0  ;;  %v1018_v16 = vmax.f32 %v940_v8, 0.0  ;;  %v955_v20 = vadd.f32 %v3545_v17, %v4056_v54  ;;  %v949_v21 = vpop.f32.mrb[19].mxu1 }
 0x10a   : > { %787 = vst.msk [vmem:[#allocation2 + $0x102] sm:$0xff] %vm292_vm3, %v771_v10  ;;  %v774_v4 = vmax.f32 %v708_v11, 0.0  ;;  %v1812_v19 = vld [vmem:[#allocation3 + $0x8] sm:$0xff]  ;;  %1788 = vst.msk [vmem:[#allocation3 + $0x12] sm:$0xff] %vm292_vm3, %v1764_v13  ;;  %v1768_v22 = vmax.f32 %v1720_v6, %v1744_v9  ;;  %v3518_v26 = vpop.f32.mrb[20].mxu0  ;;  %v950_v27 = vadd.f32 %v4056_v54, %v949_v21 }
 0x10b   : > { %v1531_v23 = vld [vmem:[#allocation2 + $0x80] ss:$4 sm:$0xff]  ;;  %v1579_v24 = vld [vmem:[#allocation2 + $0x81] ss:$4 sm:$0xff]  ;;  %v773_v25 = vmax.f32 %v703_v14, 0.0  ;;  %3298 = vmatmul.mubr.msk.f32.gmra.mrb[34].mxu1 %vm292_vm3, %v1812_v19  ;;  %1035 = vst.msk [vmem:[#allocation2 + $0x18a] sm:$0xff] %vm292_vm3, %v1019_v15  ;;  %v718_v32 = vadd.f32 %v3518_v26, %v4056_v54 }
 0x10c   : > { %1034 = vst.msk [vmem:[#allocation2 + $0x182] sm:$0xff] %vm292_vm3, %v1018_v16  ;;  %v1718_v28 = vmax.f32 %v1531_v23, %v1579_v24  ;;  %v1529_v29 = vld [vmem:[#allocation2 + $0x60] ss:$4 sm:$0xff]  ;;  %v1577_v30 = vld [vmem:[#allocation2 + $0x61] ss:$4 sm:$0xff]  ;;  %790 = vst.msk [vmem:[#allocation2 + $0x11a] sm:$0xff] %vm292_vm3, %v774_v4  ;;  %1991 = vmatprep.mubr.f32.mxu1 %v3721_v51 }
 0x10d   : > { %v1625_v31 = vld [vmem:[#allocation2 + $0x62] ss:$4 sm:$0xff]  ;;  %1792 = vst.msk [vmem:[#allocation3 + $0x32] sm:$0xff] %vm292_vm3, %v1768_v22  ;;  %v1673_v33 = vld [vmem:[#allocation2 + $0x63] ss:$4 sm:$0xff]  ;;  %v1717_v34 = vmax.f32 %v1529_v29, %v1577_v30  ;;  %789 = vst.msk [vmem:[#allocation2 + $0x112] sm:$0xff] %vm292_vm3, %v773_v25 }
 0x10e   : > { %v712_v35 = vpop.f32.mrb[21].mxu0  ;;  %v1021_v36 = vmax.f32 %v955_v20, 0.0  ;;  %v1020_v37 = vmax.f32 %v950_v27, 0.0  ;;  %v3548_v38 = vpop.f32.mrb[20].mxu1  ;;  %v1741_v39 = vmax.f32 %v1625_v31, %v1673_v33  ;;  %v1766_v45 = vmax.f32 %v1718_v28, %v1742_v18 }
 0x10f   : > { %v1537_v40 = vld [vmem:[#allocation2 + $0xe0] ss:$4 sm:$0xff]  ;;  %v1585_v41 = vld [vmem:[#allocation2 + $0xe1] ss:$4 sm:$0xff]  ;;  %v1633_v42 = vld [vmem:[#allocation2 + $0xe2] ss:$4 sm:$0xff]  ;;  %v713_v43 = vadd.f32 %v4056_v54, %v712_v35  ;;  %v965_v44 = vadd.f32 %v3548_v38, %v4056_v54 }
 0x110   : > { %v1681_v46 = vld [vmem:[#allocation2 + $0xe3] ss:$4 sm:$0xff]  ;;  %v1721_v47 = vmax.f32 %v1537_v40, %v1585_v41  ;;  %v776_v48 = vmax.f32 %v718_v32, 0.0  ;;  %v3521_v49 = vpop.f32.mrb[22].mxu0  ;;  %1037 = vst.msk [vmem:[#allocation2 + $0x19a] sm:$0xff] %vm292_vm3, %v1021_v36  ;;  %1036 = vst.msk [vmem:[#allocation2 + $0x192] sm:$0xff] %vm292_vm3, %v1020_v37  ;;  %v1765_v57 = vmax.f32 %v1717_v34, %v1741_v39 }
 0x111   : > { %v959_v50 = vpop.f32.mrb[21].mxu1  ;;  %v1745_v52 = vmax.f32 %v1633_v42, %v1681_v46  ;;  %v775_v53 = vmax.f32 %v713_v43, 0.0  ;;  %v728_v55 = vadd.f32 %v3521_v49, %v4056_v54  ;;  %v722_v56 = vpop.f32.mrb[23].mxu0  ;;  %1790 = vst.msk [vmem:[#allocation3 + $0x22] sm:$0xff] %vm292_vm3, %v1766_v45  ;;  %v1813_v59 = vld [vmem:[#allocation3 + $0x10] sm:$0xff]  ;;  %v1023_v60 = vmax.f32 %v965_v44, 0.0 }
 0x112   : > { %792 = vst.msk [vmem:[#allocation2 + $0x12a] sm:$0xff] %vm292_vm3, %v776_v48  ;;  %v723_v58 = vadd.f32 %v4056_v54, %v722_v56  ;;  %v960_v61 = vadd.f32 %v4056_v54, %v959_v50  ;;  %v3551_v62 = vpop.f32.mrb[22].mxu1  ;;  %3299 = vmatmul.mubr.msk.f32.gmra.mrb[36].mxu1 %vm292_vm3, %v1813_v59  ;;  %1789 = vst.msk [vmem:[#allocation3 + $0x1a] sm:$0xff] %vm292_vm3, %v1765_v57  ;;  %v3524_v5 = vpop.f32.mrb[24].mxu0 }
 0x113   : > { %791 = vst.msk [vmem:[#allocation2 + $0x122] sm:$0xff] %vm292_vm3, %v775_v53  ;;  %v778_v63 = vmax.f32 %v728_v55, 0.0  ;;  %v975_v0 = vadd.f32 %v3551_v62, %v4056_v54  ;;  %v969_v1 = vpop.f32.mrb[23].mxu1  ;;  %v1769_v2 = vmax.f32 %v1721_v47, %v1745_v52  ;;  %1997 = vmatprep.mubr.f32.mxu1 %v3721_v51  ;;  %1039 = vst.msk [vmem:[#allocation2 + $0x1aa] sm:$0xff] %vm292_vm3, %v1023_v60  ;;  %v732_v14 = vpop.f32.mrb[25].mxu0 }
 0x114   : > { %v777_v3 = vmax.f32 %v723_v58, 0.0  ;;  %v1022_v6 = vmax.f32 %v960_v61, 0.0  ;;  %v970_v7 = vadd.f32 %v4056_v54, %v969_v1  ;;  %v1539_v8 = vld [vmem:[#allocation2 + $0x100] ss:$4 sm:$0xff]  ;;  %v1587_v9 = vld [vmem:[#allocation2 + $0x101] ss:$4 sm:$0xff]  ;;  %v738_v11 = vadd.f32 %v3524_v5, %v4056_v54 }
 0x115   : > { %v1635_v10 = vld [vmem:[#allocation2 + $0x102] ss:$4 sm:$0xff]  ;;  %794 = vst.msk [vmem:[#allocation2 + $0x13a] sm:$0xff] %vm292_vm3, %v778_v63  ;;  %1793 = vst.msk [vmem:[#allocation3 + $0x3a] sm:$0xff] %vm292_vm3, %v1769_v2  ;;  %v1683_v12 = vld [vmem:[#allocation2 + $0x103] ss:$4 sm:$0xff]  ;;  %v1722_v13 = vmax.f32 %v1539_v8, %v1587_v9  ;;  %v733_v19 = vadd.f32 %v4056_v54, %v732_v14 }
 0x116   : > { %793 = vst.msk [vmem:[#allocation2 + $0x132] sm:$0xff] %vm292_vm3, %v777_v3  ;;  %1038 = vst.msk [vmem:[#allocation2 + $0x1a2] sm:$0xff] %vm292_vm3, %v1022_v6  ;;  %v1025_v15 = vmax.f32 %v975_v0, 0.0  ;;  %v1024_v16 = vmax.f32 %v970_v7, 0.0  ;;  %v3554_v17 = vpop.f32.mrb[24].mxu1  ;;  %v1746_v18 = vmax.f32 %v1635_v10, %v1683_v12  ;;  %v780_v4 = vmax.f32 %v738_v11, 0.0 }
 0x117   : > { %v985_v20 = vadd.f32 %v3554_v17, %v4056_v54  ;;  %v979_v21 = vpop.f32.mrb[25].mxu1  ;;  %v3527_v22 = vpop.f32.mrb[26].mxu0  ;;  %v779_v24 = vmax.f32 %v733_v19, 0.0 }
 0x118   : > { %1041 = vst.msk [vmem:[#allocation2 + $0x1ba] sm:$0xff] %vm292_vm3, %v1025_v15  ;;  %1040 = vst.msk [vmem:[#allocation2 + $0x1b2] sm:$0xff] %vm292_vm3, %v1024_v16  ;;  %v980_v23 = vadd.f32 %v4056_v54, %v979_v21  ;;  %v748_v25 = vadd.f32 %v3527_v22, %v4056_v54  ;;  %v742_v26 = vpop.f32.mrb[27].mxu0  ;;  %v1770_v28 = vmax.f32 %v1722_v13, %v1746_v18  ;;  %v3557_v32 = vpop.f32.mrb[26].mxu1  ;;  %v1816_v7 = vld [vmem:[#allocation3 + $0x28] sm:$0xff] }
 0x119   : > { %796 = vst.msk [vmem:[#allocation2 + $0x14a] sm:$0xff] %vm292_vm3, %v780_v4  ;;  %v1027_v27 = vmax.f32 %v985_v20, 0.0  ;;  %v743_v29 = vadd.f32 %v4056_v54, %v742_v26  ;;  %v1814_v30 = vld [vmem:[#allocation3 + $0x18] sm:$0xff]  ;;  %795 = vst.msk [vmem:[#allocation2 + $0x142] sm:$0xff] %vm292_vm3, %v779_v24  ;;  %v995_v34 = vadd.f32 %v3557_v32, %v4056_v54  ;;  %v989_v35 = vpop.f32.mrb[27].mxu1  ;;  %v1815_v38 = vld [vmem:[#allocation3 + $0x20] sm:$0xff] }
 0x11a   : > { %v1026_v31 = vmax.f32 %v980_v23, 0.0  ;;  %v782_v33 = vmax.f32 %v748_v25, 0.0  ;;  %3300 = vmatmul.mubr.msk.f32.gmra.mrb[38].mxu1 %vm292_vm3, %v1814_v30  ;;  %1794 = vst.msk [vmem:[#allocation3 + $0x42] sm:$0xff] %vm292_vm3, %v1770_v28  ;;  %v3530_v37 = vpop.f32.mrb[28].mxu0  ;;  %v990_v39 = vadd.f32 %v4056_v54, %v989_v35  ;;  %v1643_v23 = vld [vmem:[#allocation2 + $0x182] ss:$4 sm:$0xff] }
 0x11b   : > { %1043 = vst.msk [vmem:[#allocation2 + $0x1ca] sm:$0xff] %vm292_vm3, %v1027_v27  ;;  %v781_v36 = vmax.f32 %v743_v29, 0.0  ;;  %2003 = vmatprep.mubr.f32.mxu1 %v3721_v51  ;;  %v758_v43 = vadd.f32 %v3530_v37, %v4056_v54  ;;  %v752_v46 = vpop.f32.mrb[29].mxu0  ;;  %v1029_v47 = vmax.f32 %v995_v34, 0.0  ;;  %v1691_v24 = vld [vmem:[#allocation2 + $0x183] ss:$4 sm:$0xff] }
 0x11c   : > { %1042 = vst.msk [vmem:[#allocation2 + $0x1c2] sm:$0xff] %vm292_vm3, %v1026_v31  ;;  %798 = vst.msk [vmem:[#allocation2 + $0x15a] sm:$0xff] %vm292_vm3, %v782_v33  ;;  %v1028_v48 = vmax.f32 %v990_v39, 0.0  ;;  %v3560_v49 = vpop.f32.mrb[28].mxu1  ;;  %v753_v53 = vadd.f32 %v4056_v54, %v752_v46  ;;  %v1817_v26 = vld [vmem:[#allocation3 + $0x30] sm:$0xff] }
 0x11d   : > { %v1541_v40 = vld [vmem:[#allocation2 + $0x120] ss:$4 sm:$0xff]  ;;  %v1589_v41 = vld [vmem:[#allocation2 + $0x121] ss:$4 sm:$0xff]  ;;  %v1637_v42 = vld [vmem:[#allocation2 + $0x122] ss:$4 sm:$0xff]  ;;  %v1005_v57 = vadd.f32 %v3560_v49, %v4056_v54 }
 0x11e   : > { %v1685_v44 = vld [vmem:[#allocation2 + $0x123] ss:$4 sm:$0xff]  ;;  %v1723_v45 = vmax.f32 %v1541_v40, %v1589_v41  ;;  %797 = vst.msk [vmem:[#allocation2 + $0x152] sm:$0xff] %vm292_vm3, %v781_v36  ;;  %v784_v52 = vmax.f32 %v758_v43, 0.0  ;;  %3301 = vmatmul.mubr.msk.f32.gmra.mrb[40].mxu1 %vm292_vm3, %v1815_v38  ;;  %v999_v58 = vpop.f32.mrb[29].mxu1  ;;  %v3533_v59 = vpop.f32.mrb[30].mxu0 }
 0x11f   : > { %v1747_v50 = vmax.f32 %v1637_v42, %v1685_v44  ;;  %v1549_v55 = vld [vmem:[#allocation2 + $0x1a0] ss:$4 sm:$0xff]  ;;  %v1597_v56 = vld [vmem:[#allocation2 + $0x1a1] ss:$4 sm:$0xff]  ;;  %v1645_v60 = vld [vmem:[#allocation2 + $0x1a2] ss:$4 sm:$0xff]  ;;  %2009 = vmatprep.mubr.f32.mxu1 %v3721_v51  ;;  %v1000_v63 = vadd.f32 %v4056_v54, %v999_v58  ;;  %v768_v1 = vadd.f32 %v3533_v59, %v4056_v54 }
 0x120   : > { %v1693_v61 = vld [vmem:[#allocation2 + $0x1a3] ss:$4 sm:$0xff]  ;;  %v1727_v62 = vmax.f32 %v1549_v55, %v1597_v56  ;;  %1045 = vst.msk [vmem:[#allocation2 + $0x1da] sm:$0xff] %vm292_vm3, %v1029_v47  ;;  %1044 = vst.msk [vmem:[#allocation2 + $0x1d2] sm:$0xff] %vm292_vm3, %v1028_v48  ;;  %v783_v0 = vmax.f32 %v753_v53, 0.0  ;;  %v762_v2 = vpop.f32.mrb[31].mxu0 }
 0x121   : > { %800 = vst.msk [vmem:[#allocation2 + $0x16a] sm:$0xff] %vm292_vm3, %v784_v52  ;;  %v1751_v3 = vmax.f32 %v1645_v60, %v1693_v61  ;;  %v1031_v5 = vmax.f32 %v1005_v57, 0.0  ;;  %v763_v6 = vadd.f32 %v4056_v54, %v762_v2  ;;  %v1030_v8 = vmax.f32 %v1000_v63, 0.0  ;;  %v3563_v9 = vpop.f32.mrb[30].mxu1  ;;  %v1818_v44 = vld [vmem:[#allocation3 + $0x38] sm:$0xff] }
 0x122   : > { %v1771_v10 = vmax.f32 %v1723_v45, %v1747_v50  ;;  %799 = vst.msk [vmem:[#allocation2 + $0x162] sm:$0xff] %vm292_vm3, %v783_v0  ;;  %v786_v11 = vmax.f32 %v768_v1, 0.0  ;;  %3302 = vmatmul.mubr.msk.f32.gmra.mrb[42].mxu1 %vm292_vm3, %v1816_v7  ;;  %v1015_v12 = vadd.f32 %v3563_v9, %v4056_v54  ;;  %v1009_v13 = vpop.f32.mrb[31].mxu1  ;;  %v3572_v16 = vpop.f32.mrb[32].mxu0  ;;  %v1750_v45 = vmax.f32 %v1643_v23, %v1691_v24 }
 0x123   : > { %1047 = vst.msk [vmem:[#allocation2 + $0x1ea] sm:$0xff] %vm292_vm3, %v1031_v5  ;;  %v1775_v14 = vmax.f32 %v1727_v62, %v1751_v3  ;;  %v785_v15 = vmax.f32 %v763_v6, 0.0  ;;  %2015 = vmatprep.mubr.f32.mxu1 %v3721_v51  ;;  %1046 = vst.msk [vmem:[#allocation2 + $0x1e2] sm:$0xff] %vm292_vm3, %v1030_v8  ;;  %v1010_v17 = vadd.f32 %v4056_v54, %v1009_v13  ;;  %v1186_v25 = vpop.f32.mrb[33].mxu0  ;;  %v1819_v62 = vld [vmem:[#allocation3 + $0x40] sm:$0xff] }
 0x124   : > { %1795 = vst.msk [vmem:[#allocation3 + $0x4a] sm:$0xff] %vm292_vm3, %v1771_v10  ;;  %802 = vst.msk [vmem:[#allocation2 + $0x17a] sm:$0xff] %vm292_vm3, %v786_v11  ;;  %v1192_v20 = vadd.f32 %v3572_v16, %v4056_v54  ;;  %v1033_v27 = vmax.f32 %v1015_v12, 0.0  ;;  %v1187_v33 = vadd.f32 %v4056_v54, %v1186_v25 }
 0x125   : > { %v1543_v18 = vld [vmem:[#allocation2 + $0x140] ss:$4 sm:$0xff]  ;;  %v1591_v4 = vld [vmem:[#allocation2 + $0x141] ss:$4 sm:$0xff]  ;;  %v1639_v19 = vld [vmem:[#allocation2 + $0x142] ss:$4 sm:$0xff] }
 0x126   : > { %1799 = vst.msk [vmem:[#allocation3 + $0x6a] sm:$0xff] %vm292_vm3, %v1775_v14  ;;  %v1687_v21 = vld [vmem:[#allocation2 + $0x143] ss:$4 sm:$0xff]  ;;  %v1724_v22 = vmax.f32 %v1543_v18, %v1591_v4  ;;  %801 = vst.msk [vmem:[#allocation2 + $0x172] sm:$0xff] %vm292_vm3, %v785_v15  ;;  %v1032_v28 = vmax.f32 %v1010_v17, 0.0  ;;  %v1266_v30 = vmax.f32 %v1192_v20, 0.0  ;;  %3303 = vmatmul.mubr.msk.f32.gmra.mrb[44].mxu1 %vm292_vm3, %v1817_v26 }
 0x127   : > { %v1748_v29 = vmax.f32 %v1639_v19, %v1687_v21  ;;  %v1551_v31 = vld [vmem:[#allocation2 + $0x1c0] ss:$4 sm:$0xff]  ;;  %v1599_v32 = vld [vmem:[#allocation2 + $0x1c1] ss:$4 sm:$0xff]  ;;  %v1647_v34 = vld [vmem:[#allocation2 + $0x1c2] ss:$4 sm:$0xff]  ;;  %2021 = vmatprep.mubr.f32.mxu1 %v3721_v51 }
 0x128   : > { %v1695_v35 = vld [vmem:[#allocation2 + $0x1c3] ss:$4 sm:$0xff]  ;;  %v1728_v36 = vmax.f32 %v1551_v31, %v1599_v32  ;;  %1049 = vst.msk [vmem:[#allocation2 + $0x1fa] sm:$0xff] %vm292_vm3, %v1033_v27  ;;  %v3575_v37 = vpop.f32.mrb[34].mxu0  ;;  %1048 = vst.msk [vmem:[#allocation2 + $0x1f2] sm:$0xff] %vm292_vm3, %v1032_v28  ;;  %v1265_v39 = vmax.f32 %v1187_v33, 0.0 }
 0x129   : > { %1282 = vst.msk [vmem:[#allocation2 + $0x20a] sm:$0xff] %vm292_vm3, %v1266_v30  ;;  %v1752_v38 = vmax.f32 %v1647_v34, %v1695_v35  ;;  %v1202_v40 = vadd.f32 %v3575_v37, %v4056_v54  ;;  %v1196_v41 = vpop.f32.mrb[35].mxu0  ;;  %v1772_v42 = vmax.f32 %v1724_v22, %v1748_v29 }
 0x12a   : > { %v1197_v43 = vadd.f32 %v4056_v54, %v1196_v41  ;;  %1281 = vst.msk [vmem:[#allocation2 + $0x202] sm:$0xff] %vm292_vm3, %v1265_v39  ;;  %3304 = vmatmul.mubr.msk.f32.gmra.mrb[46].mxu1 %vm292_vm3, %v1818_v44  ;;  %v3578_v52 = vpop.f32.mrb[36].mxu0 }
 0x12b   : > { %v1268_v46 = vmax.f32 %v1202_v40, 0.0  ;;  %1796 = vst.msk [vmem:[#allocation3 + $0x52] sm:$0xff] %vm292_vm3, %v1772_v42  ;;  %v1776_v47 = vmax.f32 %v1728_v36, %v1752_v38  ;;  %v1547_v48 = vld [vmem:[#allocation2 + $0x180] ss:$4 sm:$0xff]  ;;  %v1595_v49 = vld [vmem:[#allocation2 + $0x181] ss:$4 sm:$0xff]  ;;  %2027 = vmatprep.mubr.f32.mxu1 %v3721_v51  ;;  %v1212_v58 = vadd.f32 %v3578_v52, %v4056_v54 }
 0x12c   : > { %v1267_v50 = vmax.f32 %v1197_v43, 0.0  ;;  %v1726_v53 = vmax.f32 %v1547_v48, %v1595_v49  ;;  %v1206_v61 = vpop.f32.mrb[37].mxu0  ;;  %v1820_v16 = vld [vmem:[#allocation3 + $0x48] sm:$0xff] }
 0x12d   : > { %v1545_v55 = vld [vmem:[#allocation2 + $0x160] ss:$4 sm:$0xff]  ;;  %v1593_v56 = vld [vmem:[#allocation2 + $0x161] ss:$4 sm:$0xff]  ;;  %v1641_v57 = vld [vmem:[#allocation2 + $0x162] ss:$4 sm:$0xff]  ;;  %v1207_v3 = vadd.f32 %v4056_v54, %v1206_v61 }
 0x12e   : > { %1284 = vst.msk [vmem:[#allocation2 + $0x21a] sm:$0xff] %vm292_vm3, %v1268_v46  ;;  %1800 = vst.msk [vmem:[#allocation3 + $0x72] sm:$0xff] %vm292_vm3, %v1776_v47  ;;  %v1689_v59 = vld [vmem:[#allocation2 + $0x163] ss:$4 sm:$0xff]  ;;  %v1725_v60 = vmax.f32 %v1545_v55, %v1593_v56  ;;  %3305 = vmatmul.mubr.msk.f32.gmra.mrb[48].mxu1 %vm292_vm3, %v1819_v62  ;;  %v1774_v5 = vmax.f32 %v1726_v53, %v1750_v45  ;;  %v1270_v8 = vmax.f32 %v1212_v58, 0.0  ;;  %v3581_v9 = vpop.f32.mrb[38].mxu0 }
 0x12f   : > { %1283 = vst.msk [vmem:[#allocation2 + $0x212] sm:$0xff] %vm292_vm3, %v1267_v50  ;;  %v1749_v63 = vmax.f32 %v1641_v57, %v1689_v59  ;;  %v1553_v0 = vld [vmem:[#allocation2 + $0x1e0] ss:$4 sm:$0xff]  ;;  %v1601_v1 = vld [vmem:[#allocation2 + $0x1e1] ss:$4 sm:$0xff]  ;;  %2033 = vmatprep.mubr.f32.mxu1 %v3721_v51  ;;  %v1269_v11 = vmax.f32 %v1207_v3, 0.0  ;;  %v1222_v12 = vadd.f32 %v3581_v9, %v4056_v54 }
 0x130   : > { %v1649_v2 = vld [vmem:[#allocation2 + $0x1e2] ss:$4 sm:$0xff]  ;;  %v1697_v6 = vld [vmem:[#allocation2 + $0x1e3] ss:$4 sm:$0xff]  ;;  %v1729_v7 = vmax.f32 %v1553_v0, %v1601_v1  ;;  %v1216_v13 = vpop.f32.mrb[39].mxu0  ;;  %1798 = vst.msk [vmem:[#allocation3 + $0x62] sm:$0xff] %vm292_vm3, %v1774_v5 }
 0x131   : > { %v1753_v10 = vmax.f32 %v1649_v2, %v1697_v6  ;;  %v1773_v14 = vmax.f32 %v1725_v60, %v1749_v63  ;;  %1286 = vst.msk [vmem:[#allocation2 + $0x22a] sm:$0xff] %vm292_vm3, %v1270_v8  ;;  %v1217_v15 = vadd.f32 %v4056_v54, %v1216_v13  ;;  %1285 = vst.msk [vmem:[#allocation2 + $0x222] sm:$0xff] %vm292_vm3, %v1269_v11  ;;  %v1272_v17 = vmax.f32 %v1222_v12, 0.0  ;;  %v4274_v11 = vld [vmem:[%s4919_s2] ss:$0 sm:$0xff] }
 0x132   : > { %3306 = vmatmul.mubr.msk.f32.gmra.mrb[50].mxu1 %vm292_vm3, %v1820_v16  ;;  %v3584_v19 = vpop.f32.mrb[40].mxu0  ;;  %v1821_v27 = vld [vmem:[#allocation3 + $0x50] sm:$0xff] }
 0x133   : > { %1797 = vst.msk [vmem:[#allocation3 + $0x5a] sm:$0xff] %vm292_vm3, %v1773_v14  ;;  %v1777_v18 = vmax.f32 %v1729_v7, %v1753_v10  ;;  %v1271_v4 = vmax.f32 %v1217_v15, 0.0  ;;  %2039 = vmatprep.mubr.f32.mxu1 %v3721_v51  ;;  %1288 = vst.msk [vmem:[#allocation2 + $0x23a] sm:$0xff] %vm292_vm3, %v1272_v17  ;;  %v1232_v23 = vadd.f32 %v3584_v19, %v4056_v54  ;;  %v1226_v26 = vpop.f32.mrb[41].mxu0 }
 0x134   : > { %v1227_v30 = vadd.f32 %v4056_v54, %v1226_v26 }
 0x135   : > { %1801 = vst.msk [vmem:[#allocation3 + $0x7a] sm:$0xff] %vm292_vm3, %v1777_v18  ;;  %1287 = vst.msk [vmem:[#allocation2 + $0x232] sm:$0xff] %vm292_vm3, %v1271_v4  ;;  %v1274_v29 = vmax.f32 %v1232_v23, 0.0  ;;  %v1825_v8 = vld [vmem:[#allocation3 + $0x70] sm:$0xff] }
 0x136   : > { %v1555_v20 = vld [vmem:[#allocation2 + $0x200] ss:$4 sm:$0xff]  ;;  %v1603_v21 = vld [vmem:[#allocation2 + $0x201] ss:$4 sm:$0xff]  ;;  %v1651_v22 = vld [vmem:[#allocation2 + $0x202] ss:$4 sm:$0xff]  ;;  %3307 = vmatmul.mubr.msk.f32.gmra.mrb[52].mxu1 %vm292_vm3, %v1821_v27 }
 0x137   : > { %v1699_v24 = vld [vmem:[#allocation2 + $0x203] ss:$4 sm:$0xff]  ;;  %v1730_v25 = vmax.f32 %v1555_v20, %v1603_v21  ;;  %v3587_v31 = vpop.f32.mrb[42].mxu0  ;;  %2045 = vmatprep.mubr.f32.mxu1 %v3721_v51  ;;  %1290 = vst.msk [vmem:[#allocation2 + $0x24a] sm:$0xff] %vm292_vm3, %v1274_v29  ;;  %v1273_v32 = vmax.f32 %v1227_v30, 0.0 }
 0x138   : > { %v1754_v28 = vmax.f32 %v1651_v22, %v1699_v24  ;;  %v1242_v33 = vadd.f32 %v3587_v31, %v4056_v54  ;;  %v1236_v34 = vpop.f32.mrb[43].mxu0  ;;  %v1824_v60 = vld [vmem:[#allocation3 + $0x68] sm:$0xff] }
 0x139   : > { %v1237_v36 = vadd.f32 %v4056_v54, %v1236_v34  ;;  %1289 = vst.msk [vmem:[#allocation2 + $0x242] sm:$0xff] %vm292_vm3, %v1273_v32 }
 0x13a   : > { %v1778_v35 = vmax.f32 %v1730_v25, %v1754_v28  ;;  %v1822_v37 = vld [vmem:[#allocation3 + $0x58] sm:$0xff]  ;;  %v1276_v38 = vmax.f32 %v1242_v33, 0.0  ;;  %v3590_v40 = vpop.f32.mrb[44].mxu0  ;;  %v1823_v48 = vld [vmem:[#allocation3 + $0x60] sm:$0xff] }
 0x13b   : > { %3308 = vmatmul.mubr.msk.f32.gmra.mrb[54].mxu1 %vm292_vm3, %v1822_v37  ;;  %v1275_v39 = vmax.f32 %v1237_v36, 0.0  ;;  %v1252_v44 = vadd.f32 %v3590_v40, %v4056_v54  ;;  %v1246_v47 = vpop.f32.mrb[45].mxu0 }
 0x13c   : > { %1802 = vst.msk [vmem:[#allocation3 + $0x82] sm:$0xff] %vm292_vm3, %v1778_v35  ;;  %2051 = vmatprep.mubr.f32.mxu1 %v3721_v51  ;;  %v1557_v41 = vld [vmem:[#allocation2 + $0x220] ss:$4 sm:$0xff]  ;;  %v1605_v42 = vld [vmem:[#allocation2 + $0x221] ss:$4 sm:$0xff]  ;;  %1292 = vst.msk [vmem:[#allocation2 + $0x25a] sm:$0xff] %vm292_vm3, %v1276_v38  ;;  %v1247_v52 = vadd.f32 %v4056_v54, %v1246_v47 }
 0x13d   : > { %v1653_v43 = vld [vmem:[#allocation2 + $0x222] ss:$4 sm:$0xff]  ;;  %v1701_v45 = vld [vmem:[#allocation2 + $0x223] ss:$4 sm:$0xff]  ;;  %v1731_v46 = vmax.f32 %v1557_v41, %v1605_v42  ;;  %1291 = vst.msk [vmem:[#allocation2 + $0x252] sm:$0xff] %vm292_vm3, %v1275_v39  ;;  %v1278_v50 = vmax.f32 %v1252_v44, 0.0 }
 0x13e   : > { %v1755_v49 = vmax.f32 %v1653_v43, %v1701_v45  ;;  %v3593_v53 = vpop.f32.mrb[46].mxu0  ;;  %v1277_v55 = vmax.f32 %v1247_v52, 0.0  ;;  %v1826_v18 = vld [vmem:[#allocation3 + $0x78] sm:$0xff] }
 0x13f   : > { %3309 = vmatmul.mubr.msk.f32.gmra.mrb[56].mxu1 %vm292_vm3, %v1823_v48  ;;  %1294 = vst.msk [vmem:[#allocation2 + $0x26a] sm:$0xff] %vm292_vm3, %v1278_v50  ;;  %v1262_v56 = vadd.f32 %v3593_v53, %v4056_v54  ;;  %v1256_v57 = vpop.f32.mrb[47].mxu0 }
 0x140   : > { %2057 = vmatprep.mubr.f32.mxu1 %v3721_v51  ;;  %v1779_v58 = vmax.f32 %v1731_v46, %v1755_v49  ;;  %v1257_v59 = vadd.f32 %v4056_v54, %v1256_v57  ;;  %1293 = vst.msk [vmem:[#allocation2 + $0x262] sm:$0xff] %vm292_vm3, %v1277_v55 }
 0x141   : > { %v1280_v61 = vmax.f32 %v1262_v56, 0.0 }
 0x142   : > { %1803 = vst.msk [vmem:[#allocation3 + $0x8a] sm:$0xff] %vm292_vm3, %v1779_v58  ;;  %v1279_v62 = vmax.f32 %v1257_v59, 0.0  ;;  %v3602_v63 = vpop.f32.mrb[48].mxu0 }
 0x143   : > { %3310 = vmatmul.mubr.msk.f32.gmra.mrb[58].mxu1 %vm292_vm3, %v1824_v60  ;;  %1296 = vst.msk [vmem:[#allocation2 + $0x27a] sm:$0xff] %vm292_vm3, %v1280_v61  ;;  %v1431_v3 = vadd.f32 %v3602_v63, %v4056_v54  ;;  %v1425_v7 = vpop.f32.mrb[49].mxu0  ;;  %v1827_v28 = vld [vmem:[#allocation3 + $0x80] sm:$0xff] }
 0x144   : > { %2063 = vmatprep.mubr.f32.mxu1 %v3721_v51  ;;  %v1559_v0 = vld [vmem:[#allocation2 + $0x240] ss:$4 sm:$0xff]  ;;  %v1607_v1 = vld [vmem:[#allocation2 + $0x241] ss:$4 sm:$0xff]  ;;  %v1655_v2 = vld [vmem:[#allocation2 + $0x242] ss:$4 sm:$0xff]  ;;  %v1426_v12 = vadd.f32 %v4274_v11, %v1425_v7 }
 0x145   : > { %v1703_v5 = vld [vmem:[#allocation2 + $0x243] ss:$4 sm:$0xff]  ;;  %v1732_v6 = vmax.f32 %v1559_v0, %v1607_v1  ;;  %1295 = vst.msk [vmem:[#allocation2 + $0x272] sm:$0xff] %vm292_vm3, %v1279_v62  ;;  %v1495_v10 = vmax.f32 %v1431_v3, 0.0 }
 0x146   : > { %v1756_v9 = vmax.f32 %v1655_v2, %v1703_v5  ;;  %v3605_v13 = vpop.f32.mrb[50].mxu0  ;;  %v1494_v54 = vmax.f32 %v1426_v12, 0.0 }
 0x147   : > { %3311 = vmatmul.mubr.msk.f32.gmra.mrb[60].mxu1 %vm292_vm3, %v1825_v8  ;;  %1509 = vst.msk [vmem:[#allocation2 + $0x28a] sm:$0xff] %vm292_vm3, %v1495_v10  ;;  %v1441_v14 = vadd.f32 %v4274_v11, %v3605_v13  ;;  %v1435_v15 = vpop.f32.mrb[51].mxu0 }
 0x148   : > { %2069 = vmatprep.mubr.f32.mxu1 %v3721_v51  ;;  %v1780_v16 = vmax.f32 %v1732_v6, %v1756_v9  ;;  %v1436_v17 = vadd.f32 %v4274_v11, %v1435_v15  ;;  %1508 = vst.msk [vmem:[#allocation2 + $0x282] sm:$0xff] %vm292_vm3, %v1494_v54 }
 0x149   : > { %v1497_v4 = vmax.f32 %v1441_v14, 0.0  ;;  %v1828_v38 = vld [vmem:[#allocation3 + $0x88] sm:$0xff] }
 0x14a   : > { %1804 = vst.msk [vmem:[#allocation3 + $0x92] sm:$0xff] %vm292_vm3, %v1780_v16  ;;  %v1496_v19 = vmax.f32 %v1436_v17, 0.0  ;;  %v3608_v20 = vpop.f32.mrb[52].mxu0 }
 0x14b   : > { %3312 = vmatmul.mubr.msk.f32.gmra.mrb[62].mxu1 %vm292_vm3, %v1826_v18  ;;  %1511 = vst.msk [vmem:[#allocation2 + $0x29a] sm:$0xff] %vm292_vm3, %v1497_v4  ;;  %v1451_v24 = vadd.f32 %v4274_v11, %v3608_v20  ;;  %v1445_v27 = vpop.f32.mrb[53].mxu0 }
 0x14c   : > { %2075 = vmatprep.mubr.f32.mxu1 %v3721_v51  ;;  %v1561_v21 = vld [vmem:[#allocation2 + $0x260] ss:$4 sm:$0xff]  ;;  %v1609_v22 = vld [vmem:[#allocation2 + $0x261] ss:$4 sm:$0xff]  ;;  %v1657_v23 = vld [vmem:[#allocation2 + $0x262] ss:$4 sm:$0xff]  ;;  %v1446_v31 = vadd.f32 %v4274_v11, %v1445_v27 }
 0x14d   : > { %v1705_v25 = vld [vmem:[#allocation2 + $0x263] ss:$4 sm:$0xff]  ;;  %v1733_v26 = vmax.f32 %v1561_v21, %v1609_v22  ;;  %1510 = vst.msk [vmem:[#allocation2 + $0x292] sm:$0xff] %vm292_vm3, %v1496_v19  ;;  %v1499_v30 = vmax.f32 %v1451_v24, 0.0 }
 0x14e   : > { %v1757_v29 = vmax.f32 %v1657_v23, %v1705_v25  ;;  %v3611_v32 = vpop.f32.mrb[54].mxu0  ;;  %v1498_v33 = vmax.f32 %v1446_v31, 0.0 }
 0x14f   : > { %3313 = vmatmul.mubr.msk.f32.gmra.mrb[64].mxu1 %vm292_vm3, %v1827_v28  ;;  %1513 = vst.msk [vmem:[#allocation2 + $0x2aa] sm:$0xff] %vm292_vm3, %v1499_v30  ;;  %v1461_v34 = vadd.f32 %v4274_v11, %v3611_v32  ;;  %v1455_v35 = vpop.f32.mrb[55].mxu0 }
 0x150   : > { %2081 = vmatprep.mubr.f32.mxu1 %v3721_v51  ;;  %v1781_v36 = vmax.f32 %v1733_v26, %v1757_v29  ;;  %v1456_v37 = vadd.f32 %v4274_v11, %v1455_v35  ;;  %1512 = vst.msk [vmem:[#allocation2 + $0x2a2] sm:$0xff] %vm292_vm3, %v1498_v33 }
 0x151   : > { %v1501_v39 = vmax.f32 %v1461_v34, 0.0  ;;  %v1829_v49 = vld [vmem:[#allocation3 + $0x90] sm:$0xff] }
 0x152   : > { %1805 = vst.msk [vmem:[#allocation3 + $0x9a] sm:$0xff] %vm292_vm3, %v1781_v36  ;;  %v1500_v40 = vmax.f32 %v1456_v37, 0.0  ;;  %v3614_v41 = vpop.f32.mrb[56].mxu0 }
 0x153   : > { %3314 = vmatmul.mubr.msk.f32.gmra.mrb[66].mxu1 %vm292_vm3, %v1828_v38  ;;  %1515 = vst.msk [vmem:[#allocation2 + $0x2ba] sm:$0xff] %vm292_vm3, %v1501_v39  ;;  %v1471_v45 = vadd.f32 %v4274_v11, %v3614_v41  ;;  %v1465_v48 = vpop.f32.mrb[57].mxu0 }
 0x154   : > { %2087 = vmatprep.mubr.f32.mxu1 %v3721_v51  ;;  %v1563_v42 = vld [vmem:[#allocation2 + $0x280] ss:$4 sm:$0xff]  ;;  %v1611_v43 = vld [vmem:[#allocation2 + $0x281] ss:$4 sm:$0xff]  ;;  %v1659_v44 = vld [vmem:[#allocation2 + $0x282] ss:$4 sm:$0xff]  ;;  %v1466_v53 = vadd.f32 %v4274_v11, %v1465_v48 }
 0x155   : > { %v1707_v46 = vld [vmem:[#allocation2 + $0x283] ss:$4 sm:$0xff]  ;;  %v1734_v47 = vmax.f32 %v1563_v42, %v1611_v43  ;;  %1514 = vst.msk [vmem:[#allocation2 + $0x2b2] sm:$0xff] %vm292_vm3, %v1500_v40  ;;  %v1503_v52 = vmax.f32 %v1471_v45, 0.0 }
 0x156   : > { %v1758_v50 = vmax.f32 %v1659_v44, %v1707_v46  ;;  %v3617_v55 = vpop.f32.mrb[58].mxu0  ;;  %v1502_v56 = vmax.f32 %v1466_v53, 0.0 }
 0x157   : > { %3315 = vmatmul.mubr.msk.f32.gmra.mrb[68].mxu1 %vm292_vm3, %v1829_v49  ;;  %1517 = vst.msk [vmem:[#allocation2 + $0x2ca] sm:$0xff] %vm292_vm3, %v1503_v52  ;;  %v1481_v57 = vadd.f32 %v4274_v11, %v3617_v55  ;;  %v1475_v58 = vpop.f32.mrb[59].mxu0 }
 0x158   : > { %2093 = vmatprep.mubr.f32.mxu1 %v3721_v51  ;;  %v1782_v59 = vmax.f32 %v1734_v47, %v1758_v50  ;;  %v1476_v60 = vadd.f32 %v4274_v11, %v1475_v58  ;;  %1516 = vst.msk [vmem:[#allocation2 + $0x2c2] sm:$0xff] %vm292_vm3, %v1502_v56 }
 0x159   : > { %v1830_v61 = vld [vmem:[#allocation3 + $0x98] sm:$0xff]  ;;  %v1505_v62 = vmax.f32 %v1481_v57, 0.0 }
 0x15a   : > { %1806 = vst.msk [vmem:[#allocation3 + $0xa2] sm:$0xff] %vm292_vm3, %v1782_v59  ;;  %v1504_v63 = vmax.f32 %v1476_v60, 0.0  ;;  %v3620_v0 = vpop.f32.mrb[60].mxu0 }
 0x15b   : > { %3316 = vmatmul.mubr.msk.f32.gmra.mrb[70].mxu1 %vm292_vm3, %v1830_v61  ;;  %1519 = vst.msk [vmem:[#allocation2 + $0x2da] sm:$0xff] %vm292_vm3, %v1505_v62  ;;  %v1491_v5 = vadd.f32 %v4274_v11, %v3620_v0  ;;  %v1485_v8 = vpop.f32.mrb[61].mxu0 }
 0x15c   : > { %2099 = vmatprep.mubr.f32.mxu1 %v3721_v51  ;;  %v1565_v1 = vld [vmem:[#allocation2 + $0x2a0] ss:$4 sm:$0xff]  ;;  %v1613_v2 = vld [vmem:[#allocation2 + $0x2a1] ss:$4 sm:$0xff]  ;;  %v1661_v3 = vld [vmem:[#allocation2 + $0x2a2] ss:$4 sm:$0xff]  ;;  %v1486_v12 = vadd.f32 %v4274_v11, %v1485_v8 }
 0x15d   : > { %v1709_v6 = vld [vmem:[#allocation2 + $0x2a3] ss:$4 sm:$0xff]  ;;  %v1735_v7 = vmax.f32 %v1565_v1, %v1613_v2  ;;  %1518 = vst.msk [vmem:[#allocation2 + $0x2d2] sm:$0xff] %vm292_vm3, %v1504_v63  ;;  %v1507_v10 = vmax.f32 %v1491_v5, 0.0 }
 0x15e   : > { %v1759_v9 = vmax.f32 %v1661_v3, %v1709_v6  ;;  %v1506_v13 = vmax.f32 %v1486_v12, 0.0 }
 0x15f   : > { %1522 = vst.msk [vmem:[#allocation2 + $0x2ea] sm:$0x3f] %vm1521_vm4, %v1507_v10 }
 0x160   : > { %v1783_v54 = vmax.f32 %v1735_v7, %v1759_v9  ;;  %1520 = vst.msk [vmem:[#allocation2 + $0x2e2] sm:$0xff] %vm292_vm3, %v1506_v13 }
 0x161   : > { %v1831_v14 = vld [vmem:[#allocation3 + $0xa0] sm:$0xff] }
 0x162   : > { %3317 = vmatmul.mubr.msk.f32.gmra.mrb[72].mxu1 %vm292_vm3, %v1831_v14  ;;  %1807 = vst.msk [vmem:[#allocation3 + $0xaa] sm:$0xff] %vm292_vm3, %v1783_v54 }
 0x163   : > { %2105 = vmatprep.mubr.f32.mxu1 %v3721_v51 }
 0x164   : > { %v1567_v15 = vld [vmem:[#allocation2 + $0x2c0] ss:$4 sm:$0xff]  ;;  %v1615_v16 = vld [vmem:[#allocation2 + $0x2c1] ss:$4 sm:$0xff]  ;;  %v1663_v17 = vld [vmem:[#allocation2 + $0x2c2] ss:$4 sm:$0xff] }
 0x165   : > { %v1711_v18 = vld [vmem:[#allocation2 + $0x2c3] ss:$4 sm:$0xff]  ;;  %v1736_v4 = vmax.f32 %v1567_v15, %v1615_v16 }
 0x166   : > { %v1760_v19 = vmax.f32 %v1663_v17, %v1711_v18 }
 0x167   : > { %v1569_v11 = vld [vmem:[#allocation2 + $0x2e0] ss:$4 sm:$0xf]  ;;  %v1617_v21 = vld [vmem:[#allocation2 + $0x2e1] ss:$4 sm:$0xf] }
 0x168   : > { %v1784_v20 = vmax.f32 %v1736_v4, %v1760_v19  ;;  %v1665_v22 = vld [vmem:[#allocation2 + $0x2e2] ss:$4 sm:$0xf]  ;;  %v1713_v23 = vld [vmem:[#allocation2 + $0x2e3] ss:$4 sm:$0xf]  ;;  %v1737_v24 = vmax.f32 %v1569_v11, %v1617_v21 }
 0x169   : > { %v1761_v25 = vmax.f32 %v1665_v22, %v1713_v23  ;;  %v1832_v26 = vld [vmem:[#allocation3 + $0xa8] sm:$0xff] }
 0x16a   : > { %1808 = vst.msk [vmem:[#allocation3 + $0xb2] sm:$0xff] %vm292_vm3, %v1784_v20  ;;  %3318 = vmatmul.mubr.msk.f32.gmra.mrb[74].mxu1 %vm292_vm3, %v1832_v26 }
 0x16b   : > { %2111 = vmatprep.mubr.f32.mxu1 %v3721_v51  ;;  %v1785_v27 = vmax.f32 %v1737_v24, %v1761_v25 }
 0x16d   : > { %1810 = vst.msk [vmem:[#allocation3 + $0xba] sm:$0xf] %vm1809_vm5, %v1785_v27 }
 0x171   : > { %v1833_v28 = vld [vmem:[#allocation3 + $0xb0] sm:$0xff] }
 0x172   : > { %3319 = vmatmul.mubr.msk.f32.gmra.mrb[76].mxu1 %vm292_vm3, %v1833_v28 }
 0x173   : > { %2117 = vmatprep.mubr.f32.mxu1 %v3721_v51 }
 0x174   : > { %v1834_v29 = vld [vmem:[#allocation3 + $0xb8] sm:$0xff] }
 0x176   : > { %3320 = vmatmul.mubr.msk.f32.gmra.mrb[78].mxu1 %vm292_vm3, %v1834_v29 }
 0x1d4   : > { %v4327_v30 = vpop.f32.mrb[32].mxu1 }
 0x1d5   : > { %v1983_v31 = vpop.f32.mrb[33].mxu1  ;;  %v2149_v33 = vrot.slane %v4327_v30, 1 }
 0x1d6   : > { %v2484_v36 = vrot.slane %v1983_v31, 4 }
 0x1de   : > { %v4329_v32 = vpop.f32.mrb[34].mxu1 }
 0x1df   : > { %v2150_v34 = vrot.slane %v4329_v32, 1  ;;  %v1989_v35 = vpop.f32.mrb[35].mxu1 }
 0x1e0   : > { %v2485_v37 = vrot.slane %v1989_v35, 4 }
 0x1e1   : > { %v2151_v38 = vsel %vm2148_vm6, %v2149_v33, %v2150_v34 }
 0x1e2   : > { %2196 = vrot.lane.b32.xlu0 %v2151_v38, %s3722_s10  ;;  %v4336_v39 = vsel %vm127_vm1, %v2484_v36, %v2485_v37 }
 0x1e5   : > { %v4338_v40 = vpop.f32.mrb[36].mxu1 }
 0x1e6   : > { %v2152_v41 = vrot.slane %v4338_v40, 1  ;;  %v1995_v42 = vpop.f32.mrb[37].mxu1 }
 0x1e7   : > { %v2487_v43 = vrot.slane %v1995_v42, 4 }
 0x1e8   : > { %v2153_v44 = vsel %vm2148_vm6, %v2150_v34, %v2152_v41 }
 0x1e9   : > { %2198 = vrot.lane.b32.xlu0 %v2153_v44, %s3722_s10  ;;  %v4344_v45 = vsel %vm127_vm1, %v2485_v37, %v2487_v43 }
 0x1ed   : > { %v4346_v46 = vpop.f32.mrb[38].mxu1 }
 0x1ee   : > { %v2154_v47 = vrot.slane %v4346_v46, 1  ;;  %v2001_v48 = vpop.f32.mrb[39].mxu1 }
 0x1ef   : > { %v2489_v49 = vrot.slane %v2001_v48, 4 }
 0x1f0   : > { %v2155_v50 = vsel %vm2148_vm6, %v2152_v41, %v2154_v47 }
 0x1f1   : > { %2200 = vrot.lane.b32.xlu1 %v2155_v50, %s3722_s10  ;;  %v4351_v52 = vpop.f32.mrb[40].mxu1  ;;  %v4354_v53 = vsel %vm127_vm1, %v2487_v43, %v2489_v49 }
 0x1f2   : > { %v2156_v55 = vrot.slane %v4351_v52, 1  ;;  %v2007_v56 = vpop.f32.mrb[41].mxu1 }
 0x1f3   : > { %v2491_v57 = vrot.slane %v2007_v56, 4 }
 0x1f4   : > { %v2157_v58 = vsel %vm2148_vm6, %v2154_v47, %v2156_v55 }
 0x1f5   : > { %2202 = vrot.lane.b32.xlu1 %v2157_v58, %s3722_s10  ;;  %v4359_v59 = vpop.f32.mrb[42].mxu1  ;;  %v4362_v60 = vsel %vm127_vm1, %v2489_v49, %v2491_v57 }
 0x1f6   : > { %v2158_v61 = vrot.slane %v4359_v59, 1  ;;  %v2013_v62 = vpop.f32.mrb[43].mxu1 }
 0x1f7   : > { %v2493_v63 = vrot.slane %v2013_v62, 4 }
 0x1f8   : > { %v2159_v0 = vsel %vm2148_vm6, %v2156_v55, %v2158_v61 }
 0x1f9   : > { %2204 = vrot.lane.b32.xlu0 %v2159_v0, %s3722_s10  ;;  %v4367_v1 = vpop.f32.mrb[44].mxu1  ;;  %v4370_v2 = vsel %vm127_vm1, %v2491_v57, %v2493_v63 }
 0x1fa   : > { %v2160_v3 = vrot.slane %v4367_v1, 1  ;;  %v2019_v5 = vpop.f32.mrb[45].mxu1 }
 0x1fb   : > { %v2495_v6 = vrot.slane %v2019_v5, 4 }
 0x1fc   : > { %v2161_v7 = vsel %vm2148_vm6, %v2158_v61, %v2160_v3 }
 0x1fd   : > { %2206 = vrot.lane.b32.xlu1 %v2161_v7, %s3722_s10  ;;  %v4375_v8 = vpop.f32.mrb[46].mxu1  ;;  %v4378_v9 = vsel %vm127_vm1, %v2493_v63, %v2495_v6 }
 0x1fe   : > { %v2162_v10 = vrot.slane %v4375_v8, 1  ;;  %v2025_v12 = vpop.f32.mrb[47].mxu1 }
 0x1ff   : > { %v2497_v13 = vrot.slane %v2025_v12, 4 }
 0x200   : > { %v2163_v54 = vsel %vm2148_vm6, %v2160_v3, %v2162_v10 }
 0x201   : > { %2208 = vrot.lane.b32.xlu0 %v2163_v54, %s3722_s10  ;;  %v4383_v14 = vpop.f32.mrb[48].mxu1  ;;  %v4386_v15 = vsel %vm127_vm1, %v2495_v6, %v2497_v13 }
 0x202   : > { %v2164_v16 = vrot.slane %v4383_v14, 1  ;;  %v2031_v17 = vpop.f32.mrb[49].mxu1 }
 0x203   : > { %v2499_v18 = vrot.slane %v2031_v17, 4 }
 0x204   : > { %v2165_v4 = vsel %vm2148_vm6, %v2162_v10, %v2164_v16 }
 0x205   : > { %2210 = vrot.lane.b32.xlu1 %v2165_v4, %s3722_s10  ;;  %v4391_v19 = vpop.f32.mrb[50].mxu1  ;;  %v4394_v20 = vsel %vm127_vm1, %v2497_v13, %v2499_v18 }
 0x206   : > { %v2166_v11 = vrot.slane %v4391_v19, 1  ;;  %v2037_v21 = vpop.f32.mrb[51].mxu1 }
 0x207   : > { %v2501_v22 = vrot.slane %v2037_v21, 4 }
 0x208   : > { %v2167_v23 = vsel %vm2148_vm6, %v2164_v16, %v2166_v11 }
 0x209   : > { %2212 = vrot.lane.b32.xlu0 %v2167_v23, %s3722_s10  ;;  %v4399_v24 = vpop.f32.mrb[52].mxu1  ;;  %v4402_v25 = vsel %vm127_vm1, %v2499_v18, %v2501_v22 }
 0x20a   : > { %v2168_v26 = vrot.slane %v4399_v24, 1  ;;  %v2043_v27 = vpop.f32.mrb[53].mxu1 }
 0x20b   : > { %v2503_v28 = vrot.slane %v2043_v27, 4 }
 0x20c   : > { %v2169_v29 = vsel %vm2148_vm6, %v2166_v11, %v2168_v26 }
 0x20d   : > { %2214 = vrot.lane.b32.xlu1 %v2169_v29, %s3722_s10  ;;  %v4410_v33 = vsel %vm127_vm1, %v2501_v22, %v2503_v28 }
 0x20e   : > { %v4407_v31 = vpop.f32.mrb[54].mxu1 }
 0x20f   : > { %v2170_v34 = vrot.slane %v4407_v31, 1  ;;  %v2049_v35 = vpop.f32.mrb[55].mxu1 }
 0x210   : > { %v2505_v36 = vrot.slane %v2049_v35, 4 }
 0x211   : > { %v2171_v37 = vsel %vm2148_vm6, %v2168_v26, %v2170_v34 }
 0x212   : > { %2216 = vrot.lane.b32.xlu0 %v2171_v37, %s3722_s10  ;;  %v4415_v38 = vpop.f32.mrb[56].mxu1  ;;  %v4418_v41 = vsel %vm127_vm1, %v2503_v28, %v2505_v36 }
 0x213   : > { %v2172_v42 = vrot.slane %v4415_v38, 1  ;;  %v2055_v43 = vpop.f32.mrb[57].mxu1 }
 0x214   : > { %v2507_v44 = vrot.slane %v2055_v43, 4 }
 0x215   : > { %v2173_v47 = vsel %vm2148_vm6, %v2170_v34, %v2172_v42 }
 0x216   : > { %2218 = vrot.lane.b32.xlu1 %v2173_v47, %s3722_s10  ;;  %v4423_v48 = vpop.f32.mrb[58].mxu1  ;;  %v4426_v49 = vsel %vm127_vm1, %v2505_v36, %v2507_v44 }
 0x217   : > { %v2174_v50 = vrot.slane %v4423_v48, 1  ;;  %v2061_v55 = vpop.f32.mrb[59].mxu1 }
 0x218   : > { %v2509_v56 = vrot.slane %v2061_v55, 4 }
 0x219   : > { %v2175_v57 = vsel %vm2148_vm6, %v2172_v42, %v2174_v50 }
 0x21a   : > { %2220 = vrot.lane.b32.xlu0 %v2175_v57, %s3722_s10  ;;  %v4431_v58 = vpop.f32.mrb[60].mxu1  ;;  %v4434_v61 = vsel %vm127_vm1, %v2507_v44, %v2509_v56 }
 0x21b   : > { %v2176_v62 = vrot.slane %v4431_v58, 1  ;;  %v2067_v63 = vpop.f32.mrb[61].mxu1 }
 0x21c   : > { %v2511_v0 = vrot.slane %v2067_v63, 4 }
 0x21d   : > { %v2177_v3 = vsel %vm2148_vm6, %v2174_v50, %v2176_v62 }
 0x21e   : > { %2222 = vrot.lane.b32.xlu1 %v2177_v3, %s3722_s10  ;;  %v4439_v5 = vpop.f32.mrb[62].mxu1  ;;  %v4442_v6 = vsel %vm127_vm1, %v2509_v56, %v2511_v0 }
 0x21f   : > { %v2178_v7 = vrot.slane %v4439_v5, 1  ;;  %v2073_v10 = vpop.f32.mrb[63].mxu1 }
 0x220   : > { %v2513_v12 = vrot.slane %v2073_v10, 4 }
 0x221   : > { %v2179_v13 = vsel %vm2148_vm6, %v2176_v62, %v2178_v7 }
 0x222   : > { %2224 = vrot.lane.b32.xlu0 %v2179_v13, %s3722_s10  ;;  %v4447_v54 = vpop.f32.mrb[64].mxu1  ;;  %v4450_v16 = vsel %vm127_vm1, %v2511_v0, %v2513_v12 }
 0x223   : > { %v2180_v17 = vrot.slane %v4447_v54, 1  ;;  %v2079_v18 = vpop.f32.mrb[65].mxu1 }
 0x224   : > { %v2515_v4 = vrot.slane %v2079_v18, 4 }
 0x225   : > { %v2181_v11 = vsel %vm2148_vm6, %v2178_v7, %v2180_v17 }
 0x226   : > { %2226 = vrot.lane.b32.xlu1 %v2181_v11, %s3722_s10  ;;  %v4455_v21 = vpop.f32.mrb[66].mxu1  ;;  %v4458_v22 = vsel %vm127_vm1, %v2513_v12, %v2515_v4 }
 0x227   : > { %v2182_v23 = vrot.slane %v4455_v21, 1  ;;  %v2085_v26 = vpop.f32.mrb[67].mxu1 }
 0x228   : > { %v2517_v27 = vrot.slane %v2085_v26, 4 }
 0x229   : > { %v2183_v28 = vsel %vm2148_vm6, %v2180_v17, %v2182_v23 }
 0x22a   : > { %2228 = vrot.lane.b32.xlu0 %v2183_v28, %s3722_s10  ;;  %v4463_v29 = vpop.f32.mrb[68].mxu1  ;;  %v4466_v34 = vsel %vm127_vm1, %v2515_v4, %v2517_v27 }
 0x22b   : > { %v2184_v35 = vrot.slane %v4463_v29, 1  ;;  %v2091_v36 = vpop.f32.mrb[69].mxu1 }
 0x22c   : > { %v2519_v37 = vrot.slane %v2091_v36, 4 }
 0x22d   : > { %v2185_v42 = vsel %vm2148_vm6, %v2182_v23, %v2184_v35 }
 0x22e   : > { %2230 = vrot.lane.b32.xlu1 %v2185_v42, %s3722_s10  ;;  %v4471_v43 = vpop.f32.mrb[70].mxu1  ;;  %v4474_v44 = vsel %vm127_vm1, %v2517_v27, %v2519_v37 }
 0x22f   : > { %v2186_v47 = vrot.slane %v4471_v43, 1  ;;  %v2097_v50 = vpop.f32.mrb[71].mxu1 }
 0x230   : > { %v2521_v55 = vrot.slane %v2097_v50, 4 }
 0x231   : > { %v2187_v56 = vsel %vm2148_vm6, %v2184_v35, %v2186_v47 }
 0x232   : > { %2232 = vrot.lane.b32.xlu0 %v2187_v56, %s3722_s10  ;;  %v4480_v57 = vsel %vm127_vm1, %v2519_v37, %v2521_v55 }
 0x235   : > { %v4482_v62 = vpop.f32.mrb[72].mxu1 }
 0x236   : > { %v2188_v63 = vrot.slane %v4482_v62, 1  ;;  %v2103_v0 = vpop.f32.mrb[73].mxu1 }
 0x237   : > { %v2523_v3 = vrot.slane %v2103_v0, 4 }
 0x238   : > { %v2189_v7 = vsel %vm2148_vm6, %v2186_v47, %v2188_v63 }
 0x239   : > { %2234 = vrot.lane.b32.xlu1 %v2189_v7, %s3722_s10  ;;  %v4488_v10 = vsel %vm127_vm1, %v2521_v55, %v2523_v3 }
 0x23d   : > { %v4490_v12 = vpop.f32.mrb[74].mxu1 }
 0x23e   : > { %v2190_v13 = vrot.slane %v4490_v12, 1  ;;  %v2109_v17 = vpop.f32.mrb[75].mxu1 }
 0x23f   : > { %v2525_v18 = vrot.slane %v2109_v17, 4 }
 0x240   : > { %v2191_v4 = vsel %vm2148_vm6, %v2188_v63, %v2190_v13 }
 0x241   : > { %2236 = vrot.lane.b32.xlu0 %v2191_v4, %s3722_s10  ;;  %v4496_v11 = vsel %vm127_vm1, %v2523_v3, %v2525_v18 }
 0x245   : > { %v4498_v23 = vpop.f32.mrb[76].mxu1 }
 0x246   : > { %v2192_v26 = vrot.slane %v4498_v23, 1  ;;  %v2115_v27 = vpop.f32.mrb[77].mxu1 }
 0x247   : > { %v2527_v28 = vrot.slane %v2115_v27, 4 }
 0x248   : > { %v2193_v35 = vsel %vm2148_vm6, %v2190_v13, %v2192_v26 }
 0x249   : > { %2238 = vrot.lane.b32.xlu1 %v2193_v35, %s3722_s10  ;;  %v4504_v36 = vsel %vm127_vm1, %v2525_v18, %v2527_v28  ;;  %v4506_v37 = vpop.f32.mrb[78].mxu1 }
 0x24a   : > { %v2194_v42 = vrot.slane %v4506_v37, 1  ;;  %v4509_v47 = vpop.f32.mrb[79].mxu1 }
 0x24b   : > { %v2529_v50 = vrot.slane %v4509_v47, 4 }
 0x24c   : > { %v2195_v55 = vsel %vm2148_vm6, %v2192_v26, %v2194_v42 }
 0x24d   : > { %2242 = vrot.lane.b32.xlu1 %v2194_v42, %s3722_s10  ;;  %2240 = vrot.lane.b32.xlu0 %v2195_v55, %s3722_s10  ;;  %v4518_v56 = vsel %vm127_vm1, %v2527_v28, %v2529_v50 }
 0x254   : > { %v2197_v63 = vpop.permute.xlu0 %2196 }
 0x255   : > { %v4521_v0 = vadd.f32 %v2197_v63, %v4327_v30 }
 0x257   : > { %v2317_v13 = vrot.slane %v4521_v0, 2 }
 0x25b   : > { %v2199_v3 = vpop.permute.xlu0 %2198 }
 0x25c   : > { %v4524_v7 = vadd.f32 %v2199_v3, %v4329_v32 }
 0x25e   : > { %v2318_v17 = vrot.slane %v4524_v7, 2 }
 0x260   : > { %v2319_v18 = vsel %vm2316_vm7, %v2317_v13, %v2318_v17 }
 0x261   : > { %2364 = vrot.lane.b32.xlu0 %v2319_v18, %s3723_s11 }
 0x263   : > { %v2201_v4 = vpop.permute.xlu1 %2200 }
 0x264   : > { %v4531_v26 = vadd.f32 %v2201_v4, %v4338_v40 }
 0x266   : > { %v2320_v30 = vrot.slane %v4531_v26, 2 }
 0x267   : > { %v2203_v27 = vpop.permute.xlu1 %2202 }
 0x268   : > { %v4535_v32 = vadd.f32 %v2203_v27, %v4346_v46  ;;  %v2321_v28 = vsel %vm2316_vm7, %v2318_v17, %v2320_v30 }
 0x269   : > { %2366 = vrot.lane.b32.xlu1 %v2321_v28, %s3723_s11  ;;  %v2739_v28 = vld [vmem:[%s4922_s5 + $0x18] sm:$0xff] }
 0x26a   : > { %v2322_v35 = vrot.slane %v4535_v32, 2 }
 0x26b   : > { %v2205_v42 = vpop.permute.xlu0 %2204 }
 0x26c   : > { %v4541_v55 = vadd.f32 %v2205_v42, %v4351_v52  ;;  %v2323_v63 = vsel %vm2316_vm7, %v2320_v30, %v2322_v35 }
 0x26d   : > { %2368 = vrot.lane.b32.xlu0 %v2323_v63, %s3723_s11  ;;  %v2736_v63 = vld [vmem:[%s4922_s5] sm:$0xff] }
 0x26e   : > { %v2324_v40 = vrot.slane %v4541_v55, 2 }
 0x26f   : > { %v2207_v3 = vpop.permute.xlu1 %2206 }
 0x270   : > { %v4547_v46 = vadd.f32 %v2207_v3, %v4359_v59  ;;  %v2325_v13 = vsel %vm2316_vm7, %v2322_v35, %v2324_v40  ;;  %v2737_v59 = vld [vmem:[%s4922_s5 + $0x8] sm:$0xff] }
 0x271   : > { %2370 = vrot.lane.b32.xlu1 %v2325_v13, %s3723_s11  ;;  %v3653_v42 = vpack.c.bf16 %v2739_v28, %v2737_v59  ;;  %v2740_v28 = vld [vmem:[%s4922_s5 + $0x20] sm:$0xff] }
 0x272   : > { %v2326_v17 = vrot.slane %v4547_v46, 2 }
 0x273   : > { %v2209_v18 = vpop.permute.xlu0 %2208  ;;  %3654 = vmatprep.subr.bf16.mxu0 %v3653_v42 }
 0x274   : > { %v4553_v52 = vadd.f32 %v2209_v18, %v4367_v1  ;;  %v2327_v4 = vsel %vm2316_vm7, %v2324_v40, %v2326_v17  ;;  %v2738_v40 = vld [vmem:[%s4922_s5 + $0x10] sm:$0xff] }
 0x275   : > { %2372 = vrot.lane.b32.xlu0 %v2327_v4, %s3723_s11  ;;  %v3655_v3 = vpack.c.bf16 %v2738_v40, %v2736_v63 }
 0x276   : > { %v2328_v30 = vrot.slane %v4553_v52, 2 }
 0x277   : > { %v2211_v27 = vpop.permute.xlu1 %2210  ;;  %3656 = vmatpush1.bf16.msra.mxu0 %v3655_v3 }
 0x278   : > { %v4565_v35 = vadd.f32 %v2211_v27, %v4375_v8  ;;  %v2329_v1 = vsel %vm2316_vm7, %v2326_v17, %v2328_v30  ;;  %v2741_v8 = vld [vmem:[%s4922_s5 + $0x28] sm:$0xff]  ;;  %v2743_v17 = vld [vmem:[%s4922_s5 + $0x38] sm:$0xff] }
 0x279   : > { %2374 = vrot.lane.b32.xlu1 %v2329_v1, %s3723_s11  ;;  %v3657_v59 = vpack.c.bf16 %v2743_v17, %v2741_v8  ;;  %v2742_v1 = vld [vmem:[%s4922_s5 + $0x30] sm:$0xff] }
 0x27a   : > { %v2330_v13 = vrot.slane %v4565_v35, 2  ;;  %v3659_v42 = vpack.c.bf16 %v2742_v1, %v2740_v28 }
 0x27b   : > { %v2213_v18 = vpop.permute.xlu0 %2212  ;;  %3658 = vmatprep.subr.bf16.mxu0 %v3657_v59 }
 0x27c   : > { %v4583_v4 = vadd.f32 %v2213_v18, %v4383_v14  ;;  %v2331_v27 = vsel %vm2316_vm7, %v2328_v30, %v2330_v13  ;;  %3660 = vmatpush1.bf16.msra.mxu0 %v3659_v42 }
 0x27d   : > { %2376 = vrot.lane.b32.xlu0 %v2331_v27, %s3723_s11 }
 0x27e   : > { %v2332_v63 = vrot.slane %v4583_v4, 2 }
 0x27f   : > { %v2215_v40 = vpop.permute.xlu1 %2214 }
 0x280   : > { %v4595_v14 = vadd.f32 %v2215_v40, %v4391_v19  ;;  %v2333_v30 = vsel %vm2316_vm7, %v2330_v13, %v2332_v63 }
 0x281   : > { %2378 = vrot.lane.b32.xlu1 %v2333_v30, %s3723_s11 }
 0x282   : > { %v2334_v3 = vrot.slane %v4595_v14, 2 }
 0x284   : > { %v2217_v18 = vpop.permute.xlu0 %2216  ;;  %v2335_v17 = vsel %vm2316_vm7, %v2332_v63, %v2334_v3 }
 0x285   : > { %v4601_v8 = vadd.f32 %v2217_v18, %v4399_v24  ;;  %2380 = vrot.lane.b32.xlu0 %v2335_v17, %s3723_s11 }
 0x287   : > { %v2336_v27 = vrot.slane %v4601_v8, 2 }
 0x288   : > { %v2219_v59 = vpop.permute.xlu1 %2218 }
 0x289   : > { %v4607_v19 = vadd.f32 %v2219_v59, %v4407_v31  ;;  %v2337_v13 = vsel %vm2316_vm7, %v2334_v3, %v2336_v27 }
 0x28a   : > { %2382 = vrot.lane.b32.xlu1 %v2337_v13, %s3723_s11 }
 0x28b   : > { %v2338_v28 = vrot.slane %v4607_v19, 2 }
 0x28c   : > { %v2221_v1 = vpop.permute.xlu0 %2220 }
 0x28d   : > { %v4613_v24 = vadd.f32 %v2221_v1, %v4415_v38  ;;  %v2339_v42 = vsel %vm2316_vm7, %v2336_v27, %v2338_v28 }
 0x28e   : > { %2384 = vrot.lane.b32.xlu0 %v2339_v42, %s3723_s11 }
 0x28f   : > { %v2340_v63 = vrot.slane %v4613_v24, 2 }
 0x290   : > { %v2223_v40 = vpop.permute.xlu1 %2222 }
 0x291   : > { %v4619_v31 = vadd.f32 %v2223_v40, %v4423_v48  ;;  %v2341_v30 = vsel %vm2316_vm7, %v2338_v28, %v2340_v63 }
 0x292   : > { %2386 = vrot.lane.b32.xlu1 %v2341_v30, %s3723_s11 }
 0x293   : > { %v2342_v3 = vrot.slane %v4619_v31, 2 }
 0x294   : > { %v2225_v18 = vpop.permute.xlu0 %2224 }
 0x295   : > { %v4625_v38 = vadd.f32 %v2225_v18, %v4431_v58  ;;  %v2343_v17 = vsel %vm2316_vm7, %v2340_v63, %v2342_v3 }
 0x296   : > { %2388 = vrot.lane.b32.xlu0 %v2343_v17, %s3723_s11 }
 0x297   : > { %v2344_v27 = vrot.slane %v4625_v38, 2 }
 0x298   : > { %v2227_v59 = vpop.permute.xlu1 %2226 }
 0x299   : > { %v4631_v48 = vadd.f32 %v2227_v59, %v4439_v5  ;;  %v2345_v13 = vsel %vm2316_vm7, %v2342_v3, %v2344_v27 }
 0x29a   : > { %2390 = vrot.lane.b32.xlu1 %v2345_v13, %s3723_s11 }
 0x29b   : > { %v2346_v28 = vrot.slane %v4631_v48, 2 }
 0x29c   : > { %v2229_v1 = vpop.permute.xlu0 %2228 }
 0x29d   : > { %v4637_v58 = vadd.f32 %v2229_v1, %v4447_v54  ;;  %v2347_v42 = vsel %vm2316_vm7, %v2344_v27, %v2346_v28 }
 0x29e   : > { %2392 = vrot.lane.b32.xlu0 %v2347_v42, %s3723_s11 }
 0x29f   : > { %v2348_v63 = vrot.slane %v4637_v58, 2 }
 0x2a0   : > { %v2231_v40 = vpop.permute.xlu1 %2230 }
 0x2a1   : > { %v4643_v5 = vadd.f32 %v2231_v40, %v4455_v21  ;;  %v2349_v30 = vsel %vm2316_vm7, %v2346_v28, %v2348_v63 }
 0x2a2   : > { %2394 = vrot.lane.b32.xlu1 %v2349_v30, %s3723_s11 }
 0x2a3   : > { %v2350_v3 = vrot.slane %v4643_v5, 2 }
 0x2a4   : > { %v2233_v18 = vpop.permute.xlu0 %2232 }
 0x2a5   : > { %v4649_v54 = vadd.f32 %v2233_v18, %v4463_v29  ;;  %v2351_v17 = vsel %vm2316_vm7, %v2348_v63, %v2350_v3 }
 0x2a6   : > { %2396 = vrot.lane.b32.xlu0 %v2351_v17, %s3723_s11 }
 0x2a7   : > { %v2352_v27 = vrot.slane %v4649_v54, 2 }
 0x2a9   : > { %v2353_v59 = vsel %vm2316_vm7, %v2350_v3, %v2352_v27 }
 0x2aa   : > { %2398 = vrot.lane.b32.xlu1 %v2353_v59, %s3723_s11 }
 0x2ab   : > { %v2235_v21 = vpop.permute.xlu1 %2234 }
 0x2ac   : > { %v4657_v13 = vadd.f32 %v2235_v21, %v4471_v43 }
 0x2ae   : > { %v2354_v28 = vrot.slane %v4657_v13, 2 }
 0x2b0   : > { %v2355_v1 = vsel %vm2316_vm7, %v2352_v27, %v2354_v28 }
 0x2b1   : > { %2400 = vrot.lane.b32.xlu0 %v2355_v1, %s3723_s11 }
 0x2b3   : > { %v2237_v29 = vpop.permute.xlu0 %2236 }
 0x2b4   : > { %v4663_v42 = vadd.f32 %v2237_v29, %v4482_v62  ;;  %v4691_v29 = vld [vmem:[%s4921_s4] ss:$0 sm:$0xff] }
 0x2b6   : > { %v2356_v63 = vrot.slane %v4663_v42, 2 }
 0x2b8   : > { %v2357_v40 = vsel %vm2316_vm7, %v2354_v28, %v2356_v63 }
 0x2b9   : > { %2402 = vrot.lane.b32.xlu1 %v2357_v40, %s3723_s11 }
 0x2bb   : > { %v2239_v30 = vpop.permute.xlu1 %2238 }
 0x2bc   : > { %v4669_v43 = vadd.f32 %v2239_v30, %v4490_v12 }
 0x2be   : > { %v2358_v3 = vrot.slane %v4669_v43, 2 }
 0x2bf   : > { %v2243_v18 = vpop.permute.xlu1 %2242  ;;  %v2241_v27 = vpop.permute.xlu0 %2240 }
 0x2c0   : > { %v4673_v17 = vadd.f32 %v2243_v18, %v4506_v37  ;;  %v2359_v62 = vsel %vm2316_vm7, %v2356_v63, %v2358_v3  ;;  %v4677_v59 = vadd.f32 %v2241_v27, %v4498_v23 }
 0x2c1   : > { %2404 = vrot.lane.b32.xlu0 %v2359_v62, %s3723_s11 }
 0x2c2   : > { %v2362_v21 = vrot.slane %v4673_v17, 2  ;;  %v2360_v28 = vrot.slane %v4677_v59, 2 }
 0x2c4   : > { %v2363_v12 = vsel %vm2316_vm7, %v2360_v28, %v2362_v21  ;;  %v2361_v1 = vsel %vm2316_vm7, %v2358_v3, %v2360_v28 }
 0x2c5   : > { %2408 = vrot.lane.b32.xlu0 %v2363_v12, %s3723_s11  ;;  %2406 = vrot.lane.b32.xlu1 %v2361_v1, %s3723_s11 }
 0x2c9   : > { %2410 = vrot.lane.b32.xlu1 %v2362_v21, %s3723_s11 }
 0x2d3   : > { %v2365_v37 = vpop.permute.xlu0 %2364 }
 0x2d4   : > { %v2436_v23 = vadd.f32 %v2365_v37, %v4521_v0 }
 0x2d6   : > { %v2555_v63 = vadd.f32 %v4336_v39, %v2436_v23 }
 0x2d8   : > { %v2586_v40 = vadd.f32 %v4691_v29, %v2555_v63 }
 0x2da   : > { %v2610_v30 = vmax.f32 %v2586_v40, 0.0 }
 0x2db   : > { %v2367_v3 = vpop.permute.xlu1 %2366 }
 0x2dc   : > { %2634 = vst.msk [vmem:[#allocation4 + $0x2] sm:$0xff] %vm292_vm3, %v2610_v30  ;;  %v2437_v18 = vadd.f32 %v2367_v3, %v4524_v7 }
 0x2de   : > { %v2556_v27 = vadd.f32 %v4344_v45, %v2437_v18 }
 0x2df   : > { %v2369_v62 = vpop.permute.xlu0 %2368 }
 0x2e0   : > { %v2587_v0 = vadd.f32 %v4691_v29, %v2556_v27  ;;  %v2438_v21 = vadd.f32 %v2369_v62, %v4531_v26 }
 0x2e2   : > { %v2611_v28 = vmax.f32 %v2587_v0, 0.0  ;;  %v2557_v12 = vadd.f32 %v4354_v53, %v2438_v21 }
 0x2e3   : > { %v2371_v1 = vpop.permute.xlu1 %2370 }
 0x2e4   : > { %2635 = vst.msk [vmem:[#allocation4 + $0xa] sm:$0xff] %vm292_vm3, %v2611_v28  ;;  %v2588_v39 = vadd.f32 %v4691_v29, %v2557_v12  ;;  %v2439_v37 = vadd.f32 %v2371_v1, %v4535_v32 }
 0x2e6   : > { %v2612_v23 = vmax.f32 %v2588_v39, 0.0  ;;  %v2558_v7 = vadd.f32 %v4362_v60, %v2439_v37 }
 0x2e7   : > { %v2373_v63 = vpop.permute.xlu0 %2372 }
 0x2e8   : > { %2636 = vst.msk [vmem:[#allocation4 + $0x12] sm:$0xff] %vm292_vm3, %v2612_v23  ;;  %v2589_v45 = vadd.f32 %v4691_v29, %v2558_v7  ;;  %v2440_v26 = vadd.f32 %v2373_v63, %v4541_v55 }
 0x2ea   : > { %v2613_v40 = vmax.f32 %v2589_v45, 0.0  ;;  %v2559_v53 = vadd.f32 %v4370_v2, %v2440_v26 }
 0x2eb   : > { %v2375_v30 = vpop.permute.xlu1 %2374 }
 0x2ec   : > { %2637 = vst.msk [vmem:[#allocation4 + $0x1a] sm:$0xff] %vm292_vm3, %v2613_v40  ;;  %v2590_v3 = vadd.f32 %v4691_v29, %v2559_v53  ;;  %v2441_v32 = vadd.f32 %v2375_v30, %v4547_v46 }
 0x2ee   : > { %v2614_v18 = vmax.f32 %v2590_v3, 0.0  ;;  %v2560_v60 = vadd.f32 %v4378_v9, %v2441_v32 }
 0x2ef   : > { %v2377_v27 = vpop.permute.xlu0 %2376 }
 0x2f0   : > { %2638 = vst.msk [vmem:[#allocation4 + $0x22] sm:$0xff] %vm292_vm3, %v2614_v18  ;;  %v2591_v62 = vadd.f32 %v4691_v29, %v2560_v60  ;;  %v2442_v55 = vadd.f32 %v2377_v27, %v4553_v52 }
 0x2f2   : > { %v2615_v0 = vmax.f32 %v2591_v62, 0.0  ;;  %v2561_v2 = vadd.f32 %v4386_v15, %v2442_v55 }
 0x2f3   : > { %v2658_v21 = vld [vmem:[#allocation4] ss:$4 sm:$0xff]  ;;  %v2670_v28 = vld [vmem:[#allocation4 + $0x1] ss:$4 sm:$0xff]  ;;  %v2682_v12 = vld [vmem:[#allocation4 + $0x2] ss:$4 sm:$0xff]  ;;  %v2379_v1 = vpop.permute.xlu1 %2378 }
 0x2f4   : > { %v2694_v39 = vld [vmem:[#allocation4 + $0x3] ss:$4 sm:$0xff]  ;;  %v2705_v37 = vmax.f32 %v2658_v21, %v2670_v28  ;;  %2639 = vst.msk [vmem:[#allocation4 + $0x2a] sm:$0xff] %vm292_vm3, %v2615_v0  ;;  %v2592_v9 = vadd.f32 %v4691_v29, %v2561_v2  ;;  %v2443_v46 = vadd.f32 %v2379_v1, %v4565_v35 }
 0x2f5   : > { %v2711_v23 = vmax.f32 %v2682_v12, %v2694_v39 }
 0x2f6   : > { %v2616_v7 = vmax.f32 %v2592_v9, 0.0  ;;  %v2562_v63 = vadd.f32 %v4394_v20, %v2443_v46 }
 0x2f7   : > { %v2717_v52 = vmax.f32 %v2705_v37, %v2711_v23  ;;  %v2381_v45 = vpop.permute.xlu0 %2380 }
 0x2f8   : > { %2640 = vst.msk [vmem:[#allocation4 + $0x32] sm:$0xff] %vm292_vm3, %v2616_v7  ;;  %v2593_v15 = vadd.f32 %v4691_v29, %v2562_v63  ;;  %v2444_v26 = vadd.f32 %v2381_v45, %v4583_v4 }
 0x2f9   : > { %2723 = vst.msk [vmem:[#allocation5 + $0x2] sm:$0xff] %vm292_vm3, %v2717_v52 }
 0x2fa   : > { %v2617_v40 = vmax.f32 %v2593_v15, 0.0  ;;  %v2563_v53 = vadd.f32 %v4402_v25, %v2444_v26 }
 0x2fc   : > { %v2383_v30 = vpop.permute.xlu1 %2382  ;;  %2641 = vst.msk [vmem:[#allocation4 + $0x3a] sm:$0xff] %vm292_vm3, %v2617_v40  ;;  %v2594_v35 = vadd.f32 %v4691_v29, %v2563_v53 }
 0x2fd   : > { %v2445_v20 = vadd.f32 %v2383_v30, %v4595_v14 }
 0x2fe   : > { %v2618_v3 = vmax.f32 %v2594_v35, 0.0 }
 0x2ff   : > { %v2564_v32 = vadd.f32 %v4410_v33, %v2445_v20 }
 0x300   : > { %v2385_v18 = vpop.permute.xlu0 %2384  ;;  %2642 = vst.msk [vmem:[#allocation4 + $0x42] sm:$0xff] %vm292_vm3, %v2618_v3  ;;  %v2729_v27 = vld [vmem:[#allocation5] sm:$0xff] }
 0x301   : > { %v2595_v4 = vadd.f32 %v4691_v29, %v2564_v32  ;;  %v2446_v60 = vadd.f32 %v2385_v18, %v4601_v8  ;;  %3322 = vmatmul.mubr.msk.f32.vlgmr.msra.gmra.mrb[62].mxu0 %vm292_vm3, %v2729_v27 }
 0x302   : > { %2835 = vmatprep.mubr.f32.mxu0 %v3721_v51 }
 0x303   : > { %v2619_v25 = vmax.f32 %v2595_v4, 0.0  ;;  %v2565_v62 = vadd.f32 %v4418_v41, %v2446_v60  ;;  %v2660_v55 = vld [vmem:[#allocation4 + $0x20] ss:$4 sm:$0xff]  ;;  %v2672_v14 = vld [vmem:[#allocation4 + $0x21] ss:$4 sm:$0xff] }
 0x304   : > { %v2684_v0 = vld [vmem:[#allocation4 + $0x22] ss:$4 sm:$0xff]  ;;  %v2387_v2 = vpop.permute.xlu1 %2386  ;;  %v2696_v33 = vld [vmem:[#allocation4 + $0x23] ss:$4 sm:$0xff]  ;;  %v2706_v8 = vmax.f32 %v2660_v55, %v2672_v14 }
 0x305   : > { %2643 = vst.msk [vmem:[#allocation4 + $0x4a] sm:$0xff] %vm292_vm3, %v2619_v25  ;;  %v2596_v21 = vadd.f32 %v4691_v29, %v2565_v62  ;;  %v2447_v28 = vadd.f32 %v2387_v2, %v4607_v19  ;;  %v2712_v12 = vmax.f32 %v2684_v0, %v2696_v33 }
 0x307   : > { %v2620_v1 = vmax.f32 %v2596_v21, 0.0  ;;  %v2566_v39 = vadd.f32 %v4426_v49, %v2447_v28  ;;  %v2718_v41 = vmax.f32 %v2706_v8, %v2712_v12 }
 0x308   : > { %v2389_v37 = vpop.permute.xlu0 %2388 }
 0x309   : > { %2644 = vst.msk [vmem:[#allocation4 + $0x52] sm:$0xff] %vm292_vm3, %v2620_v1  ;;  %v2597_v9 = vadd.f32 %v4691_v29, %v2566_v39  ;;  %v2448_v46 = vadd.f32 %v2389_v37, %v4613_v24  ;;  %2724 = vst.msk [vmem:[#allocation5 + $0xa] sm:$0xff] %vm292_vm3, %v2718_v41 }
 0x30b   : > { %v2621_v23 = vmax.f32 %v2597_v9, 0.0  ;;  %v2567_v7 = vadd.f32 %v4434_v61, %v2448_v46 }
 0x30c   : > { %v2391_v63 = vpop.permute.xlu1 %2390 }
 0x30d   : > { %2645 = vst.msk [vmem:[#allocation4 + $0x5a] sm:$0xff] %vm292_vm3, %v2621_v23  ;;  %v2598_v19 = vadd.f32 %v4691_v29, %v2567_v7  ;;  %v2449_v49 = vadd.f32 %v2391_v63, %v4619_v31 }
 0x30f   : > { %v2622_v52 = vmax.f32 %v2598_v19, 0.0  ;;  %v2568_v45 = vadd.f32 %v4442_v6, %v2449_v49 }
 0x310   : > { %v2393_v15 = vpop.permute.xlu0 %2392  ;;  %v2730_v40 = vld [vmem:[#allocation5 + $0x8] sm:$0xff] }
 0x311   : > { %2646 = vst.msk [vmem:[#allocation4 + $0x62] sm:$0xff] %vm292_vm3, %v2622_v52  ;;  %v2599_v24 = vadd.f32 %v4691_v29, %v2568_v45  ;;  %v2450_v26 = vadd.f32 %v2393_v15, %v4625_v38  ;;  %3323 = vmatmul.mubr.msk.f32.gmra.mrb[64].mxu0 %vm292_vm3, %v2730_v40 }
 0x312   : > { %2841 = vmatprep.mubr.f32.mxu0 %v3721_v51 }
 0x313   : > { %v2623_v61 = vmax.f32 %v2599_v24, 0.0  ;;  %v2569_v53 = vadd.f32 %v4450_v16, %v2450_v26 }
 0x314   : > { %v2662_v30 = vld [vmem:[#allocation4 + $0x40] ss:$4 sm:$0xff]  ;;  %v2674_v31 = vld [vmem:[#allocation4 + $0x41] ss:$4 sm:$0xff]  ;;  %v2686_v35 = vld [vmem:[#allocation4 + $0x42] ss:$4 sm:$0xff]  ;;  %v2395_v20 = vpop.permute.xlu1 %2394 }
 0x315   : > { %v2698_v6 = vld [vmem:[#allocation4 + $0x43] ss:$4 sm:$0xff]  ;;  %2647 = vst.msk [vmem:[#allocation4 + $0x6a] sm:$0xff] %vm292_vm3, %v2623_v61  ;;  %v2600_v3 = vadd.f32 %v4691_v29, %v2569_v53  ;;  %v2451_v32 = vadd.f32 %v2395_v20, %v4631_v48  ;;  %v2707_v38 = vmax.f32 %v2662_v30, %v2674_v31 }
 0x316   : > { %v2713_v18 = vmax.f32 %v2686_v35, %v2698_v6 }
 0x317   : > { %v2624_v4 = vmax.f32 %v2600_v3, 0.0  ;;  %v2570_v60 = vadd.f32 %v4458_v22, %v2451_v32 }
 0x318   : > { %v2397_v27 = vpop.permute.xlu0 %2396  ;;  %v2719_v16 = vmax.f32 %v2707_v38, %v2713_v18 }
 0x319   : > { %2648 = vst.msk [vmem:[#allocation4 + $0x72] sm:$0xff] %vm292_vm3, %v2624_v4  ;;  %v2601_v25 = vadd.f32 %v4691_v29, %v2570_v60  ;;  %v2452_v62 = vadd.f32 %v2397_v27, %v4637_v58 }
 0x31a   : > { %2725 = vst.msk [vmem:[#allocation5 + $0x12] sm:$0xff] %vm292_vm3, %v2719_v16 }
 0x31b   : > { %v2625_v55 = vmax.f32 %v2601_v25, 0.0  ;;  %v2571_v14 = vadd.f32 %v4466_v34, %v2452_v62 }
 0x31c   : > { %v2399_v0 = vpop.permute.xlu1 %2398 }
 0x31d   : > { %2649 = vst.msk [vmem:[#allocation4 + $0x7a] sm:$0xff] %vm292_vm3, %v2625_v55  ;;  %v2602_v48 = vadd.f32 %v4691_v29, %v2571_v14  ;;  %v2453_v22 = vadd.f32 %v2399_v0, %v4643_v5 }
 0x31f   : > { %v2626_v2 = vmax.f32 %v2602_v48, 0.0  ;;  %v2572_v33 = vadd.f32 %v4474_v44, %v2453_v22 }
 0x321   : > { %2650 = vst.msk [vmem:[#allocation4 + $0x82] sm:$0xff] %vm292_vm3, %v2626_v2  ;;  %v2603_v21 = vadd.f32 %v4691_v29, %v2572_v33  ;;  %v2731_v58 = vld [vmem:[#allocation5 + $0x10] sm:$0xff] }
 0x322   : > { %3324 = vmatmul.mubr.msk.f32.gmra.mrb[66].mxu0 %vm292_vm3, %v2731_v58 }
 0x323   : > { %v2627_v28 = vmax.f32 %v2603_v21, 0.0  ;;  %2847 = vmatprep.mubr.f32.mxu0 %v3721_v51  ;;  %v2401_v1 = vpop.permute.xlu0 %2400 }
 0x324   : > { %v2664_v34 = vld [vmem:[#allocation4 + $0x60] ss:$4 sm:$0xff]  ;;  %v2676_v8 = vld [vmem:[#allocation4 + $0x61] ss:$4 sm:$0xff]  ;;  %v2688_v12 = vld [vmem:[#allocation4 + $0x62] ss:$4 sm:$0xff]  ;;  %v2454_v5 = vadd.f32 %v2401_v1, %v4649_v54 }
 0x325   : > { %v2700_v39 = vld [vmem:[#allocation4 + $0x63] ss:$4 sm:$0xff]  ;;  %2651 = vst.msk [vmem:[#allocation4 + $0x8a] sm:$0xff] %vm292_vm3, %v2627_v28  ;;  %v2708_v44 = vmax.f32 %v2664_v34, %v2676_v8 }
 0x326   : > { %v2714_v37 = vmax.f32 %v2688_v12, %v2700_v39  ;;  %v2573_v41 = vadd.f32 %v4480_v57, %v2454_v5 }
 0x328   : > { %v2720_v9 = vmax.f32 %v2708_v44, %v2714_v37  ;;  %v2604_v46 = vadd.f32 %v4691_v29, %v2573_v41 }
 0x32a   : > { %2726 = vst.msk [vmem:[#allocation5 + $0x1a] sm:$0xff] %vm292_vm3, %v2720_v9  ;;  %v2628_v23 = vmax.f32 %v2604_v46, 0.0 }
 0x32b   : > { %v2403_v7 = vpop.permute.xlu1 %2402 }
 0x32c   : > { %2652 = vst.msk [vmem:[#allocation4 + $0x92] sm:$0xff] %vm292_vm3, %v2628_v23  ;;  %v2455_v63 = vadd.f32 %v2403_v7, %v4657_v13 }
 0x32e   : > { %v2574_v19 = vadd.f32 %v4488_v10, %v2455_v63 }
 0x330   : > { %v2605_v54 = vadd.f32 %v4691_v29, %v2574_v19 }
 0x331   : > { %v2732_v49 = vld [vmem:[#allocation5 + $0x18] sm:$0xff] }
 0x332   : > { %3325 = vmatmul.mubr.msk.f32.gmra.mrb[68].mxu0 %vm292_vm3, %v2732_v49  ;;  %v2629_v52 = vmax.f32 %v2605_v54, 0.0 }
 0x333   : > { %2853 = vmatprep.mubr.f32.mxu0 %v3721_v51  ;;  %v2405_v57 = vpop.permute.xlu0 %2404 }
 0x334   : > { %v2456_v45 = vadd.f32 %v2405_v57, %v4663_v42  ;;  %2653 = vst.msk [vmem:[#allocation4 + $0x9a] sm:$0xff] %vm292_vm3, %v2629_v52 }
 0x336   : > { %v2575_v15 = vadd.f32 %v4496_v11, %v2456_v45 }
 0x337   : > { %v2407_v13 = vpop.permute.xlu1 %2406  ;;  %v2409_v26 = vpop.permute.xlu0 %2408 }
 0x338   : > { %v2606_v24 = vadd.f32 %v4691_v29, %v2575_v15  ;;  %v2457_v10 = vadd.f32 %v2407_v13, %v4669_v43  ;;  %v2458_v40 = vadd.f32 %v2409_v26, %v4677_v59 }
 0x33a   : > { %v2630_v61 = vmax.f32 %v2606_v24, 0.0  ;;  %v2576_v53 = vadd.f32 %v4504_v36, %v2457_v10  ;;  %v2577_v30 = vadd.f32 %v4518_v56, %v2458_v40 }
 0x33b   : > { %v2411_v42 = vpop.permute.xlu1 %2410  ;;  %v2666_v31 = vld [vmem:[#allocation4 + $0x80] ss:$4 sm:$0xff]  ;;  %v2678_v35 = vld [vmem:[#allocation4 + $0x81] ss:$4 sm:$0xff]  ;;  %v2690_v20 = vld [vmem:[#allocation4 + $0x82] ss:$4 sm:$0xff] }
 0x33c   : > { %2654 = vst.msk [vmem:[#allocation4 + $0xa2] sm:$0xff] %vm292_vm3, %v2630_v61  ;;  %v2607_v11 = vadd.f32 %v4691_v29, %v2576_v53  ;;  %v2608_v6 = vadd.f32 %v4691_v29, %v2577_v30  ;;  %v2459_v3 = vadd.f32 %v2411_v42, %v4673_v17  ;;  %v2702_v43 = vld [vmem:[#allocation4 + $0x83] ss:$4 sm:$0xff]  ;;  %v2709_v32 = vmax.f32 %v2666_v31, %v2678_v35 }
 0x33d   : > { %v2715_v56 = vmax.f32 %v2690_v20, %v2702_v43 }
 0x33e   : > { %v2631_v59 = vmax.f32 %v2607_v11, 0.0  ;;  %v2632_v38 = vmax.f32 %v2608_v6, 0.0  ;;  %v2578_v36 = vadd.f32 %v2529_v50, %v2459_v3 }
 0x33f   : > { %v2721_v4 = vmax.f32 %v2709_v32, %v2715_v56 }
 0x340   : > { %2655 = vst.msk [vmem:[#allocation4 + $0xaa] sm:$0xff] %vm292_vm3, %v2631_v59  ;;  %2656 = vst.msk [vmem:[#allocation4 + $0xb2] sm:$0xff] %vm292_vm3, %v2632_v38  ;;  %v2609_v18 = vadd.f32 %v4691_v29, %v2578_v36 }
 0x341   : > { %2727 = vst.msk [vmem:[#allocation5 + $0x22] sm:$0xff] %vm292_vm3, %v2721_v4 }
 0x342   : > { %v2633_v60 = vmax.f32 %v2609_v18, 0.0 }
 0x344   : > { %2657 = vst.msk [vmem:[#allocation4 + $0xba] sm:$0xf] %vm1809_vm5, %v2633_v60 }
 0x348   : > { %v2733_v17 = vld [vmem:[#allocation5 + $0x20] sm:$0xff] }
 0x349   : > { %3326 = vmatmul.mubr.msk.f32.gmra.mrb[70].mxu0 %vm292_vm3, %v2733_v17  ;;  %v3043_v17 = vld [vmem:[%s4924_s7 + $0x8] sm:$0xff] }
 0x34a   : > { %2859 = vmatprep.mubr.f32.mxu0 %v3721_v51 }
 0x34b   : > { %v2668_v27 = vld [vmem:[#allocation4 + $0xa0] ss:$4 sm:$0xff]  ;;  %v2680_v16 = vld [vmem:[#allocation4 + $0xa1] ss:$4 sm:$0xff]  ;;  %v2692_v47 = vld [vmem:[#allocation4 + $0xa2] ss:$4 sm:$0xff] }
 0x34c   : > { %v2704_v50 = vld [vmem:[#allocation4 + $0xa3] ss:$4 sm:$0xff]  ;;  %v2710_v25 = vmax.f32 %v2668_v27, %v2680_v16 }
 0x34d   : > { %v2716_v62 = vmax.f32 %v2692_v47, %v2704_v50  ;;  %v3045_v27 = vld [vmem:[%s4924_s7 + $0x18] sm:$0xff]  ;;  %v3042_v16 = vld [vmem:[%s4924_s7] sm:$0xff]  ;;  %v3044_v50 = vld [vmem:[%s4924_s7 + $0x10] sm:$0xff] }
 0x34e   : > { %v3661_v47 = vpack.c.bf16 %v3045_v27, %v3043_v17 }
 0x34f   : > { %v2722_v55 = vmax.f32 %v2710_v25, %v2716_v62  ;;  %v3663_v62 = vpack.c.bf16 %v3044_v50, %v3042_v16 }
 0x350   : > { %3662 = vmatprep.subr.bf16.mxu0 %v3661_v47 }
 0x351   : > { %2728 = vst.msk [vmem:[#allocation5 + $0x2a] sm:$0xff] %vm292_vm3, %v2722_v55  ;;  %3664 = vmatpush1.bf16.msra.mxu0 %v3663_v62 }
 0x358   : > { %v2734_v29 = vld [vmem:[#allocation5 + $0x28] sm:$0xff]  ;;  %v2735_v14 = vld [vmem:[#allocation5 + $0x30] sm:$0xf] }
 0x359   : > { %3327 = vmatmul.mubr.msk.f32.gmra.mrb[72].mxu0 %vm292_vm3, %v2734_v29 }
 0x35a   : > { %2865 = vmatprep.mubr.f32.mxu0 %v3721_v51 }
 0x35d   : > { %3328 = vmatmul.mubr.msk.f32.gmra.mrb[74].mxu0 %vm292_vm3, %v2735_v14 }
 0x35e   : > { %3120 = vmatprep.mubr.f32.mxu0 %v3721_v51 }
 0x3d4   : > { %v2831_v0 = vpop.f32.mrb[62].mxu0 }
 0x3d5   : > { %v2833_v48 = vpop.f32.mrb[63].mxu0  ;;  %v2879_v2 = vrot.slane %v2831_v0, 1 }
 0x3d6   : > { %v2971_v58 = vrot.slane %v2833_v48, 4 }
 0x3e4   : > { %v2837_v22 = vpop.f32.mrb[64].mxu0 }
 0x3e5   : > { %v2880_v33 = vrot.slane %v2837_v22, 1  ;;  %v2839_v21 = vpop.f32.mrb[65].mxu0 }
 0x3e6   : > { %v2972_v28 = vrot.slane %v2839_v21, 4 }
 0x3e7   : > { %v2881_v34 = vsel %vm2148_vm6, %v2879_v2, %v2880_v33 }
 0x3e8   : > { %2892 = vrot.lane.b32.xlu0 %v2881_v34, %s3722_s10  ;;  %v4812_v8 = vsel %vm127_vm1, %v2971_v58, %v2972_v28  ;;  %v3047_v58 = vld [vmem:[%s4924_s7 + $0x28] sm:$0xff]  ;;  %v3046_v34 = vld [vmem:[%s4924_s7 + $0x20] sm:$0xff] }
 0x3f5   : > { %v2843_v12 = vpop.f32.mrb[66].mxu0 }
 0x3f6   : > { %v2882_v1 = vrot.slane %v2843_v12, 1  ;;  %v2845_v39 = vpop.f32.mrb[67].mxu0 }
 0x3f7   : > { %v2974_v5 = vrot.slane %v2845_v39, 4 }
 0x3f8   : > { %v2883_v44 = vsel %vm2148_vm6, %v2880_v33, %v2882_v1 }
 0x3f9   : > { %2894 = vrot.lane.b32.xlu1 %v2883_v44, %s3722_s10  ;;  %v4817_v37 = vsel %vm127_vm1, %v2972_v28, %v2974_v5  ;;  %v3049_v28 = vld [vmem:[%s4924_s7 + $0x38] sm:$0xff] }
 0x405   : > { %v2849_v41 = vpop.f32.mrb[68].mxu0 }
 0x406   : > { %v2884_v9 = vrot.slane %v2849_v41, 1  ;;  %v2851_v46 = vpop.f32.mrb[69].mxu0 }
 0x407   : > { %v2976_v23 = vrot.slane %v2851_v46, 4 }
 0x408   : > { %v2885_v7 = vsel %vm2148_vm6, %v2882_v1, %v2884_v9  ;;  %v3048_v1 = vld [vmem:[%s4924_s7 + $0x30] sm:$0xff] }
 0x409   : > { %2896 = vrot.lane.b32.xlu0 %v2885_v7, %s3722_s10  ;;  %v4822_v63 = vsel %vm127_vm1, %v2974_v5, %v2976_v23  ;;  %v3667_v44 = vpack.c.bf16 %v3048_v1, %v3046_v34  ;;  %v3329_v7 = vld [vmem:[%s4923_s6] ss:$0 sm:$0xff] }
 0x41c   : > { %v2855_v19 = vpop.f32.mrb[70].mxu0 }
 0x41d   : > { %v2886_v49 = vrot.slane %v2855_v19, 1  ;;  %v2857_v54 = vpop.f32.mrb[71].mxu0 }
 0x41e   : > { %v2978_v57 = vrot.slane %v2857_v54, 4 }
 0x41f   : > { %v2887_v52 = vsel %vm2148_vm6, %v2884_v9, %v2886_v49 }
 0x420   : > { %2898 = vrot.lane.b32.xlu1 %v2887_v52, %s3722_s10  ;;  %v4827_v45 = vsel %vm127_vm1, %v2976_v23, %v2978_v57 }
 0x42c   : > { %v2861_v15 = vpop.f32.mrb[72].mxu0 }
 0x42d   : > { %v2888_v24 = vrot.slane %v2861_v15, 1  ;;  %v2863_v13 = vpop.f32.mrb[73].mxu0 }
 0x42e   : > { %v2980_v26 = vrot.slane %v2863_v13, 4 }
 0x42f   : > { %v2889_v10 = vsel %vm2148_vm6, %v2886_v49, %v2888_v24 }
 0x430   : > { %2900 = vrot.lane.b32.xlu0 %v2889_v10, %s3722_s10  ;;  %v2867_v40 = vpop.f32.mrb[74].mxu0  ;;  %v4832_v61 = vsel %vm127_vm1, %v2978_v57, %v2980_v26 }
 0x431   : > { %v2890_v53 = vrot.slane %v2867_v40, 1  ;;  %v2869_v30 = vpop.f32.mrb[75].mxu0 }
 0x432   : > { %v2982_v42 = vrot.slane %v2869_v30, 4 }
 0x433   : > { %v2891_v31 = vsel %vm2148_vm6, %v2888_v24, %v2890_v53 }
 0x434   : > { %2916 = vrot.lane.b32.xlu0 %v2890_v53, %s3722_s10  ;;  %2902 = vrot.lane.b32.xlu1 %v2891_v31, %s3722_s10  ;;  %v4838_v35 = vsel %vm127_vm1, %v2980_v26, %v2982_v42 }
 0x45a   : > { %v2893_v20 = vpop.permute.xlu0 %2892 }
 0x45b   : > { %v2910_v11 = vadd.f32 %v2893_v20, %v2831_v0 }
 0x45d   : > { %v2927_v43 = vrot.slane %v2910_v11, 2 }
 0x46b   : > { %v2895_v6 = vpop.permute.xlu1 %2894 }
 0x46c   : > { %v2911_v3 = vadd.f32 %v2895_v6, %v2837_v22 }
 0x46e   : > { %v2928_v32 = vrot.slane %v2911_v3, 2 }
 0x470   : > { %v2929_v59 = vsel %vm2316_vm7, %v2927_v43, %v2928_v32 }
 0x471   : > { %2940 = vrot.lane.b32.xlu1 %v2929_v59, %s3723_s11 }
 0x47b   : > { %v2897_v38 = vpop.permute.xlu0 %2896 }
 0x47c   : > { %v2912_v36 = vadd.f32 %v2897_v38, %v2843_v12  ;;  %v3665_v12 = vpack.c.bf16 %v3049_v28, %v3047_v58 }
 0x47e   : > { %v2930_v56 = vrot.slane %v2912_v36, 2  ;;  %3666 = vmatprep.subr.bf16.mxu0 %v3665_v12 }
 0x47f   : > { %3668 = vmatpush1.bf16.msra.mxu0 %v3667_v44 }
 0x480   : > { %v2931_v18 = vsel %vm2316_vm7, %v2928_v32, %v2930_v56 }
 0x481   : > { %2942 = vrot.lane.b32.xlu0 %v2931_v18, %s3723_s11 }
 0x492   : > { %v2899_v4 = vpop.permute.xlu1 %2898 }
 0x493   : > { %v2913_v60 = vadd.f32 %v2899_v4, %v2849_v41 }
 0x495   : > { %v2932_v25 = vrot.slane %v2913_v60, 2 }
 0x497   : > { %v2933_v55 = vsel %vm2316_vm7, %v2930_v56, %v2932_v25 }
 0x498   : > { %2944 = vrot.lane.b32.xlu1 %v2933_v55, %s3723_s11 }
 0x4a2   : > { %v2901_v29 = vpop.permute.xlu0 %2900 }
 0x4a3   : > { %v2914_v14 = vadd.f32 %v2901_v29, %v2855_v19 }
 0x4a5   : > { %v2934_v0 = vrot.slane %v2914_v14, 2 }
 0x4a6   : > { %v2917_v48 = vpop.permute.xlu0 %2916  ;;  %v2903_v22 = vpop.permute.xlu1 %2902 }
 0x4a7   : > { %v2919_v2 = vadd.f32 %v2917_v48, %v2867_v40  ;;  %v2915_v33 = vadd.f32 %v2903_v22, %v2861_v15  ;;  %v2935_v21 = vsel %vm2316_vm7, %v2932_v25, %v2934_v0 }
 0x4a8   : > { %2946 = vrot.lane.b32.xlu0 %v2935_v21, %s3723_s11 }
 0x4a9   : > { %v2938_v39 = vrot.slane %v2919_v2, 2  ;;  %v2936_v5 = vrot.slane %v2915_v33, 2 }
 0x4ab   : > { %v2939_v41 = vsel %vm2316_vm7, %v2936_v5, %v2938_v39  ;;  %v2937_v9 = vsel %vm2316_vm7, %v2934_v0, %v2936_v5 }
 0x4ac   : > { %2950 = vrot.lane.b32.xlu0 %v2939_v41, %s3723_s11  ;;  %2948 = vrot.lane.b32.xlu1 %v2937_v9, %s3723_s11 }
 0x4e3   : > { %v2941_v46 = vpop.permute.xlu1 %2940 }
 0x4e4   : > { %v2958_v23 = vadd.f32 %v2941_v46, %v2910_v11 }
 0x4e6   : > { %v2990_v19 = vadd.f32 %v4812_v8, %v2958_v23 }
 0x4e8   : > { %v3003_v49 = vadd.f32 %v3329_v7, %v2990_v19  ;;  %v3167_v19 = vld [vmem:[%s4925_s8] sm:$0x1] }
 0x4ea   : > { %v3009_v54 = vmax.f32 %v3003_v49, 0.0 }
 0x4ec   : > { %3015 = vst.msk [vmem:[#allocation6 + $0x2] sm:$0xff] %vm292_vm3, %v3009_v54 }
 0x4f3   : > { %v2943_v57 = vpop.permute.xlu0 %2942 }
 0x4f4   : > { %v2959_v52 = vadd.f32 %v2943_v57, %v2911_v3 }
 0x4f6   : > { %v2991_v15 = vadd.f32 %v4817_v37, %v2959_v52 }
 0x4f8   : > { %v3004_v24 = vadd.f32 %v3329_v7, %v2991_v15 }
 0x4fa   : > { %v3010_v13 = vmax.f32 %v3004_v24, 0.0 }
 0x4fc   : > { %3016 = vst.msk [vmem:[#allocation6 + $0xa] sm:$0xff] %vm292_vm3, %v3010_v13 }
 0x50a   : > { %v2945_v26 = vpop.permute.xlu1 %2944 }
 0x50b   : > { %v2960_v10 = vadd.f32 %v2945_v26, %v2912_v36 }
 0x50d   : > { %v2992_v40 = vadd.f32 %v4822_v63, %v2960_v10 }
 0x50f   : > { %v3005_v53 = vadd.f32 %v3329_v7, %v2992_v40 }
 0x511   : > { %v3011_v30 = vmax.f32 %v3005_v53, 0.0 }
 0x513   : > { %3017 = vst.msk [vmem:[#allocation6 + $0x12] sm:$0xff] %vm292_vm3, %v3011_v30 }
 0x51a   : > { %v2947_v8 = vpop.permute.xlu0 %2946 }
 0x51b   : > { %v2961_v42 = vadd.f32 %v2947_v8, %v2913_v60 }
 0x51d   : > { %v2993_v31 = vadd.f32 %v4827_v45, %v2961_v42 }
 0x51e   : > { %v2951_v20 = vpop.permute.xlu0 %2950  ;;  %v2949_v11 = vpop.permute.xlu1 %2948 }
 0x51f   : > { %v3006_v6 = vadd.f32 %v3329_v7, %v2993_v31  ;;  %v2963_v37 = vadd.f32 %v2951_v20, %v2915_v33  ;;  %v2962_v3 = vadd.f32 %v2949_v11, %v2914_v14 }
 0x521   : > { %v3012_v43 = vmax.f32 %v3006_v6, 0.0  ;;  %v2995_v32 = vadd.f32 %v4838_v35, %v2963_v37  ;;  %v2994_v59 = vadd.f32 %v4832_v61, %v2962_v3 }
 0x523   : > { %3018 = vst.msk [vmem:[#allocation6 + $0x1a] sm:$0xff] %vm292_vm3, %v3012_v43  ;;  %v3008_v63 = vadd.f32 %v3329_v7, %v2995_v32  ;;  %v3007_v38 = vadd.f32 %v3329_v7, %v2994_v59 }
 0x525   : > { %v3014_v36 = vmax.f32 %v3008_v63, 0.0  ;;  %v3013_v56 = vmax.f32 %v3007_v38, 0.0 }
 0x527   : > { %3020 = vst.msk [vmem:[#allocation6 + $0x2a] sm:$0xff] %vm292_vm3, %v3014_v36  ;;  %3019 = vst.msk [vmem:[#allocation6 + $0x22] sm:$0xff] %vm292_vm3, %v3013_v56 }
 0x52a   : > { %v3021_v45 = vld [vmem:[#allocation6] ss:$4 sm:$0xff]  ;;  %v3025_v18 = vld [vmem:[#allocation6 + $0x1] ss:$4 sm:$0xff]  ;;  %v3029_v4 = vld [vmem:[#allocation6 + $0x2] ss:$4 sm:$0xff] }
 0x52b   : > { %v3033_v60 = vld [vmem:[#allocation6 + $0x3] ss:$4 sm:$0xff]  ;;  %v3036_v17 = vmax.f32 %v3021_v45, %v3025_v18 }
 0x52c   : > { %v3038_v27 = vmax.f32 %v3029_v4, %v3033_v60 }
 0x52e   : > { %v3040_v16 = vmax.f32 %v3036_v17, %v3038_v27  ;;  %v3023_v35 = vld [vmem:[#allocation6 + $0x20] ss:$4 sm:$0x1f]  ;;  %v3027_v47 = vld [vmem:[#allocation6 + $0x21] ss:$4 sm:$0x1f] }
 0x52f   : > { %v3031_v61 = vld [vmem:[#allocation6 + $0x22] ss:$4 sm:$0x1f]  ;;  %v3035_v50 = vld [vmem:[#allocation6 + $0x23] ss:$4 sm:$0x1f]  ;;  %v3037_v25 = vmax.f32 %v3023_v35, %v3027_v47 }
 0x530   : > { %3330 = vmatmul.mubr.msk.f32.vlgmr.msra.gmra.mrb[76].mxu0 %vm292_vm3, %v3040_v16  ;;  %v3039_v62 = vmax.f32 %v3031_v61, %v3035_v50 }
 0x531   : > { %3125 = vmatprep.mubr.f32.mxu0 %v3721_v51 }
 0x532   : > { %v3041_v55 = vmax.f32 %v3037_v25, %v3039_v62 }
 0x534   : > { %3331 = vmatmul.mubr.msk.f32.gmra.mrb[78].mxu0 %vm292_vm3, %v3041_v55 }
 0x603   : > { %v3122_v29 = vpop.f32.mrb[76].mxu0 }
 0x604   : > { %v3132_v14 = vrot.slane %v3122_v29, 1  ;;  %v3124_v0 = vpop.f32.mrb[77].mxu0 }
 0x606   : > { %3133 = vrot.lane.b32.xlu1 %v3132_v14, %s3724_s12 }
 0x607   : > { %v3127_v48 = vpop.f32.mrb[78].mxu0 }
 0x608   : > { %v3128_v22 = vpop.f32.mrb[79].mxu0 }
 0x609   : > { %v3138_v2 = vrot.slane %v3128_v22, 1  ;;  %v3161_v12 = vrot.slane %v3128_v22, 4 }
 0x60b   : > { %3139 = vrot.lane.b32.xlu0 %v3138_v2, %s3724_s12 }
 0x678   : > { %v3134_v33 = vpop.permute.xlu1 %3133 }
 0x679   : > { %v3136_v21 = vadd.f32 %v3134_v33, %v3122_v29 }
 0x67b   : > { %v3144_v58 = vrot.slane %v3136_v21, 2 }
 0x67d   : > { %3145 = vrot.lane.b32.xlu1 %v3144_v58, %s3722_s10  ;;  %v3140_v28 = vpop.permute.xlu0 %3139 }
 0x67e   : > { %v3142_v34 = vadd.f32 %v3140_v28, %v3128_v22 }
 0x680   : > { %v3150_v51 = vrot.slane %v3142_v34, 2 }
 0x682   : > { %3151 = vrot.lane.b32.xlu0 %v3150_v51, %s3722_s10  ;;  %s3169_s10 = scalar_lea.vmem [#allocation7], %s3717_s30  ;;  %s49_s30 = sadd.s32 1, %s3717_s30  }
 0x683   : > { %p46_p0 = scmp.ge.s32.totalorder %s49_s30, 2  }
 0x686   : > { %3162 = vrot.lane.b32.xlu0 %v3161_v12, %s3723_s11 }
 0x6ef   : > { %v3146_v1 = vpop.permute.xlu1 %3145 }
 0x6f0   : > { %v3148_v39 = vadd.f32 %v3146_v1, %v3136_v21 }
 0x6f2   : > { %v3156_v5 = vrot.slane %v3148_v39, 4 }
 0x6f4   : > { %3157 = vrot.lane.b32.xlu1 %v3156_v5, %s3723_s11  ;;  %v3152_v44 = vpop.permute.xlu0 %3151  ;;  %s3725_s11 = smov (%p46_p0), [#allocation7]  }
 0x6f5   : > { %v3154_v9 = vadd.f32 %v3152_v44, %v3142_v34  ;;  %s3177_s15 = sshll.u32 (%p46_p0), %s3725_s11, 4  ;;  %s3178_s15 = int_to_ptr.vmem [resolvable:$true] %s3177_s15 }
 0x6f6   :  { %s3687_s16 = scalar_lea.vmem (%p46_p0), %s3178_s15, 32  ;;  %p3692_p2 = scmp.lt.s32.totalorder (%p46_p0), %s3178_s15, %s3178_s15 }
 0x6f7   :  { %p3688_p1 = scmp.ne.s32.totalorder (%p46_p0), %s3178_s15, %s3687_s16  ;;  %p3693_p3 = scmp.lt.s32.totalorder (%p46_p0), %s3687_s16, %s3687_s16 }
 0x6f8   : > { %v3163_v41 = vpop.permute.xlu0 %3162 }
 0x6f9   : > { %v3165_v23 = vadd.f32 %v3163_v41, %v3154_v9  ;;  %p3694_p4 = por (%p46_p0), %p3693_p3, %p3692_p2 }
 0x6fb   :  { %p3695_p5 = pnand (%p46_p0), %p3694_p4, %p3688_p1 }
 0x766   : > { %v3158_v46 = vpop.permute.xlu1 %3157 }
 0x767   : > { %v3160_v7 = vadd.f32 %v3158_v46, %v3148_v39  ;;  %48 = sbr.rel (!%p46_p0) target bundleno = 6 (0x6), region = 190 }
 0x769   : > { %v3166_v49 = vadd.f32 %v3165_v23, %v3160_v7 }
 0x76b   : > { %v3168_v54 = vadd.f32 %v3167_v19, %v3166_v49 }
 0x76d   : > { %3171 = vst.msk [vmem:[%s3169_s10] sm:$0x1] %vm3170_vm8, %v3168_v54 }
 0x76e   :  { %3698 = shalt.err (!%p3695_p5)
}
 0x76f   :  { %s3699_s19 = scalar_lea.hbm %s4926_s9, 32 }
 0x770   :  { %p3700_p6 = scmp.ne.s32.totalorder %s4926_s9, %s3699_s19  ;;  %p3703_p7 = scmp.lt.u32.totalorder %s3699_s19, %s4926_s9 }
 0x772   :  { %p3705_p8 = pnand %p3703_p7, %p3700_p6 }
 0x774   :  { %3708 = shalt.err (!%p3705_p8)
}
 0x775   :  { %s3726_s0 = smov 16   ;;  %s3727_s1 = smov 1  }
 0x776   :  { %3183 = dma.vmem_to_hbm [thread:$0]  %s3178_s15, 32, %s4926_s9, [#allocation8], %s3726_s0, %s3726_s0, %s3727_s1  }
 0x777   :  { %3713 = dma.done.wait [#allocation8], 32  }
 0x778   :  { %3714 = vsyncadd [#allocation8], 4294967264 }
 0x779   :  { %3187 = vsyncpa [#allocation8], 1 }

</bundles_post_ra>
